<compile_context>
chip_gen: v6e
topology: v6e:2x2x1
jax: 0.10.0
libtpu: 0.0.40
codegen_flags: <defaults>
</compile_context>

<pallas_src>
import math

import jax
import jax.numpy as jnp
from jax.experimental import pallas as pl
from jax.experimental.pallas import tpu as pltpu


def _lstm_ae_kernel(x_ref,        # (T, B, D)   input sequence (time-major)
                    enc_win_ref,  # (D, 4H)     fw^T @ enc_w_ih^T (feature weighting folded in)
                    enc_b_ref,    # (1, 4H)     enc b_ih + b_hh
                    enc_whh_ref,  # (4, H, H)   per-gate enc w_hh^T   [i, f, g, o]
                    dec_whh_ref,  # (4, H, H)   per-gate dec w_hh^T   (decoder step 0)
                    dec_b_ref,    # (1, 4H)     dec b_ih + b_hh       (decoder step 0 bias)
                    dec_wf_ref,   # (4, H, H)   per-gate fused fc^T @ dec_w_ih^T + dec_w_hh^T
                    dec_bf_ref,   # (1, 4H)     fused fc_b @ dec_w_ih^T + dec bias
                    fcw_ref,      # (H, D)      fc.weight^T
                    fcb_ref,      # (1, D)      fc.bias
                    out_ref):     # (S, B, D)   reconstruction (time-major)
    T, B, D = x_ref.shape
    S = out_ref.shape[0]
    H = enc_whh_ref.shape[1]

    # ---- hoisted encoder input projection: one big matmul, off the recurrence ----
    x_flat = x_ref[...].reshape(T * B, D)
    gates_ih = jnp.dot(x_flat, enc_win_ref[...], preferred_element_type=jnp.float32)
    gates_ih = gates_ih + jnp.broadcast_to(enc_b_ref[...], (T * B, 4 * H))
    # one-time per-gate split (i, f, g, o) -> no per-step lane slicing later
    enc_ih = [gates_ih[:, k * H:(k + 1) * H] for k in range(4)]

    # ---- hoisted weight loads / bias broadcasts (JAX does not CSE these) ----
    enc_whh = [enc_whh_ref[k] for k in range(4)]
    dec_whh = [dec_whh_ref[k] for k in range(4)]
    dec_wf = [dec_wf_ref[k] for k in range(4)]
    dec_b_full = dec_b_ref[...]
    dec_bf_full = dec_bf_ref[...]
    dec_b = [jnp.broadcast_to(dec_b_full[:, k * H:(k + 1) * H], (B, H)) for k in range(4)]
    dec_bf = [jnp.broadcast_to(dec_bf_full[:, k * H:(k + 1) * H], (B, H)) for k in range(4)]
    fcw = fcw_ref[...]
    fcb = jnp.broadcast_to(fcb_ref[...], (B, D))

    def cell(h, c, gi, gf, gg, go):
        c_new = jax.nn.sigmoid(gf) * c + jax.nn.sigmoid(gi) * jnp.tanh(gg)
        h_new = jax.nn.sigmoid(go) * jnp.tanh(c_new)
        return h_new, c_new

    h = jnp.zeros((B, H), jnp.float32)
    c = jnp.zeros((B, H), jnp.float32)

    # ---- encoder: fully unrolled; only the per-gate h @ W_hh dots on the chain ----
    for t in range(T):
        r0, r1 = t * B, (t + 1) * B
        gi = enc_ih[0][r0:r1, :] + jnp.dot(h, enc_whh[0], preferred_element_type=jnp.float32)
        gf = enc_ih[1][r0:r1, :] + jnp.dot(h, enc_whh[1], preferred_element_type=jnp.float32)
        gg = enc_ih[2][r0:r1, :] + jnp.dot(h, enc_whh[2], preferred_element_type=jnp.float32)
        go = enc_ih[3][r0:r1, :] + jnp.dot(h, enc_whh[3], preferred_element_type=jnp.float32)
        h, c = cell(h, c, gi, gf, gg, go)

    # ---- decoder: fully unrolled, fc folded into the recurrence ----
    #   step 0 : decoder input is zeros -> gates = h @ W_hh^T + b
    #   step s>0: decoder input is fc(h) -> gates = h @ (fc^T W_ih^T + W_hh^T) + fused bias
    outs = []
    for s in range(S):
        w, b = (dec_whh, dec_b) if s == 0 else (dec_wf, dec_bf)
        gi = b[0] + jnp.dot(h, w[0], preferred_element_type=jnp.float32)
        gf = b[1] + jnp.dot(h, w[1], preferred_element_type=jnp.float32)
        gg = b[2] + jnp.dot(h, w[2], preferred_element_type=jnp.float32)
        go = b[3] + jnp.dot(h, w[3], preferred_element_type=jnp.float32)
        h, c = cell(h, c, gi, gf, gg, go)
        # fc output matmul is off the carried chain (only feeds the stored output)
        outs.append(jnp.dot(h, fcw, preferred_element_type=jnp.float32) + fcb)

    # single batched store of all decoder outputs
    out_ref[...] = jnp.stack(outs, axis=0)


def weighted_lstm_autoencoder_fwd(x, params, sequence_length):
    """x: (B, T, D) batch_first, like the PyTorch module. Returns (B, S, D)."""
    B, T, D = x.shape
    H = params['enc_w_hh'].shape[1]
    f32 = jnp.float32
    x_tm = jnp.transpose(x, (1, 0, 2)).astype(f32)        # (T, B, D)

    fw_t = params['fw_w'].T.astype(f32)                    # (D, D)
    ewih_t = params['enc_w_ih'].T.astype(f32)              # (D, 4H)
    ewhh_t = params['enc_w_hh'].T.astype(f32)              # (H, 4H)
    dwih_t = params['dec_w_ih'].T.astype(f32)              # (D, 4H)
    dwhh_t = params['dec_w_hh'].T.astype(f32)              # (H, 4H)
    fcw_t = params['fc_w'].T.astype(f32)                   # (H, D)
    fcb = params['fc_b'].astype(f32).reshape(1, D)

    # Parameter-side algebraic fusions (computed once, outside the kernel).
    enc_win = fw_t @ ewih_t                                 # feature weighting folded into enc W_ih
    enc_b = (params['enc_b_ih'] + params['enc_b_hh']).astype(f32).reshape(1, 4 * H)
    dec_b = (params['dec_b_ih'] + params['dec_b_hh']).astype(f32).reshape(1, 4 * H)
    dec_wfused = fcw_t @ dwih_t + dwhh_t                    # fc folded into decoder recurrence
    dec_bfused = fcb @ dwih_t + dec_b

    def split_gates(w):                                     # (H, 4H) -> (4, H, H), order [i, f, g, o]
        return jnp.stack([w[:, k * H:(k + 1) * H] for k in range(4)], axis=0)

    args = (
        x_tm, enc_win, enc_b,
        split_gates(ewhh_t),
        split_gates(dwhh_t), dec_b,
        split_gates(dec_wfused), dec_bfused,
        fcw_t, fcb,
    )
    out_tm = pl.pallas_call(
        _lstm_ae_kernel,
        out_shape=jax.ShapeDtypeStruct((sequence_length, B, D), jnp.float32),
        in_specs=[pl.BlockSpec(memory_space=pltpu.MemorySpace.VMEM)] * len(args),
        out_specs=pl.BlockSpec(memory_space=pltpu.MemorySpace.VMEM),
    )(*args)
    return jnp.transpose(out_tm, (1, 0, 2))                 # (B, S, D)


def init_params(key, input_dim, hidden_dim):
    """Deterministic init matching the PyTorch module's parameter shapes."""
    D, H = input_dim, hidden_dim
    ks = jax.random.split(key, 11)

    def u(k, shape, bound):
        return jax.random.uniform(k, shape, jnp.float32, -bound, bound)

    fw = u(ks[0], (D, D), 1.0 / math.sqrt(D))
    fw = fw.at[:, 2].set(10.0)          # nn.init.constant_(weight[:, 2], 10)
    b = 1.0 / math.sqrt(H)
    return dict(
        fw_w=fw,
        enc_w_ih=u(ks[1], (4 * H, D), b), enc_w_hh=u(ks[2], (4 * H, H), b),
        enc_b_ih=u(ks[3], (4 * H,), b),   enc_b_hh=u(ks[4], (4 * H,), b),
        dec_w_ih=u(ks[5], (4 * H, D), b), dec_w_hh=u(ks[6], (4 * H, H), b),
        dec_b_ih=u(ks[7], (4 * H,), b),   dec_b_hh=u(ks[8], (4 * H,), b),
        fc_w=u(ks[9], (D, H), b),         fc_b=u(ks[10], (D,), b),
    )


def _reference_fwd(x, p, sequence_length):
    """Pure-JAX reference mirroring the PyTorch forward (unfused), for sanity checking."""
    B, T, D = x.shape
    H = p['enc_w_hh'].shape[1]

    def cell(xt, h, c, wih, whh, bih, bhh):
        g = xt @ wih.T + bih + h @ whh.T + bhh
        i = jax.nn.sigmoid(g[:, 0 * H:1 * H])
        f = jax.nn.sigmoid(g[:, 1 * H:2 * H])
        gg = jnp.tanh(g[:, 2 * H:3 * H])
        o = jax.nn.sigmoid(g[:, 3 * H:4 * H])
        c = f * c + i * gg
        return o * jnp.tanh(c), c

    xw = x @ p['fw_w'].T
    h = jnp.zeros((B, H), jnp.float32)
    c = jnp.zeros((B, H), jnp.float32)
    for t in range(T):
        h, c = cell(xw[:, t, :], h, c, p['enc_w_ih'], p['enc_w_hh'],
                    p['enc_b_ih'], p['enc_b_hh'])
    dec_in = jnp.zeros((B, D), jnp.float32)
    outs = []
    for _ in range(sequence_length):
        h, c = cell(dec_in, h, c, p['dec_w_ih'], p['dec_w_hh'],
                    p['dec_b_ih'], p['dec_b_hh'])
        o = h @ p['fc_w'].T + p['fc_b']
        outs.append(o)
        dec_in = o
    return jnp.stack(outs, axis=1)


if __name__ == "__main__":
    B, T, D, H = 2, 8, 4, 32
    sequence_length = 8

    key = jax.random.PRNGKey(0)
    k_params, k_x = jax.random.split(key)
    params = init_params(k_params, D, H)
    x = jax.random.normal(k_x, (B, T, D), jnp.float32)

    out = weighted_lstm_autoencoder_fwd(x, params, sequence_length)
    out = jax.block_until_ready(out)

    ref = jax.block_until_ready(_reference_fwd(x, params, sequence_length))
    assert out.shape == (B, sequence_length, D)
    assert jnp.allclose(out, ref, rtol=1e-2, atol=1e-2), "mismatch vs JAX reference"

    print("KERNEL_OK")
</pallas_src>

<mosaic_0001>
module attributes {stable_mosaic.version = 11 : i64} {
  func.func @_lstm_ae_kernel(%arg0: memref<8x2x4xf32, #tpu.memory_space<vmem>>, %arg1: memref<4x128xf32, #tpu.memory_space<vmem>>, %arg2: memref<1x128xf32, #tpu.memory_space<vmem>>, %arg3: memref<4x32x32xf32, #tpu.memory_space<vmem>>, %arg4: memref<4x32x32xf32, #tpu.memory_space<vmem>>, %arg5: memref<1x128xf32, #tpu.memory_space<vmem>>, %arg6: memref<4x32x32xf32, #tpu.memory_space<vmem>>, %arg7: memref<1x128xf32, #tpu.memory_space<vmem>>, %arg8: memref<32x4xf32, #tpu.memory_space<vmem>>, %arg9: memref<1x4xf32, #tpu.memory_space<vmem>>, %arg10: memref<8x2x4xf32, #tpu.memory_space<vmem>>) attributes {dimension_semantics = [], scalar_prefetch = 0 : i64, scratch_operands = 0 : i64, tpu.core_type = #tpu.core_type<tc>} {
    %c0 = arith.constant 0 : index
    %c0_0 = arith.constant 0 : index
    %c0_1 = arith.constant 0 : index
    %0 = vector.load %arg0[%c0, %c0_0, %c0_1] : memref<8x2x4xf32, #tpu.memory_space<vmem>>, vector<8x2x4xf32>
    %1 = vector.shape_cast %0 : vector<8x2x4xf32> to vector<16x4xf32>
    %c0_2 = arith.constant 0 : index
    %c0_3 = arith.constant 0 : index
    %2 = vector.load %arg1[%c0_2, %c0_3] : memref<4x128xf32, #tpu.memory_space<vmem>>, vector<4x128xf32>
    %cst = arith.constant dense<0.000000e+00> : vector<16x128xf32>
    %3 = tpu.matmul %1, %2, %cst {dimension_numbers = #tpu.dot_dimension_numbers<[1], [0], [0], [1], [0, 0, 1, 1], [], []>} : vector<16x4xf32>, vector<4x128xf32>, vector<16x128xf32> -> vector<16x128xf32>
    %c0_4 = arith.constant 0 : index
    %c0_5 = arith.constant 0 : index
    %4 = vector.load %arg2[%c0_4, %c0_5] : memref<1x128xf32, #tpu.memory_space<vmem>>, vector<1x128xf32>
    %5 = vector.shape_cast %4 : vector<1x128xf32> to vector<1x128xf32>
    %6 = vector.broadcast %5 : vector<1x128xf32> to vector<16x128xf32>
    %7 = arith.addf %3, %6 : vector<16x128xf32>
    %8 = vector.extract_strided_slice %7 {offsets = [0, 0], sizes = [16, 32], strides = [1, 1]} : vector<16x128xf32> to vector<16x32xf32>
    %9 = vector.extract_strided_slice %7 {offsets = [0, 32], sizes = [16, 32], strides = [1, 1]} : vector<16x128xf32> to vector<16x32xf32>
    %10 = vector.extract_strided_slice %7 {offsets = [0, 64], sizes = [16, 32], strides = [1, 1]} : vector<16x128xf32> to vector<16x32xf32>
    %11 = vector.extract_strided_slice %7 {offsets = [0, 96], sizes = [16, 32], strides = [1, 1]} : vector<16x128xf32> to vector<16x32xf32>
    %c0_6 = arith.constant 0 : index
    %c0_7 = arith.constant 0 : index
    %c0_8 = arith.constant 0 : index
    %12 = vector.load %arg3[%c0_6, %c0_7, %c0_8] : memref<4x32x32xf32, #tpu.memory_space<vmem>>, vector<1x32x32xf32>
    %13 = vector.shape_cast %12 : vector<1x32x32xf32> to vector<32x32xf32>
    %c1 = arith.constant 1 : index
    %c0_9 = arith.constant 0 : index
    %c0_10 = arith.constant 0 : index
    %14 = vector.load %arg3[%c1, %c0_9, %c0_10] : memref<4x32x32xf32, #tpu.memory_space<vmem>>, vector<1x32x32xf32>
    %15 = vector.shape_cast %14 : vector<1x32x32xf32> to vector<32x32xf32>
    %c2 = arith.constant 2 : index
    %c0_11 = arith.constant 0 : index
    %c0_12 = arith.constant 0 : index
    %16 = vector.load %arg3[%c2, %c0_11, %c0_12] : memref<4x32x32xf32, #tpu.memory_space<vmem>>, vector<1x32x32xf32>
    %17 = vector.shape_cast %16 : vector<1x32x32xf32> to vector<32x32xf32>
    %c3 = arith.constant 3 : index
    %c0_13 = arith.constant 0 : index
    %c0_14 = arith.constant 0 : index
    %18 = vector.load %arg3[%c3, %c0_13, %c0_14] : memref<4x32x32xf32, #tpu.memory_space<vmem>>, vector<1x32x32xf32>
    %19 = vector.shape_cast %18 : vector<1x32x32xf32> to vector<32x32xf32>
    %c0_15 = arith.constant 0 : index
    %c0_16 = arith.constant 0 : index
    %c0_17 = arith.constant 0 : index
    %20 = vector.load %arg4[%c0_15, %c0_16, %c0_17] : memref<4x32x32xf32, #tpu.memory_space<vmem>>, vector<1x32x32xf32>
    %21 = vector.shape_cast %20 : vector<1x32x32xf32> to vector<32x32xf32>
    %c1_18 = arith.constant 1 : index
    %c0_19 = arith.constant 0 : index
    %c0_20 = arith.constant 0 : index
    %22 = vector.load %arg4[%c1_18, %c0_19, %c0_20] : memref<4x32x32xf32, #tpu.memory_space<vmem>>, vector<1x32x32xf32>
    %23 = vector.shape_cast %22 : vector<1x32x32xf32> to vector<32x32xf32>
    %c2_21 = arith.constant 2 : index
    %c0_22 = arith.constant 0 : index
    %c0_23 = arith.constant 0 : index
    %24 = vector.load %arg4[%c2_21, %c0_22, %c0_23] : memref<4x32x32xf32, #tpu.memory_space<vmem>>, vector<1x32x32xf32>
    %25 = vector.shape_cast %24 : vector<1x32x32xf32> to vector<32x32xf32>
    %c3_24 = arith.constant 3 : index
    %c0_25 = arith.constant 0 : index
    %c0_26 = arith.constant 0 : index
    %26 = vector.load %arg4[%c3_24, %c0_25, %c0_26] : memref<4x32x32xf32, #tpu.memory_space<vmem>>, vector<1x32x32xf32>
    %27 = vector.shape_cast %26 : vector<1x32x32xf32> to vector<32x32xf32>
    %c0_27 = arith.constant 0 : index
    %c0_28 = arith.constant 0 : index
    %c0_29 = arith.constant 0 : index
    %28 = vector.load %arg6[%c0_27, %c0_28, %c0_29] : memref<4x32x32xf32, #tpu.memory_space<vmem>>, vector<1x32x32xf32>
    %29 = vector.shape_cast %28 : vector<1x32x32xf32> to vector<32x32xf32>
    %c1_30 = arith.constant 1 : index
    %c0_31 = arith.constant 0 : index
    %c0_32 = arith.constant 0 : index
    %30 = vector.load %arg6[%c1_30, %c0_31, %c0_32] : memref<4x32x32xf32, #tpu.memory_space<vmem>>, vector<1x32x32xf32>
    %31 = vector.shape_cast %30 : vector<1x32x32xf32> to vector<32x32xf32>
    %c2_33 = arith.constant 2 : index
    %c0_34 = arith.constant 0 : index
    %c0_35 = arith.constant 0 : index
    %32 = vector.load %arg6[%c2_33, %c0_34, %c0_35] : memref<4x32x32xf32, #tpu.memory_space<vmem>>, vector<1x32x32xf32>
    %33 = vector.shape_cast %32 : vector<1x32x32xf32> to vector<32x32xf32>
    %c3_36 = arith.constant 3 : index
    %c0_37 = arith.constant 0 : index
    %c0_38 = arith.constant 0 : index
    %34 = vector.load %arg6[%c3_36, %c0_37, %c0_38] : memref<4x32x32xf32, #tpu.memory_space<vmem>>, vector<1x32x32xf32>
    %35 = vector.shape_cast %34 : vector<1x32x32xf32> to vector<32x32xf32>
    %c0_39 = arith.constant 0 : index
    %c0_40 = arith.constant 0 : index
    %36 = vector.load %arg5[%c0_39, %c0_40] : memref<1x128xf32, #tpu.memory_space<vmem>>, vector<1x128xf32>
    %c0_41 = arith.constant 0 : index
    %c0_42 = arith.constant 0 : index
    %37 = vector.load %arg7[%c0_41, %c0_42] : memref<1x128xf32, #tpu.memory_space<vmem>>, vector<1x128xf32>
    %38 = vector.extract_strided_slice %36 {offsets = [0, 0], sizes = [1, 32], strides = [1, 1]} : vector<1x128xf32> to vector<1x32xf32>
    %39 = vector.shape_cast %38 : vector<1x32xf32> to vector<1x32xf32>
    %40 = vector.broadcast %39 : vector<1x32xf32> to vector<2x32xf32>
    %41 = vector.extract_strided_slice %36 {offsets = [0, 32], sizes = [1, 32], strides = [1, 1]} : vector<1x128xf32> to vector<1x32xf32>
    %42 = vector.shape_cast %41 : vector<1x32xf32> to vector<1x32xf32>
    %43 = vector.broadcast %42 : vector<1x32xf32> to vector<2x32xf32>
    %44 = vector.extract_strided_slice %36 {offsets = [0, 64], sizes = [1, 32], strides = [1, 1]} : vector<1x128xf32> to vector<1x32xf32>
    %45 = vector.shape_cast %44 : vector<1x32xf32> to vector<1x32xf32>
    %46 = vector.broadcast %45 : vector<1x32xf32> to vector<2x32xf32>
    %47 = vector.extract_strided_slice %36 {offsets = [0, 96], sizes = [1, 32], strides = [1, 1]} : vector<1x128xf32> to vector<1x32xf32>
    %48 = vector.shape_cast %47 : vector<1x32xf32> to vector<1x32xf32>
    %49 = vector.broadcast %48 : vector<1x32xf32> to vector<2x32xf32>
    %50 = vector.extract_strided_slice %37 {offsets = [0, 0], sizes = [1, 32], strides = [1, 1]} : vector<1x128xf32> to vector<1x32xf32>
    %51 = vector.shape_cast %50 : vector<1x32xf32> to vector<1x32xf32>
    %52 = vector.broadcast %51 : vector<1x32xf32> to vector<2x32xf32>
    %53 = vector.extract_strided_slice %37 {offsets = [0, 32], sizes = [1, 32], strides = [1, 1]} : vector<1x128xf32> to vector<1x32xf32>
    %54 = vector.shape_cast %53 : vector<1x32xf32> to vector<1x32xf32>
    %55 = vector.broadcast %54 : vector<1x32xf32> to vector<2x32xf32>
    %56 = vector.extract_strided_slice %37 {offsets = [0, 64], sizes = [1, 32], strides = [1, 1]} : vector<1x128xf32> to vector<1x32xf32>
    %57 = vector.shape_cast %56 : vector<1x32xf32> to vector<1x32xf32>
    %58 = vector.broadcast %57 : vector<1x32xf32> to vector<2x32xf32>
    %59 = vector.extract_strided_slice %37 {offsets = [0, 96], sizes = [1, 32], strides = [1, 1]} : vector<1x128xf32> to vector<1x32xf32>
    %60 = vector.shape_cast %59 : vector<1x32xf32> to vector<1x32xf32>
    %61 = vector.broadcast %60 : vector<1x32xf32> to vector<2x32xf32>
    %c0_43 = arith.constant 0 : index
    %c0_44 = arith.constant 0 : index
    %62 = vector.load %arg8[%c0_43, %c0_44] : memref<32x4xf32, #tpu.memory_space<vmem>>, vector<32x4xf32>
    %c0_45 = arith.constant 0 : index
    %c0_46 = arith.constant 0 : index
    %63 = vector.load %arg9[%c0_45, %c0_46] : memref<1x4xf32, #tpu.memory_space<vmem>>, vector<1x4xf32>
    %64 = vector.shape_cast %63 : vector<1x4xf32> to vector<1x4xf32>
    %65 = vector.broadcast %64 : vector<1x4xf32> to vector<2x4xf32>
    %cst_47 = arith.constant 0.000000e+00 : f32
    %66 = vector.broadcast %cst_47 : f32 to vector<2x32xf32>
    %cst_48 = arith.constant 0.000000e+00 : f32
    %67 = vector.broadcast %cst_48 : f32 to vector<2x32xf32>
    %68 = vector.extract_strided_slice %8 {offsets = [0, 0], sizes = [2, 32], strides = [1, 1]} : vector<16x32xf32> to vector<2x32xf32>
    %cst_49 = arith.constant dense<0.000000e+00> : vector<2x32xf32>
    %69 = tpu.matmul %66, %13, %cst_49 {dimension_numbers = #tpu.dot_dimension_numbers<[1], [0], [0], [1], [0, 0, 1, 1], [], []>} : vector<2x32xf32>, vector<32x32xf32>, vector<2x32xf32> -> vector<2x32xf32>
    %70 = arith.addf %68, %69 : vector<2x32xf32>
    %71 = vector.extract_strided_slice %9 {offsets = [0, 0], sizes = [2, 32], strides = [1, 1]} : vector<16x32xf32> to vector<2x32xf32>
    %cst_50 = arith.constant dense<0.000000e+00> : vector<2x32xf32>
    %72 = tpu.matmul %66, %15, %cst_50 {dimension_numbers = #tpu.dot_dimension_numbers<[1], [0], [0], [1], [0, 0, 1, 1], [], []>} : vector<2x32xf32>, vector<32x32xf32>, vector<2x32xf32> -> vector<2x32xf32>
    %73 = arith.addf %71, %72 : vector<2x32xf32>
    %74 = vector.extract_strided_slice %10 {offsets = [0, 0], sizes = [2, 32], strides = [1, 1]} : vector<16x32xf32> to vector<2x32xf32>
    %cst_51 = arith.constant dense<0.000000e+00> : vector<2x32xf32>
    %75 = tpu.matmul %66, %17, %cst_51 {dimension_numbers = #tpu.dot_dimension_numbers<[1], [0], [0], [1], [0, 0, 1, 1], [], []>} : vector<2x32xf32>, vector<32x32xf32>, vector<2x32xf32> -> vector<2x32xf32>
    %76 = arith.addf %74, %75 : vector<2x32xf32>
    %77 = vector.extract_strided_slice %11 {offsets = [0, 0], sizes = [2, 32], strides = [1, 1]} : vector<16x32xf32> to vector<2x32xf32>
    %cst_52 = arith.constant dense<0.000000e+00> : vector<2x32xf32>
    %78 = tpu.matmul %66, %19, %cst_52 {dimension_numbers = #tpu.dot_dimension_numbers<[1], [0], [0], [1], [0, 0, 1, 1], [], []>} : vector<2x32xf32>, vector<32x32xf32>, vector<2x32xf32> -> vector<2x32xf32>
    %79 = arith.addf %77, %78 : vector<2x32xf32>
    %80 = arith.negf %73 : vector<2x32xf32>
    %81 = math.exp %80 : vector<2x32xf32>
    %cst_53 = arith.constant 1.000000e+00 : f32
    %82 = vector.broadcast %cst_53 : f32 to vector<2x32xf32>
    %83 = arith.addf %82, %81 : vector<2x32xf32>
    %84 = arith.divf %82, %83 : vector<2x32xf32>
    %85 = arith.mulf %84, %67 : vector<2x32xf32>
    %86 = arith.negf %70 : vector<2x32xf32>
    %87 = math.exp %86 : vector<2x32xf32>
    %cst_54 = arith.constant 1.000000e+00 : f32
    %88 = vector.broadcast %cst_54 : f32 to vector<2x32xf32>
    %89 = arith.addf %88, %87 : vector<2x32xf32>
    %90 = arith.divf %88, %89 : vector<2x32xf32>
    %91 = math.tanh %76 : vector<2x32xf32>
    %92 = arith.mulf %90, %91 : vector<2x32xf32>
    %93 = arith.addf %85, %92 : vector<2x32xf32>
    %94 = arith.negf %79 : vector<2x32xf32>
    %95 = math.exp %94 : vector<2x32xf32>
    %cst_55 = arith.constant 1.000000e+00 : f32
    %96 = vector.broadcast %cst_55 : f32 to vector<2x32xf32>
    %97 = arith.addf %96, %95 : vector<2x32xf32>
    %98 = arith.divf %96, %97 : vector<2x32xf32>
    %99 = math.tanh %93 : vector<2x32xf32>
    %100 = arith.mulf %98, %99 : vector<2x32xf32>
    %101 = vector.extract_strided_slice %8 {offsets = [2, 0], sizes = [2, 32], strides = [1, 1]} : vector<16x32xf32> to vector<2x32xf32>
    %cst_56 = arith.constant dense<0.000000e+00> : vector<2x32xf32>
    %102 = tpu.matmul %100, %13, %cst_56 {dimension_numbers = #tpu.dot_dimension_numbers<[1], [0], [0], [1], [0, 0, 1, 1], [], []>} : vector<2x32xf32>, vector<32x32xf32>, vector<2x32xf32> -> vector<2x32xf32>
    %103 = arith.addf %101, %102 : vector<2x32xf32>
    %104 = vector.extract_strided_slice %9 {offsets = [2, 0], sizes = [2, 32], strides = [1, 1]} : vector<16x32xf32> to vector<2x32xf32>
    %cst_57 = arith.constant dense<0.000000e+00> : vector<2x32xf32>
    %105 = tpu.matmul %100, %15, %cst_57 {dimension_numbers = #tpu.dot_dimension_numbers<[1], [0], [0], [1], [0, 0, 1, 1], [], []>} : vector<2x32xf32>, vector<32x32xf32>, vector<2x32xf32> -> vector<2x32xf32>
    %106 = arith.addf %104, %105 : vector<2x32xf32>
    %107 = vector.extract_strided_slice %10 {offsets = [2, 0], sizes = [2, 32], strides = [1, 1]} : vector<16x32xf32> to vector<2x32xf32>
    %cst_58 = arith.constant dense<0.000000e+00> : vector<2x32xf32>
    %108 = tpu.matmul %100, %17, %cst_58 {dimension_numbers = #tpu.dot_dimension_numbers<[1], [0], [0], [1], [0, 0, 1, 1], [], []>} : vector<2x32xf32>, vector<32x32xf32>, vector<2x32xf32> -> vector<2x32xf32>
    %109 = arith.addf %107, %108 : vector<2x32xf32>
    %110 = vector.extract_strided_slice %11 {offsets = [2, 0], sizes = [2, 32], strides = [1, 1]} : vector<16x32xf32> to vector<2x32xf32>
    %cst_59 = arith.constant dense<0.000000e+00> : vector<2x32xf32>
    %111 = tpu.matmul %100, %19, %cst_59 {dimension_numbers = #tpu.dot_dimension_numbers<[1], [0], [0], [1], [0, 0, 1, 1], [], []>} : vector<2x32xf32>, vector<32x32xf32>, vector<2x32xf32> -> vector<2x32xf32>
    %112 = arith.addf %110, %111 : vector<2x32xf32>
    %113 = arith.negf %106 : vector<2x32xf32>
    %114 = math.exp %113 : vector<2x32xf32>
    %cst_60 = arith.constant 1.000000e+00 : f32
    %115 = vector.broadcast %cst_60 : f32 to vector<2x32xf32>
    %116 = arith.addf %115, %114 : vector<2x32xf32>
    %117 = arith.divf %115, %116 : vector<2x32xf32>
    %118 = arith.mulf %117, %93 : vector<2x32xf32>
    %119 = arith.negf %103 : vector<2x32xf32>
    %120 = math.exp %119 : vector<2x32xf32>
    %cst_61 = arith.constant 1.000000e+00 : f32
    %121 = vector.broadcast %cst_61 : f32 to vector<2x32xf32>
    %122 = arith.addf %121, %120 : vector<2x32xf32>
    %123 = arith.divf %121, %122 : vector<2x32xf32>
    %124 = math.tanh %109 : vector<2x32xf32>
    %125 = arith.mulf %123, %124 : vector<2x32xf32>
    %126 = arith.addf %118, %125 : vector<2x32xf32>
    %127 = arith.negf %112 : vector<2x32xf32>
    %128 = math.exp %127 : vector<2x32xf32>
    %cst_62 = arith.constant 1.000000e+00 : f32
    %129 = vector.broadcast %cst_62 : f32 to vector<2x32xf32>
    %130 = arith.addf %129, %128 : vector<2x32xf32>
    %131 = arith.divf %129, %130 : vector<2x32xf32>
    %132 = math.tanh %126 : vector<2x32xf32>
    %133 = arith.mulf %131, %132 : vector<2x32xf32>
    %134 = vector.extract_strided_slice %8 {offsets = [4, 0], sizes = [2, 32], strides = [1, 1]} : vector<16x32xf32> to vector<2x32xf32>
    %cst_63 = arith.constant dense<0.000000e+00> : vector<2x32xf32>
    %135 = tpu.matmul %133, %13, %cst_63 {dimension_numbers = #tpu.dot_dimension_numbers<[1], [0], [0], [1], [0, 0, 1, 1], [], []>} : vector<2x32xf32>, vector<32x32xf32>, vector<2x32xf32> -> vector<2x32xf32>
    %136 = arith.addf %134, %135 : vector<2x32xf32>
    %137 = vector.extract_strided_slice %9 {offsets = [4, 0], sizes = [2, 32], strides = [1, 1]} : vector<16x32xf32> to vector<2x32xf32>
    %cst_64 = arith.constant dense<0.000000e+00> : vector<2x32xf32>
    %138 = tpu.matmul %133, %15, %cst_64 {dimension_numbers = #tpu.dot_dimension_numbers<[1], [0], [0], [1], [0, 0, 1, 1], [], []>} : vector<2x32xf32>, vector<32x32xf32>, vector<2x32xf32> -> vector<2x32xf32>
    %139 = arith.addf %137, %138 : vector<2x32xf32>
    %140 = vector.extract_strided_slice %10 {offsets = [4, 0], sizes = [2, 32], strides = [1, 1]} : vector<16x32xf32> to vector<2x32xf32>
    %cst_65 = arith.constant dense<0.000000e+00> : vector<2x32xf32>
    %141 = tpu.matmul %133, %17, %cst_65 {dimension_numbers = #tpu.dot_dimension_numbers<[1], [0], [0], [1], [0, 0, 1, 1], [], []>} : vector<2x32xf32>, vector<32x32xf32>, vector<2x32xf32> -> vector<2x32xf32>
    %142 = arith.addf %140, %141 : vector<2x32xf32>
    %143 = vector.extract_strided_slice %11 {offsets = [4, 0], sizes = [2, 32], strides = [1, 1]} : vector<16x32xf32> to vector<2x32xf32>
    %cst_66 = arith.constant dense<0.000000e+00> : vector<2x32xf32>
    %144 = tpu.matmul %133, %19, %cst_66 {dimension_numbers = #tpu.dot_dimension_numbers<[1], [0], [0], [1], [0, 0, 1, 1], [], []>} : vector<2x32xf32>, vector<32x32xf32>, vector<2x32xf32> -> vector<2x32xf32>
    %145 = arith.addf %143, %144 : vector<2x32xf32>
    %146 = arith.negf %139 : vector<2x32xf32>
    %147 = math.exp %146 : vector<2x32xf32>
    %cst_67 = arith.constant 1.000000e+00 : f32
    %148 = vector.broadcast %cst_67 : f32 to vector<2x32xf32>
    %149 = arith.addf %148, %147 : vector<2x32xf32>
    %150 = arith.divf %148, %149 : vector<2x32xf32>
    %151 = arith.mulf %150, %126 : vector<2x32xf32>
    %152 = arith.negf %136 : vector<2x32xf32>
    %153 = math.exp %152 : vector<2x32xf32>
    %cst_68 = arith.constant 1.000000e+00 : f32
    %154 = vector.broadcast %cst_68 : f32 to vector<2x32xf32>
    %155 = arith.addf %154, %153 : vector<2x32xf32>
    %156 = arith.divf %154, %155 : vector<2x32xf32>
    %157 = math.tanh %142 : vector<2x32xf32>
    %158 = arith.mulf %156, %157 : vector<2x32xf32>
    %159 = arith.addf %151, %158 : vector<2x32xf32>
    %160 = arith.negf %145 : vector<2x32xf32>
    %161 = math.exp %160 : vector<2x32xf32>
    %cst_69 = arith.constant 1.000000e+00 : f32
    %162 = vector.broadcast %cst_69 : f32 to vector<2x32xf32>
    %163 = arith.addf %162, %161 : vector<2x32xf32>
    %164 = arith.divf %162, %163 : vector<2x32xf32>
    %165 = math.tanh %159 : vector<2x32xf32>
    %166 = arith.mulf %164, %165 : vector<2x32xf32>
    %167 = vector.extract_strided_slice %8 {offsets = [6, 0], sizes = [2, 32], strides = [1, 1]} : vector<16x32xf32> to vector<2x32xf32>
    %cst_70 = arith.constant dense<0.000000e+00> : vector<2x32xf32>
    %168 = tpu.matmul %166, %13, %cst_70 {dimension_numbers = #tpu.dot_dimension_numbers<[1], [0], [0], [1], [0, 0, 1, 1], [], []>} : vector<2x32xf32>, vector<32x32xf32>, vector<2x32xf32> -> vector<2x32xf32>
    %169 = arith.addf %167, %168 : vector<2x32xf32>
    %170 = vector.extract_strided_slice %9 {offsets = [6, 0], sizes = [2, 32], strides = [1, 1]} : vector<16x32xf32> to vector<2x32xf32>
    %cst_71 = arith.constant dense<0.000000e+00> : vector<2x32xf32>
    %171 = tpu.matmul %166, %15, %cst_71 {dimension_numbers = #tpu.dot_dimension_numbers<[1], [0], [0], [1], [0, 0, 1, 1], [], []>} : vector<2x32xf32>, vector<32x32xf32>, vector<2x32xf32> -> vector<2x32xf32>
    %172 = arith.addf %170, %171 : vector<2x32xf32>
    %173 = vector.extract_strided_slice %10 {offsets = [6, 0], sizes = [2, 32], strides = [1, 1]} : vector<16x32xf32> to vector<2x32xf32>
    %cst_72 = arith.constant dense<0.000000e+00> : vector<2x32xf32>
    %174 = tpu.matmul %166, %17, %cst_72 {dimension_numbers = #tpu.dot_dimension_numbers<[1], [0], [0], [1], [0, 0, 1, 1], [], []>} : vector<2x32xf32>, vector<32x32xf32>, vector<2x32xf32> -> vector<2x32xf32>
    %175 = arith.addf %173, %174 : vector<2x32xf32>
    %176 = vector.extract_strided_slice %11 {offsets = [6, 0], sizes = [2, 32], strides = [1, 1]} : vector<16x32xf32> to vector<2x32xf32>
    %cst_73 = arith.constant dense<0.000000e+00> : vector<2x32xf32>
    %177 = tpu.matmul %166, %19, %cst_73 {dimension_numbers = #tpu.dot_dimension_numbers<[1], [0], [0], [1], [0, 0, 1, 1], [], []>} : vector<2x32xf32>, vector<32x32xf32>, vector<2x32xf32> -> vector<2x32xf32>
    %178 = arith.addf %176, %177 : vector<2x32xf32>
    %179 = arith.negf %172 : vector<2x32xf32>
    %180 = math.exp %179 : vector<2x32xf32>
    %cst_74 = arith.constant 1.000000e+00 : f32
    %181 = vector.broadcast %cst_74 : f32 to vector<2x32xf32>
    %182 = arith.addf %181, %180 : vector<2x32xf32>
    %183 = arith.divf %181, %182 : vector<2x32xf32>
    %184 = arith.mulf %183, %159 : vector<2x32xf32>
    %185 = arith.negf %169 : vector<2x32xf32>
    %186 = math.exp %185 : vector<2x32xf32>
    %cst_75 = arith.constant 1.000000e+00 : f32
    %187 = vector.broadcast %cst_75 : f32 to vector<2x32xf32>
    %188 = arith.addf %187, %186 : vector<2x32xf32>
    %189 = arith.divf %187, %188 : vector<2x32xf32>
    %190 = math.tanh %175 : vector<2x32xf32>
    %191 = arith.mulf %189, %190 : vector<2x32xf32>
    %192 = arith.addf %184, %191 : vector<2x32xf32>
    %193 = arith.negf %178 : vector<2x32xf32>
    %194 = math.exp %193 : vector<2x32xf32>
    %cst_76 = arith.constant 1.000000e+00 : f32
    %195 = vector.broadcast %cst_76 : f32 to vector<2x32xf32>
    %196 = arith.addf %195, %194 : vector<2x32xf32>
    %197 = arith.divf %195, %196 : vector<2x32xf32>
    %198 = math.tanh %192 : vector<2x32xf32>
    %199 = arith.mulf %197, %198 : vector<2x32xf32>
    %200 = vector.extract_strided_slice %8 {offsets = [8, 0], sizes = [2, 32], strides = [1, 1]} : vector<16x32xf32> to vector<2x32xf32>
    %cst_77 = arith.constant dense<0.000000e+00> : vector<2x32xf32>
    %201 = tpu.matmul %199, %13, %cst_77 {dimension_numbers = #tpu.dot_dimension_numbers<[1], [0], [0], [1], [0, 0, 1, 1], [], []>} : vector<2x32xf32>, vector<32x32xf32>, vector<2x32xf32> -> vector<2x32xf32>
    %202 = arith.addf %200, %201 : vector<2x32xf32>
    %203 = vector.extract_strided_slice %9 {offsets = [8, 0], sizes = [2, 32], strides = [1, 1]} : vector<16x32xf32> to vector<2x32xf32>
    %cst_78 = arith.constant dense<0.000000e+00> : vector<2x32xf32>
    %204 = tpu.matmul %199, %15, %cst_78 {dimension_numbers = #tpu.dot_dimension_numbers<[1], [0], [0], [1], [0, 0, 1, 1], [], []>} : vector<2x32xf32>, vector<32x32xf32>, vector<2x32xf32> -> vector<2x32xf32>
    %205 = arith.addf %203, %204 : vector<2x32xf32>
    %206 = vector.extract_strided_slice %10 {offsets = [8, 0], sizes = [2, 32], strides = [1, 1]} : vector<16x32xf32> to vector<2x32xf32>
    %cst_79 = arith.constant dense<0.000000e+00> : vector<2x32xf32>
    %207 = tpu.matmul %199, %17, %cst_79 {dimension_numbers = #tpu.dot_dimension_numbers<[1], [0], [0], [1], [0, 0, 1, 1], [], []>} : vector<2x32xf32>, vector<32x32xf32>, vector<2x32xf32> -> vector<2x32xf32>
    %208 = arith.addf %206, %207 : vector<2x32xf32>
    %209 = vector.extract_strided_slice %11 {offsets = [8, 0], sizes = [2, 32], strides = [1, 1]} : vector<16x32xf32> to vector<2x32xf32>
    %cst_80 = arith.constant dense<0.000000e+00> : vector<2x32xf32>
    %210 = tpu.matmul %199, %19, %cst_80 {dimension_numbers = #tpu.dot_dimension_numbers<[1], [0], [0], [1], [0, 0, 1, 1], [], []>} : vector<2x32xf32>, vector<32x32xf32>, vector<2x32xf32> -> vector<2x32xf32>
    %211 = arith.addf %209, %210 : vector<2x32xf32>
    %212 = arith.negf %205 : vector<2x32xf32>
    %213 = math.exp %212 : vector<2x32xf32>
    %cst_81 = arith.constant 1.000000e+00 : f32
    %214 = vector.broadcast %cst_81 : f32 to vector<2x32xf32>
    %215 = arith.addf %214, %213 : vector<2x32xf32>
    %216 = arith.divf %214, %215 : vector<2x32xf32>
    %217 = arith.mulf %216, %192 : vector<2x32xf32>
    %218 = arith.negf %202 : vector<2x32xf32>
    %219 = math.exp %218 : vector<2x32xf32>
    %cst_82 = arith.constant 1.000000e+00 : f32
    %220 = vector.broadcast %cst_82 : f32 to vector<2x32xf32>
    %221 = arith.addf %220, %219 : vector<2x32xf32>
    %222 = arith.divf %220, %221 : vector<2x32xf32>
    %223 = math.tanh %208 : vector<2x32xf32>
    %224 = arith.mulf %222, %223 : vector<2x32xf32>
    %225 = arith.addf %217, %224 : vector<2x32xf32>
    %226 = arith.negf %211 : vector<2x32xf32>
    %227 = math.exp %226 : vector<2x32xf32>
    %cst_83 = arith.constant 1.000000e+00 : f32
    %228 = vector.broadcast %cst_83 : f32 to vector<2x32xf32>
    %229 = arith.addf %228, %227 : vector<2x32xf32>
    %230 = arith.divf %228, %229 : vector<2x32xf32>
    %231 = math.tanh %225 : vector<2x32xf32>
    %232 = arith.mulf %230, %231 : vector<2x32xf32>
    %233 = vector.extract_strided_slice %8 {offsets = [10, 0], sizes = [2, 32], strides = [1, 1]} : vector<16x32xf32> to vector<2x32xf32>
    %cst_84 = arith.constant dense<0.000000e+00> : vector<2x32xf32>
    %234 = tpu.matmul %232, %13, %cst_84 {dimension_numbers = #tpu.dot_dimension_numbers<[1], [0], [0], [1], [0, 0, 1, 1], [], []>} : vector<2x32xf32>, vector<32x32xf32>, vector<2x32xf32> -> vector<2x32xf32>
    %235 = arith.addf %233, %234 : vector<2x32xf32>
    %236 = vector.extract_strided_slice %9 {offsets = [10, 0], sizes = [2, 32], strides = [1, 1]} : vector<16x32xf32> to vector<2x32xf32>
    %cst_85 = arith.constant dense<0.000000e+00> : vector<2x32xf32>
    %237 = tpu.matmul %232, %15, %cst_85 {dimension_numbers = #tpu.dot_dimension_numbers<[1], [0], [0], [1], [0, 0, 1, 1], [], []>} : vector<2x32xf32>, vector<32x32xf32>, vector<2x32xf32> -> vector<2x32xf32>
    %238 = arith.addf %236, %237 : vector<2x32xf32>
    %239 = vector.extract_strided_slice %10 {offsets = [10, 0], sizes = [2, 32], strides = [1, 1]} : vector<16x32xf32> to vector<2x32xf32>
    %cst_86 = arith.constant dense<0.000000e+00> : vector<2x32xf32>
    %240 = tpu.matmul %232, %17, %cst_86 {dimension_numbers = #tpu.dot_dimension_numbers<[1], [0], [0], [1], [0, 0, 1, 1], [], []>} : vector<2x32xf32>, vector<32x32xf32>, vector<2x32xf32> -> vector<2x32xf32>
    %241 = arith.addf %239, %240 : vector<2x32xf32>
    %242 = vector.extract_strided_slice %11 {offsets = [10, 0], sizes = [2, 32], strides = [1, 1]} : vector<16x32xf32> to vector<2x32xf32>
    %cst_87 = arith.constant dense<0.000000e+00> : vector<2x32xf32>
    %243 = tpu.matmul %232, %19, %cst_87 {dimension_numbers = #tpu.dot_dimension_numbers<[1], [0], [0], [1], [0, 0, 1, 1], [], []>} : vector<2x32xf32>, vector<32x32xf32>, vector<2x32xf32> -> vector<2x32xf32>
    %244 = arith.addf %242, %243 : vector<2x32xf32>
    %245 = arith.negf %238 : vector<2x32xf32>
    %246 = math.exp %245 : vector<2x32xf32>
    %cst_88 = arith.constant 1.000000e+00 : f32
    %247 = vector.broadcast %cst_88 : f32 to vector<2x32xf32>
    %248 = arith.addf %247, %246 : vector<2x32xf32>
    %249 = arith.divf %247, %248 : vector<2x32xf32>
    %250 = arith.mulf %249, %225 : vector<2x32xf32>
    %251 = arith.negf %235 : vector<2x32xf32>
    %252 = math.exp %251 : vector<2x32xf32>
    %cst_89 = arith.constant 1.000000e+00 : f32
    %253 = vector.broadcast %cst_89 : f32 to vector<2x32xf32>
    %254 = arith.addf %253, %252 : vector<2x32xf32>
    %255 = arith.divf %253, %254 : vector<2x32xf32>
    %256 = math.tanh %241 : vector<2x32xf32>
    %257 = arith.mulf %255, %256 : vector<2x32xf32>
    %258 = arith.addf %250, %257 : vector<2x32xf32>
    %259 = arith.negf %244 : vector<2x32xf32>
    %260 = math.exp %259 : vector<2x32xf32>
    %cst_90 = arith.constant 1.000000e+00 : f32
    %261 = vector.broadcast %cst_90 : f32 to vector<2x32xf32>
    %262 = arith.addf %261, %260 : vector<2x32xf32>
    %263 = arith.divf %261, %262 : vector<2x32xf32>
    %264 = math.tanh %258 : vector<2x32xf32>
    %265 = arith.mulf %263, %264 : vector<2x32xf32>
    %266 = vector.extract_strided_slice %8 {offsets = [12, 0], sizes = [2, 32], strides = [1, 1]} : vector<16x32xf32> to vector<2x32xf32>
    %cst_91 = arith.constant dense<0.000000e+00> : vector<2x32xf32>
    %267 = tpu.matmul %265, %13, %cst_91 {dimension_numbers = #tpu.dot_dimension_numbers<[1], [0], [0], [1], [0, 0, 1, 1], [], []>} : vector<2x32xf32>, vector<32x32xf32>, vector<2x32xf32> -> vector<2x32xf32>
    %268 = arith.addf %266, %267 : vector<2x32xf32>
    %269 = vector.extract_strided_slice %9 {offsets = [12, 0], sizes = [2, 32], strides = [1, 1]} : vector<16x32xf32> to vector<2x32xf32>
    %cst_92 = arith.constant dense<0.000000e+00> : vector<2x32xf32>
    %270 = tpu.matmul %265, %15, %cst_92 {dimension_numbers = #tpu.dot_dimension_numbers<[1], [0], [0], [1], [0, 0, 1, 1], [], []>} : vector<2x32xf32>, vector<32x32xf32>, vector<2x32xf32> -> vector<2x32xf32>
    %271 = arith.addf %269, %270 : vector<2x32xf32>
    %272 = vector.extract_strided_slice %10 {offsets = [12, 0], sizes = [2, 32], strides = [1, 1]} : vector<16x32xf32> to vector<2x32xf32>
    %cst_93 = arith.constant dense<0.000000e+00> : vector<2x32xf32>
    %273 = tpu.matmul %265, %17, %cst_93 {dimension_numbers = #tpu.dot_dimension_numbers<[1], [0], [0], [1], [0, 0, 1, 1], [], []>} : vector<2x32xf32>, vector<32x32xf32>, vector<2x32xf32> -> vector<2x32xf32>
    %274 = arith.addf %272, %273 : vector<2x32xf32>
    %275 = vector.extract_strided_slice %11 {offsets = [12, 0], sizes = [2, 32], strides = [1, 1]} : vector<16x32xf32> to vector<2x32xf32>
    %cst_94 = arith.constant dense<0.000000e+00> : vector<2x32xf32>
    %276 = tpu.matmul %265, %19, %cst_94 {dimension_numbers = #tpu.dot_dimension_numbers<[1], [0], [0], [1], [0, 0, 1, 1], [], []>} : vector<2x32xf32>, vector<32x32xf32>, vector<2x32xf32> -> vector<2x32xf32>
    %277 = arith.addf %275, %276 : vector<2x32xf32>
    %278 = arith.negf %271 : vector<2x32xf32>
    %279 = math.exp %278 : vector<2x32xf32>
    %cst_95 = arith.constant 1.000000e+00 : f32
    %280 = vector.broadcast %cst_95 : f32 to vector<2x32xf32>
    %281 = arith.addf %280, %279 : vector<2x32xf32>
    %282 = arith.divf %280, %281 : vector<2x32xf32>
    %283 = arith.mulf %282, %258 : vector<2x32xf32>
    %284 = arith.negf %268 : vector<2x32xf32>
    %285 = math.exp %284 : vector<2x32xf32>
    %cst_96 = arith.constant 1.000000e+00 : f32
    %286 = vector.broadcast %cst_96 : f32 to vector<2x32xf32>
    %287 = arith.addf %286, %285 : vector<2x32xf32>
    %288 = arith.divf %286, %287 : vector<2x32xf32>
    %289 = math.tanh %274 : vector<2x32xf32>
    %290 = arith.mulf %288, %289 : vector<2x32xf32>
    %291 = arith.addf %283, %290 : vector<2x32xf32>
    %292 = arith.negf %277 : vector<2x32xf32>
    %293 = math.exp %292 : vector<2x32xf32>
    %cst_97 = arith.constant 1.000000e+00 : f32
    %294 = vector.broadcast %cst_97 : f32 to vector<2x32xf32>
    %295 = arith.addf %294, %293 : vector<2x32xf32>
    %296 = arith.divf %294, %295 : vector<2x32xf32>
    %297 = math.tanh %291 : vector<2x32xf32>
    %298 = arith.mulf %296, %297 : vector<2x32xf32>
    %299 = vector.extract_strided_slice %8 {offsets = [14, 0], sizes = [2, 32], strides = [1, 1]} : vector<16x32xf32> to vector<2x32xf32>
    %cst_98 = arith.constant dense<0.000000e+00> : vector<2x32xf32>
    %300 = tpu.matmul %298, %13, %cst_98 {dimension_numbers = #tpu.dot_dimension_numbers<[1], [0], [0], [1], [0, 0, 1, 1], [], []>} : vector<2x32xf32>, vector<32x32xf32>, vector<2x32xf32> -> vector<2x32xf32>
    %301 = arith.addf %299, %300 : vector<2x32xf32>
    %302 = vector.extract_strided_slice %9 {offsets = [14, 0], sizes = [2, 32], strides = [1, 1]} : vector<16x32xf32> to vector<2x32xf32>
    %cst_99 = arith.constant dense<0.000000e+00> : vector<2x32xf32>
    %303 = tpu.matmul %298, %15, %cst_99 {dimension_numbers = #tpu.dot_dimension_numbers<[1], [0], [0], [1], [0, 0, 1, 1], [], []>} : vector<2x32xf32>, vector<32x32xf32>, vector<2x32xf32> -> vector<2x32xf32>
    %304 = arith.addf %302, %303 : vector<2x32xf32>
    %305 = vector.extract_strided_slice %10 {offsets = [14, 0], sizes = [2, 32], strides = [1, 1]} : vector<16x32xf32> to vector<2x32xf32>
    %cst_100 = arith.constant dense<0.000000e+00> : vector<2x32xf32>
    %306 = tpu.matmul %298, %17, %cst_100 {dimension_numbers = #tpu.dot_dimension_numbers<[1], [0], [0], [1], [0, 0, 1, 1], [], []>} : vector<2x32xf32>, vector<32x32xf32>, vector<2x32xf32> -> vector<2x32xf32>
    %307 = arith.addf %305, %306 : vector<2x32xf32>
    %308 = vector.extract_strided_slice %11 {offsets = [14, 0], sizes = [2, 32], strides = [1, 1]} : vector<16x32xf32> to vector<2x32xf32>
    %cst_101 = arith.constant dense<0.000000e+00> : vector<2x32xf32>
    %309 = tpu.matmul %298, %19, %cst_101 {dimension_numbers = #tpu.dot_dimension_numbers<[1], [0], [0], [1], [0, 0, 1, 1], [], []>} : vector<2x32xf32>, vector<32x32xf32>, vector<2x32xf32> -> vector<2x32xf32>
    %310 = arith.addf %308, %309 : vector<2x32xf32>
    %311 = arith.negf %304 : vector<2x32xf32>
    %312 = math.exp %311 : vector<2x32xf32>
    %cst_102 = arith.constant 1.000000e+00 : f32
    %313 = vector.broadcast %cst_102 : f32 to vector<2x32xf32>
    %314 = arith.addf %313, %312 : vector<2x32xf32>
    %315 = arith.divf %313, %314 : vector<2x32xf32>
    %316 = arith.mulf %315, %291 : vector<2x32xf32>
    %317 = arith.negf %301 : vector<2x32xf32>
    %318 = math.exp %317 : vector<2x32xf32>
    %cst_103 = arith.constant 1.000000e+00 : f32
    %319 = vector.broadcast %cst_103 : f32 to vector<2x32xf32>
    %320 = arith.addf %319, %318 : vector<2x32xf32>
    %321 = arith.divf %319, %320 : vector<2x32xf32>
    %322 = math.tanh %307 : vector<2x32xf32>
    %323 = arith.mulf %321, %322 : vector<2x32xf32>
    %324 = arith.addf %316, %323 : vector<2x32xf32>
    %325 = arith.negf %310 : vector<2x32xf32>
    %326 = math.exp %325 : vector<2x32xf32>
    %cst_104 = arith.constant 1.000000e+00 : f32
    %327 = vector.broadcast %cst_104 : f32 to vector<2x32xf32>
    %328 = arith.addf %327, %326 : vector<2x32xf32>
    %329 = arith.divf %327, %328 : vector<2x32xf32>
    %330 = math.tanh %324 : vector<2x32xf32>
    %331 = arith.mulf %329, %330 : vector<2x32xf32>
    %cst_105 = arith.constant dense<0.000000e+00> : vector<2x32xf32>
    %332 = tpu.matmul %331, %21, %cst_105 {dimension_numbers = #tpu.dot_dimension_numbers<[1], [0], [0], [1], [0, 0, 1, 1], [], []>} : vector<2x32xf32>, vector<32x32xf32>, vector<2x32xf32> -> vector<2x32xf32>
    %333 = arith.addf %40, %332 : vector<2x32xf32>
    %cst_106 = arith.constant dense<0.000000e+00> : vector<2x32xf32>
    %334 = tpu.matmul %331, %23, %cst_106 {dimension_numbers = #tpu.dot_dimension_numbers<[1], [0], [0], [1], [0, 0, 1, 1], [], []>} : vector<2x32xf32>, vector<32x32xf32>, vector<2x32xf32> -> vector<2x32xf32>
    %335 = arith.addf %43, %334 : vector<2x32xf32>
    %cst_107 = arith.constant dense<0.000000e+00> : vector<2x32xf32>
    %336 = tpu.matmul %331, %25, %cst_107 {dimension_numbers = #tpu.dot_dimension_numbers<[1], [0], [0], [1], [0, 0, 1, 1], [], []>} : vector<2x32xf32>, vector<32x32xf32>, vector<2x32xf32> -> vector<2x32xf32>
    %337 = arith.addf %46, %336 : vector<2x32xf32>
    %cst_108 = arith.constant dense<0.000000e+00> : vector<2x32xf32>
    %338 = tpu.matmul %331, %27, %cst_108 {dimension_numbers = #tpu.dot_dimension_numbers<[1], [0], [0], [1], [0, 0, 1, 1], [], []>} : vector<2x32xf32>, vector<32x32xf32>, vector<2x32xf32> -> vector<2x32xf32>
    %339 = arith.addf %49, %338 : vector<2x32xf32>
    %340 = arith.negf %335 : vector<2x32xf32>
    %341 = math.exp %340 : vector<2x32xf32>
    %cst_109 = arith.constant 1.000000e+00 : f32
    %342 = vector.broadcast %cst_109 : f32 to vector<2x32xf32>
    %343 = arith.addf %342, %341 : vector<2x32xf32>
    %344 = arith.divf %342, %343 : vector<2x32xf32>
    %345 = arith.mulf %344, %324 : vector<2x32xf32>
    %346 = arith.negf %333 : vector<2x32xf32>
    %347 = math.exp %346 : vector<2x32xf32>
    %cst_110 = arith.constant 1.000000e+00 : f32
    %348 = vector.broadcast %cst_110 : f32 to vector<2x32xf32>
    %349 = arith.addf %348, %347 : vector<2x32xf32>
    %350 = arith.divf %348, %349 : vector<2x32xf32>
    %351 = math.tanh %337 : vector<2x32xf32>
    %352 = arith.mulf %350, %351 : vector<2x32xf32>
    %353 = arith.addf %345, %352 : vector<2x32xf32>
    %354 = arith.negf %339 : vector<2x32xf32>
    %355 = math.exp %354 : vector<2x32xf32>
    %cst_111 = arith.constant 1.000000e+00 : f32
    %356 = vector.broadcast %cst_111 : f32 to vector<2x32xf32>
    %357 = arith.addf %356, %355 : vector<2x32xf32>
    %358 = arith.divf %356, %357 : vector<2x32xf32>
    %359 = math.tanh %353 : vector<2x32xf32>
    %360 = arith.mulf %358, %359 : vector<2x32xf32>
    %cst_112 = arith.constant dense<0.000000e+00> : vector<2x4xf32>
    %361 = tpu.matmul %360, %62, %cst_112 {dimension_numbers = #tpu.dot_dimension_numbers<[1], [0], [0], [1], [0, 0, 1, 1], [], []>} : vector<2x32xf32>, vector<32x4xf32>, vector<2x4xf32> -> vector<2x4xf32>
    %362 = arith.addf %361, %65 : vector<2x4xf32>
    %cst_113 = arith.constant dense<0.000000e+00> : vector<2x32xf32>
    %363 = tpu.matmul %360, %29, %cst_113 {dimension_numbers = #tpu.dot_dimension_numbers<[1], [0], [0], [1], [0, 0, 1, 1], [], []>} : vector<2x32xf32>, vector<32x32xf32>, vector<2x32xf32> -> vector<2x32xf32>
    %364 = arith.addf %52, %363 : vector<2x32xf32>
    %cst_114 = arith.constant dense<0.000000e+00> : vector<2x32xf32>
    %365 = tpu.matmul %360, %31, %cst_114 {dimension_numbers = #tpu.dot_dimension_numbers<[1], [0], [0], [1], [0, 0, 1, 1], [], []>} : vector<2x32xf32>, vector<32x32xf32>, vector<2x32xf32> -> vector<2x32xf32>
    %366 = arith.addf %55, %365 : vector<2x32xf32>
    %cst_115 = arith.constant dense<0.000000e+00> : vector<2x32xf32>
    %367 = tpu.matmul %360, %33, %cst_115 {dimension_numbers = #tpu.dot_dimension_numbers<[1], [0], [0], [1], [0, 0, 1, 1], [], []>} : vector<2x32xf32>, vector<32x32xf32>, vector<2x32xf32> -> vector<2x32xf32>
    %368 = arith.addf %58, %367 : vector<2x32xf32>
    %cst_116 = arith.constant dense<0.000000e+00> : vector<2x32xf32>
    %369 = tpu.matmul %360, %35, %cst_116 {dimension_numbers = #tpu.dot_dimension_numbers<[1], [0], [0], [1], [0, 0, 1, 1], [], []>} : vector<2x32xf32>, vector<32x32xf32>, vector<2x32xf32> -> vector<2x32xf32>
    %370 = arith.addf %61, %369 : vector<2x32xf32>
    %371 = arith.negf %366 : vector<2x32xf32>
    %372 = math.exp %371 : vector<2x32xf32>
    %cst_117 = arith.constant 1.000000e+00 : f32
    %373 = vector.broadcast %cst_117 : f32 to vector<2x32xf32>
    %374 = arith.addf %373, %372 : vector<2x32xf32>
    %375 = arith.divf %373, %374 : vector<2x32xf32>
    %376 = arith.mulf %375, %353 : vector<2x32xf32>
    %377 = arith.negf %364 : vector<2x32xf32>
    %378 = math.exp %377 : vector<2x32xf32>
    %cst_118 = arith.constant 1.000000e+00 : f32
    %379 = vector.broadcast %cst_118 : f32 to vector<2x32xf32>
    %380 = arith.addf %379, %378 : vector<2x32xf32>
    %381 = arith.divf %379, %380 : vector<2x32xf32>
    %382 = math.tanh %368 : vector<2x32xf32>
    %383 = arith.mulf %381, %382 : vector<2x32xf32>
    %384 = arith.addf %376, %383 : vector<2x32xf32>
    %385 = arith.negf %370 : vector<2x32xf32>
    %386 = math.exp %385 : vector<2x32xf32>
    %cst_119 = arith.constant 1.000000e+00 : f32
    %387 = vector.broadcast %cst_119 : f32 to vector<2x32xf32>
    %388 = arith.addf %387, %386 : vector<2x32xf32>
    %389 = arith.divf %387, %388 : vector<2x32xf32>
    %390 = math.tanh %384 : vector<2x32xf32>
    %391 = arith.mulf %389, %390 : vector<2x32xf32>
    %cst_120 = arith.constant dense<0.000000e+00> : vector<2x4xf32>
    %392 = tpu.matmul %391, %62, %cst_120 {dimension_numbers = #tpu.dot_dimension_numbers<[1], [0], [0], [1], [0, 0, 1, 1], [], []>} : vector<2x32xf32>, vector<32x4xf32>, vector<2x4xf32> -> vector<2x4xf32>
    %393 = arith.addf %392, %65 : vector<2x4xf32>
    %cst_121 = arith.constant dense<0.000000e+00> : vector<2x32xf32>
    %394 = tpu.matmul %391, %29, %cst_121 {dimension_numbers = #tpu.dot_dimension_numbers<[1], [0], [0], [1], [0, 0, 1, 1], [], []>} : vector<2x32xf32>, vector<32x32xf32>, vector<2x32xf32> -> vector<2x32xf32>
    %395 = arith.addf %52, %394 : vector<2x32xf32>
    %cst_122 = arith.constant dense<0.000000e+00> : vector<2x32xf32>
    %396 = tpu.matmul %391, %31, %cst_122 {dimension_numbers = #tpu.dot_dimension_numbers<[1], [0], [0], [1], [0, 0, 1, 1], [], []>} : vector<2x32xf32>, vector<32x32xf32>, vector<2x32xf32> -> vector<2x32xf32>
    %397 = arith.addf %55, %396 : vector<2x32xf32>
    %cst_123 = arith.constant dense<0.000000e+00> : vector<2x32xf32>
    %398 = tpu.matmul %391, %33, %cst_123 {dimension_numbers = #tpu.dot_dimension_numbers<[1], [0], [0], [1], [0, 0, 1, 1], [], []>} : vector<2x32xf32>, vector<32x32xf32>, vector<2x32xf32> -> vector<2x32xf32>
    %399 = arith.addf %58, %398 : vector<2x32xf32>
    %cst_124 = arith.constant dense<0.000000e+00> : vector<2x32xf32>
    %400 = tpu.matmul %391, %35, %cst_124 {dimension_numbers = #tpu.dot_dimension_numbers<[1], [0], [0], [1], [0, 0, 1, 1], [], []>} : vector<2x32xf32>, vector<32x32xf32>, vector<2x32xf32> -> vector<2x32xf32>
    %401 = arith.addf %61, %400 : vector<2x32xf32>
    %402 = arith.negf %397 : vector<2x32xf32>
    %403 = math.exp %402 : vector<2x32xf32>
    %cst_125 = arith.constant 1.000000e+00 : f32
    %404 = vector.broadcast %cst_125 : f32 to vector<2x32xf32>
    %405 = arith.addf %404, %403 : vector<2x32xf32>
    %406 = arith.divf %404, %405 : vector<2x32xf32>
    %407 = arith.mulf %406, %384 : vector<2x32xf32>
    %408 = arith.negf %395 : vector<2x32xf32>
    %409 = math.exp %408 : vector<2x32xf32>
    %cst_126 = arith.constant 1.000000e+00 : f32
    %410 = vector.broadcast %cst_126 : f32 to vector<2x32xf32>
    %411 = arith.addf %410, %409 : vector<2x32xf32>
    %412 = arith.divf %410, %411 : vector<2x32xf32>
    %413 = math.tanh %399 : vector<2x32xf32>
    %414 = arith.mulf %412, %413 : vector<2x32xf32>
    %415 = arith.addf %407, %414 : vector<2x32xf32>
    %416 = arith.negf %401 : vector<2x32xf32>
    %417 = math.exp %416 : vector<2x32xf32>
    %cst_127 = arith.constant 1.000000e+00 : f32
    %418 = vector.broadcast %cst_127 : f32 to vector<2x32xf32>
    %419 = arith.addf %418, %417 : vector<2x32xf32>
    %420 = arith.divf %418, %419 : vector<2x32xf32>
    %421 = math.tanh %415 : vector<2x32xf32>
    %422 = arith.mulf %420, %421 : vector<2x32xf32>
    %cst_128 = arith.constant dense<0.000000e+00> : vector<2x4xf32>
    %423 = tpu.matmul %422, %62, %cst_128 {dimension_numbers = #tpu.dot_dimension_numbers<[1], [0], [0], [1], [0, 0, 1, 1], [], []>} : vector<2x32xf32>, vector<32x4xf32>, vector<2x4xf32> -> vector<2x4xf32>
    %424 = arith.addf %423, %65 : vector<2x4xf32>
    %cst_129 = arith.constant dense<0.000000e+00> : vector<2x32xf32>
    %425 = tpu.matmul %422, %29, %cst_129 {dimension_numbers = #tpu.dot_dimension_numbers<[1], [0], [0], [1], [0, 0, 1, 1], [], []>} : vector<2x32xf32>, vector<32x32xf32>, vector<2x32xf32> -> vector<2x32xf32>
    %426 = arith.addf %52, %425 : vector<2x32xf32>
    %cst_130 = arith.constant dense<0.000000e+00> : vector<2x32xf32>
    %427 = tpu.matmul %422, %31, %cst_130 {dimension_numbers = #tpu.dot_dimension_numbers<[1], [0], [0], [1], [0, 0, 1, 1], [], []>} : vector<2x32xf32>, vector<32x32xf32>, vector<2x32xf32> -> vector<2x32xf32>
    %428 = arith.addf %55, %427 : vector<2x32xf32>
    %cst_131 = arith.constant dense<0.000000e+00> : vector<2x32xf32>
    %429 = tpu.matmul %422, %33, %cst_131 {dimension_numbers = #tpu.dot_dimension_numbers<[1], [0], [0], [1], [0, 0, 1, 1], [], []>} : vector<2x32xf32>, vector<32x32xf32>, vector<2x32xf32> -> vector<2x32xf32>
    %430 = arith.addf %58, %429 : vector<2x32xf32>
    %cst_132 = arith.constant dense<0.000000e+00> : vector<2x32xf32>
    %431 = tpu.matmul %422, %35, %cst_132 {dimension_numbers = #tpu.dot_dimension_numbers<[1], [0], [0], [1], [0, 0, 1, 1], [], []>} : vector<2x32xf32>, vector<32x32xf32>, vector<2x32xf32> -> vector<2x32xf32>
    %432 = arith.addf %61, %431 : vector<2x32xf32>
    %433 = arith.negf %428 : vector<2x32xf32>
    %434 = math.exp %433 : vector<2x32xf32>
    %cst_133 = arith.constant 1.000000e+00 : f32
    %435 = vector.broadcast %cst_133 : f32 to vector<2x32xf32>
    %436 = arith.addf %435, %434 : vector<2x32xf32>
    %437 = arith.divf %435, %436 : vector<2x32xf32>
    %438 = arith.mulf %437, %415 : vector<2x32xf32>
    %439 = arith.negf %426 : vector<2x32xf32>
    %440 = math.exp %439 : vector<2x32xf32>
    %cst_134 = arith.constant 1.000000e+00 : f32
    %441 = vector.broadcast %cst_134 : f32 to vector<2x32xf32>
    %442 = arith.addf %441, %440 : vector<2x32xf32>
    %443 = arith.divf %441, %442 : vector<2x32xf32>
    %444 = math.tanh %430 : vector<2x32xf32>
    %445 = arith.mulf %443, %444 : vector<2x32xf32>
    %446 = arith.addf %438, %445 : vector<2x32xf32>
    %447 = arith.negf %432 : vector<2x32xf32>
    %448 = math.exp %447 : vector<2x32xf32>
    %cst_135 = arith.constant 1.000000e+00 : f32
    %449 = vector.broadcast %cst_135 : f32 to vector<2x32xf32>
    %450 = arith.addf %449, %448 : vector<2x32xf32>
    %451 = arith.divf %449, %450 : vector<2x32xf32>
    %452 = math.tanh %446 : vector<2x32xf32>
    %453 = arith.mulf %451, %452 : vector<2x32xf32>
    %cst_136 = arith.constant dense<0.000000e+00> : vector<2x4xf32>
    %454 = tpu.matmul %453, %62, %cst_136 {dimension_numbers = #tpu.dot_dimension_numbers<[1], [0], [0], [1], [0, 0, 1, 1], [], []>} : vector<2x32xf32>, vector<32x4xf32>, vector<2x4xf32> -> vector<2x4xf32>
    %455 = arith.addf %454, %65 : vector<2x4xf32>
    %cst_137 = arith.constant dense<0.000000e+00> : vector<2x32xf32>
    %456 = tpu.matmul %453, %29, %cst_137 {dimension_numbers = #tpu.dot_dimension_numbers<[1], [0], [0], [1], [0, 0, 1, 1], [], []>} : vector<2x32xf32>, vector<32x32xf32>, vector<2x32xf32> -> vector<2x32xf32>
    %457 = arith.addf %52, %456 : vector<2x32xf32>
    %cst_138 = arith.constant dense<0.000000e+00> : vector<2x32xf32>
    %458 = tpu.matmul %453, %31, %cst_138 {dimension_numbers = #tpu.dot_dimension_numbers<[1], [0], [0], [1], [0, 0, 1, 1], [], []>} : vector<2x32xf32>, vector<32x32xf32>, vector<2x32xf32> -> vector<2x32xf32>
    %459 = arith.addf %55, %458 : vector<2x32xf32>
    %cst_139 = arith.constant dense<0.000000e+00> : vector<2x32xf32>
    %460 = tpu.matmul %453, %33, %cst_139 {dimension_numbers = #tpu.dot_dimension_numbers<[1], [0], [0], [1], [0, 0, 1, 1], [], []>} : vector<2x32xf32>, vector<32x32xf32>, vector<2x32xf32> -> vector<2x32xf32>
    %461 = arith.addf %58, %460 : vector<2x32xf32>
    %cst_140 = arith.constant dense<0.000000e+00> : vector<2x32xf32>
    %462 = tpu.matmul %453, %35, %cst_140 {dimension_numbers = #tpu.dot_dimension_numbers<[1], [0], [0], [1], [0, 0, 1, 1], [], []>} : vector<2x32xf32>, vector<32x32xf32>, vector<2x32xf32> -> vector<2x32xf32>
    %463 = arith.addf %61, %462 : vector<2x32xf32>
    %464 = arith.negf %459 : vector<2x32xf32>
    %465 = math.exp %464 : vector<2x32xf32>
    %cst_141 = arith.constant 1.000000e+00 : f32
    %466 = vector.broadcast %cst_141 : f32 to vector<2x32xf32>
    %467 = arith.addf %466, %465 : vector<2x32xf32>
    %468 = arith.divf %466, %467 : vector<2x32xf32>
    %469 = arith.mulf %468, %446 : vector<2x32xf32>
    %470 = arith.negf %457 : vector<2x32xf32>
    %471 = math.exp %470 : vector<2x32xf32>
    %cst_142 = arith.constant 1.000000e+00 : f32
    %472 = vector.broadcast %cst_142 : f32 to vector<2x32xf32>
    %473 = arith.addf %472, %471 : vector<2x32xf32>
    %474 = arith.divf %472, %473 : vector<2x32xf32>
    %475 = math.tanh %461 : vector<2x32xf32>
    %476 = arith.mulf %474, %475 : vector<2x32xf32>
    %477 = arith.addf %469, %476 : vector<2x32xf32>
    %478 = arith.negf %463 : vector<2x32xf32>
    %479 = math.exp %478 : vector<2x32xf32>
    %cst_143 = arith.constant 1.000000e+00 : f32
    %480 = vector.broadcast %cst_143 : f32 to vector<2x32xf32>
    %481 = arith.addf %480, %479 : vector<2x32xf32>
    %482 = arith.divf %480, %481 : vector<2x32xf32>
    %483 = math.tanh %477 : vector<2x32xf32>
    %484 = arith.mulf %482, %483 : vector<2x32xf32>
    %cst_144 = arith.constant dense<0.000000e+00> : vector<2x4xf32>
    %485 = tpu.matmul %484, %62, %cst_144 {dimension_numbers = #tpu.dot_dimension_numbers<[1], [0], [0], [1], [0, 0, 1, 1], [], []>} : vector<2x32xf32>, vector<32x4xf32>, vector<2x4xf32> -> vector<2x4xf32>
    %486 = arith.addf %485, %65 : vector<2x4xf32>
    %cst_145 = arith.constant dense<0.000000e+00> : vector<2x32xf32>
    %487 = tpu.matmul %484, %29, %cst_145 {dimension_numbers = #tpu.dot_dimension_numbers<[1], [0], [0], [1], [0, 0, 1, 1], [], []>} : vector<2x32xf32>, vector<32x32xf32>, vector<2x32xf32> -> vector<2x32xf32>
    %488 = arith.addf %52, %487 : vector<2x32xf32>
    %cst_146 = arith.constant dense<0.000000e+00> : vector<2x32xf32>
    %489 = tpu.matmul %484, %31, %cst_146 {dimension_numbers = #tpu.dot_dimension_numbers<[1], [0], [0], [1], [0, 0, 1, 1], [], []>} : vector<2x32xf32>, vector<32x32xf32>, vector<2x32xf32> -> vector<2x32xf32>
    %490 = arith.addf %55, %489 : vector<2x32xf32>
    %cst_147 = arith.constant dense<0.000000e+00> : vector<2x32xf32>
    %491 = tpu.matmul %484, %33, %cst_147 {dimension_numbers = #tpu.dot_dimension_numbers<[1], [0], [0], [1], [0, 0, 1, 1], [], []>} : vector<2x32xf32>, vector<32x32xf32>, vector<2x32xf32> -> vector<2x32xf32>
    %492 = arith.addf %58, %491 : vector<2x32xf32>
    %cst_148 = arith.constant dense<0.000000e+00> : vector<2x32xf32>
    %493 = tpu.matmul %484, %35, %cst_148 {dimension_numbers = #tpu.dot_dimension_numbers<[1], [0], [0], [1], [0, 0, 1, 1], [], []>} : vector<2x32xf32>, vector<32x32xf32>, vector<2x32xf32> -> vector<2x32xf32>
    %494 = arith.addf %61, %493 : vector<2x32xf32>
    %495 = arith.negf %490 : vector<2x32xf32>
    %496 = math.exp %495 : vector<2x32xf32>
    %cst_149 = arith.constant 1.000000e+00 : f32
    %497 = vector.broadcast %cst_149 : f32 to vector<2x32xf32>
    %498 = arith.addf %497, %496 : vector<2x32xf32>
    %499 = arith.divf %497, %498 : vector<2x32xf32>
    %500 = arith.mulf %499, %477 : vector<2x32xf32>
    %501 = arith.negf %488 : vector<2x32xf32>
    %502 = math.exp %501 : vector<2x32xf32>
    %cst_150 = arith.constant 1.000000e+00 : f32
    %503 = vector.broadcast %cst_150 : f32 to vector<2x32xf32>
    %504 = arith.addf %503, %502 : vector<2x32xf32>
    %505 = arith.divf %503, %504 : vector<2x32xf32>
    %506 = math.tanh %492 : vector<2x32xf32>
    %507 = arith.mulf %505, %506 : vector<2x32xf32>
    %508 = arith.addf %500, %507 : vector<2x32xf32>
    %509 = arith.negf %494 : vector<2x32xf32>
    %510 = math.exp %509 : vector<2x32xf32>
    %cst_151 = arith.constant 1.000000e+00 : f32
    %511 = vector.broadcast %cst_151 : f32 to vector<2x32xf32>
    %512 = arith.addf %511, %510 : vector<2x32xf32>
    %513 = arith.divf %511, %512 : vector<2x32xf32>
    %514 = math.tanh %508 : vector<2x32xf32>
    %515 = arith.mulf %513, %514 : vector<2x32xf32>
    %cst_152 = arith.constant dense<0.000000e+00> : vector<2x4xf32>
    %516 = tpu.matmul %515, %62, %cst_152 {dimension_numbers = #tpu.dot_dimension_numbers<[1], [0], [0], [1], [0, 0, 1, 1], [], []>} : vector<2x32xf32>, vector<32x4xf32>, vector<2x4xf32> -> vector<2x4xf32>
    %517 = arith.addf %516, %65 : vector<2x4xf32>
    %cst_153 = arith.constant dense<0.000000e+00> : vector<2x32xf32>
    %518 = tpu.matmul %515, %29, %cst_153 {dimension_numbers = #tpu.dot_dimension_numbers<[1], [0], [0], [1], [0, 0, 1, 1], [], []>} : vector<2x32xf32>, vector<32x32xf32>, vector<2x32xf32> -> vector<2x32xf32>
    %519 = arith.addf %52, %518 : vector<2x32xf32>
    %cst_154 = arith.constant dense<0.000000e+00> : vector<2x32xf32>
    %520 = tpu.matmul %515, %31, %cst_154 {dimension_numbers = #tpu.dot_dimension_numbers<[1], [0], [0], [1], [0, 0, 1, 1], [], []>} : vector<2x32xf32>, vector<32x32xf32>, vector<2x32xf32> -> vector<2x32xf32>
    %521 = arith.addf %55, %520 : vector<2x32xf32>
    %cst_155 = arith.constant dense<0.000000e+00> : vector<2x32xf32>
    %522 = tpu.matmul %515, %33, %cst_155 {dimension_numbers = #tpu.dot_dimension_numbers<[1], [0], [0], [1], [0, 0, 1, 1], [], []>} : vector<2x32xf32>, vector<32x32xf32>, vector<2x32xf32> -> vector<2x32xf32>
    %523 = arith.addf %58, %522 : vector<2x32xf32>
    %cst_156 = arith.constant dense<0.000000e+00> : vector<2x32xf32>
    %524 = tpu.matmul %515, %35, %cst_156 {dimension_numbers = #tpu.dot_dimension_numbers<[1], [0], [0], [1], [0, 0, 1, 1], [], []>} : vector<2x32xf32>, vector<32x32xf32>, vector<2x32xf32> -> vector<2x32xf32>
    %525 = arith.addf %61, %524 : vector<2x32xf32>
    %526 = arith.negf %521 : vector<2x32xf32>
    %527 = math.exp %526 : vector<2x32xf32>
    %cst_157 = arith.constant 1.000000e+00 : f32
    %528 = vector.broadcast %cst_157 : f32 to vector<2x32xf32>
    %529 = arith.addf %528, %527 : vector<2x32xf32>
    %530 = arith.divf %528, %529 : vector<2x32xf32>
    %531 = arith.mulf %530, %508 : vector<2x32xf32>
    %532 = arith.negf %519 : vector<2x32xf32>
    %533 = math.exp %532 : vector<2x32xf32>
    %cst_158 = arith.constant 1.000000e+00 : f32
    %534 = vector.broadcast %cst_158 : f32 to vector<2x32xf32>
    %535 = arith.addf %534, %533 : vector<2x32xf32>
    %536 = arith.divf %534, %535 : vector<2x32xf32>
    %537 = math.tanh %523 : vector<2x32xf32>
    %538 = arith.mulf %536, %537 : vector<2x32xf32>
    %539 = arith.addf %531, %538 : vector<2x32xf32>
    %540 = arith.negf %525 : vector<2x32xf32>
    %541 = math.exp %540 : vector<2x32xf32>
    %cst_159 = arith.constant 1.000000e+00 : f32
    %542 = vector.broadcast %cst_159 : f32 to vector<2x32xf32>
    %543 = arith.addf %542, %541 : vector<2x32xf32>
    %544 = arith.divf %542, %543 : vector<2x32xf32>
    %545 = math.tanh %539 : vector<2x32xf32>
    %546 = arith.mulf %544, %545 : vector<2x32xf32>
    %cst_160 = arith.constant dense<0.000000e+00> : vector<2x4xf32>
    %547 = tpu.matmul %546, %62, %cst_160 {dimension_numbers = #tpu.dot_dimension_numbers<[1], [0], [0], [1], [0, 0, 1, 1], [], []>} : vector<2x32xf32>, vector<32x4xf32>, vector<2x4xf32> -> vector<2x4xf32>
    %548 = arith.addf %547, %65 : vector<2x4xf32>
    %cst_161 = arith.constant dense<0.000000e+00> : vector<2x32xf32>
    %549 = tpu.matmul %546, %29, %cst_161 {dimension_numbers = #tpu.dot_dimension_numbers<[1], [0], [0], [1], [0, 0, 1, 1], [], []>} : vector<2x32xf32>, vector<32x32xf32>, vector<2x32xf32> -> vector<2x32xf32>
    %550 = arith.addf %52, %549 : vector<2x32xf32>
    %cst_162 = arith.constant dense<0.000000e+00> : vector<2x32xf32>
    %551 = tpu.matmul %546, %31, %cst_162 {dimension_numbers = #tpu.dot_dimension_numbers<[1], [0], [0], [1], [0, 0, 1, 1], [], []>} : vector<2x32xf32>, vector<32x32xf32>, vector<2x32xf32> -> vector<2x32xf32>
    %552 = arith.addf %55, %551 : vector<2x32xf32>
    %cst_163 = arith.constant dense<0.000000e+00> : vector<2x32xf32>
    %553 = tpu.matmul %546, %33, %cst_163 {dimension_numbers = #tpu.dot_dimension_numbers<[1], [0], [0], [1], [0, 0, 1, 1], [], []>} : vector<2x32xf32>, vector<32x32xf32>, vector<2x32xf32> -> vector<2x32xf32>
    %554 = arith.addf %58, %553 : vector<2x32xf32>
    %cst_164 = arith.constant dense<0.000000e+00> : vector<2x32xf32>
    %555 = tpu.matmul %546, %35, %cst_164 {dimension_numbers = #tpu.dot_dimension_numbers<[1], [0], [0], [1], [0, 0, 1, 1], [], []>} : vector<2x32xf32>, vector<32x32xf32>, vector<2x32xf32> -> vector<2x32xf32>
    %556 = arith.addf %61, %555 : vector<2x32xf32>
    %557 = arith.negf %552 : vector<2x32xf32>
    %558 = math.exp %557 : vector<2x32xf32>
    %cst_165 = arith.constant 1.000000e+00 : f32
    %559 = vector.broadcast %cst_165 : f32 to vector<2x32xf32>
    %560 = arith.addf %559, %558 : vector<2x32xf32>
    %561 = arith.divf %559, %560 : vector<2x32xf32>
    %562 = arith.mulf %561, %539 : vector<2x32xf32>
    %563 = arith.negf %550 : vector<2x32xf32>
    %564 = math.exp %563 : vector<2x32xf32>
    %cst_166 = arith.constant 1.000000e+00 : f32
    %565 = vector.broadcast %cst_166 : f32 to vector<2x32xf32>
    %566 = arith.addf %565, %564 : vector<2x32xf32>
    %567 = arith.divf %565, %566 : vector<2x32xf32>
    %568 = math.tanh %554 : vector<2x32xf32>
    %569 = arith.mulf %567, %568 : vector<2x32xf32>
    %570 = arith.addf %562, %569 : vector<2x32xf32>
    %571 = arith.negf %556 : vector<2x32xf32>
    %572 = math.exp %571 : vector<2x32xf32>
    %cst_167 = arith.constant 1.000000e+00 : f32
    %573 = vector.broadcast %cst_167 : f32 to vector<2x32xf32>
    %574 = arith.addf %573, %572 : vector<2x32xf32>
    %575 = arith.divf %573, %574 : vector<2x32xf32>
    %576 = math.tanh %570 : vector<2x32xf32>
    %577 = arith.mulf %575, %576 : vector<2x32xf32>
    %cst_168 = arith.constant dense<0.000000e+00> : vector<2x4xf32>
    %578 = tpu.matmul %577, %62, %cst_168 {dimension_numbers = #tpu.dot_dimension_numbers<[1], [0], [0], [1], [0, 0, 1, 1], [], []>} : vector<2x32xf32>, vector<32x4xf32>, vector<2x4xf32> -> vector<2x4xf32>
    %579 = arith.addf %578, %65 : vector<2x4xf32>
    %580 = vector.shape_cast %362 : vector<2x4xf32> to vector<1x2x4xf32>
    %581 = vector.shape_cast %393 : vector<2x4xf32> to vector<1x2x4xf32>
    %582 = vector.shape_cast %424 : vector<2x4xf32> to vector<1x2x4xf32>
    %583 = vector.shape_cast %455 : vector<2x4xf32> to vector<1x2x4xf32>
    %584 = vector.shape_cast %486 : vector<2x4xf32> to vector<1x2x4xf32>
    %585 = vector.shape_cast %517 : vector<2x4xf32> to vector<1x2x4xf32>
    %586 = vector.shape_cast %548 : vector<2x4xf32> to vector<1x2x4xf32>
    %587 = vector.shape_cast %579 : vector<2x4xf32> to vector<1x2x4xf32>
    %588 = tpu.concatenate %580, %581, %582, %583, %584, %585, %586, %587 in 0 : vector<1x2x4xf32>, vector<1x2x4xf32>, vector<1x2x4xf32>, vector<1x2x4xf32>, vector<1x2x4xf32>, vector<1x2x4xf32>, vector<1x2x4xf32>, vector<1x2x4xf32> -> vector<8x2x4xf32>
    %c0_169 = arith.constant 0 : index
    %c0_170 = arith.constant 0 : index
    %c0_171 = arith.constant 0 : index
    %589 = vector.load %arg10[%c0_169, %c0_170, %c0_171] : memref<8x2x4xf32, #tpu.memory_space<vmem>>, vector<8x2x4xf32>
    tpu.vector_store %arg10[%c0_169, %c0_170, %c0_171], %588 {strides = array<i32>} : memref<8x2x4xf32, #tpu.memory_space<vmem>>, vector<8x2x4xf32>,
    return
  }
}

</mosaic_0001>

<bundles_post_ra>
// kernel: tpu_custom_call.1
= control target key start
LH: loop header
LB: loop body
LE: loop exit
PB: predicated region body
PF: predicated region fallthrough
CT: control target
= control target key end

     0   :  { %15 = vsyncpa [#allocation3], 0  ;;  %s9336_s0 = inlined_call_operand.vmem [shape: f32[8,2,4], index: 0, kind: input, shape index: {}]   ;;  %s9337_s1 = inlined_call_operand.vmem [shape: f32[4,128], index: 1, kind: input, shape index: {}]   ;;  %s9338_s2 = inlined_call_operand.vmem [shape: f32[1,128], index: 2, kind: input, shape index: {}]   ;;  %s9339_s3 = inlined_call_operand.hbm [shape: f32[4,32,32], index: 3, kind: input, shape index: {}]   ;;  %s9340_s4 = inlined_call_operand.hbm [shape: f32[4,32,32], index: 4, kind: input, shape index: {}]   ;;  %s9341_s5 = inlined_call_operand.vmem [shape: f32[1,128], index: 5, kind: input, shape index: {}]   ;;  %s9342_s6 = inlined_call_operand.hbm [shape: f32[4,32,32], index: 6, kind: input, shape index: {}]   ;;  %s9343_s7 = inlined_call_operand.vmem [shape: f32[1,128], index: 7, kind: input, shape index: {}]   ;;  %s9344_s8 = inlined_call_operand.vmem [shape: f32[32,4], index: 8, kind: input, shape index: {}]   ;;  %s9345_s9 = inlined_call_operand.vmem [shape: f32[1,4], index: 9, kind: input, shape index: {}]   ;;  %s9346_s10 = inlined_call_operand.vmem [shape: f32[8,2,4], index: 10, kind: output, shape index: {}]  }
   0x1   :  { %16 = vsyncpa [#allocation5], 0  ;;  %s7989_s13 = smov [#allocation4]   ;;  %s7990_s15 = smov [#allocation2]  }
   0x2   :  { %s40_s14 = sshll.u32 %s7989_s13, 4  ;;  %s28_s16 = sshll.u32 %s7990_s15, 4  ;;  %s41_s14 = int_to_ptr.vmem [resolvable:$true] %s40_s14  ;;  %s29_s16 = int_to_ptr.vmem [resolvable:$true] %s28_s16 }
   0x3   :  { %s7933_s17 = scalar_lea.vmem %s41_s14, 2048  ;;  %p7938_p1 = scmp.lt.s32.totalorder %s41_s14, %s41_s14 }
   0x4   :  { %p7934_p0 = scmp.ne.s32.totalorder %s41_s14, %s7933_s17  ;;  %p7939_p2 = scmp.lt.s32.totalorder %s7933_s17, %s7933_s17 }
   0x6   :  { %p7940_p3 = por %p7939_p2, %p7938_p1 }
   0x8   :  { %p7941_p4 = pnand %p7940_p3, %p7934_p0 }
   0xa   :  { %7944 = shalt.err (!%p7941_p4)
}
   0xb   :  { %s7991_s18 = smov 128   ;;  %s7992_s19 = smov 8  }
   0xc   :  { %46 = dma.hbm_to_vmem [thread:$0]  %s9340_s4, 2048, %s41_s14, [#allocation5], %s7991_s18, %s7991_s18, %s7992_s19  }
   0xd   :  { %s7953_s22 = scalar_lea.vmem %s29_s16, 2048  ;;  %p7958_p6 = scmp.lt.s32.totalorder %s29_s16, %s29_s16 }
   0xe   :  { %p7954_p5 = scmp.ne.s32.totalorder %s29_s16, %s7953_s22  ;;  %p7959_p7 = scmp.lt.s32.totalorder %s7953_s22, %s7953_s22 }
  0x10   :  { %p7960_p8 = por %p7959_p7, %p7958_p6 }
  0x12   :  { %p7961_p9 = pnand %p7960_p8, %p7954_p5 }
  0x14   :  { %7964 = shalt.err (!%p7961_p9)
}
  0x15   :  { %34 = dma.hbm_to_vmem [thread:$0]  %s9339_s3, 2048, %s29_s16, [#allocation3], %s7991_s18, %s7991_s18, %s7992_s19  }
  0x16   :  { %s7993_s25 = smov [#allocation6]  }
  0x17   :  { %s54_s26 = sshll.u32 %s7993_s25, 4  ;;  %s55_s26 = int_to_ptr.vmem [resolvable:$true] %s54_s26 }
  0x18   :  { %s7973_s27 = scalar_lea.vmem %s55_s26, 2048  ;;  %p7978_p11 = scmp.lt.s32.totalorder %s55_s26, %s55_s26 }
  0x19   :  { %p7974_p10 = scmp.ne.s32.totalorder %s55_s26, %s7973_s27  ;;  %p7979_p12 = scmp.lt.s32.totalorder %s7973_s27, %s7973_s27 }
  0x1b   :  { %p7980_p13 = por %p7979_p12, %p7978_p11 }
  0x1d   :  { %p7981_p0 = pnand %p7980_p13, %p7974_p10 }
  0x1f   :  { %7984 = shalt.err (!%p7981_p0)
}
  0x20   :  { %60 = dma.hbm_to_vmem [thread:$0]  %s9342_s6, 2048, %s55_s26, [#allocation5], %s7991_s18, %s7991_s18, %s7992_s19  }
  0x21   :  { %7985 = dma.done.wait [#allocation3], 2048  }
  0x22   :  { %7986 = vsyncadd [#allocation3], 4294965248 }
  0x23   :  { %7987 = dma.done.wait [#allocation5], 4096  }
  0x24   :  { %7988 = vsyncadd [#allocation5], 4294963200  ;;  %v105_v0 = vlaneseq  ;;  %v7994_v1 = vmov 0.0   ;;  %v7995_v2 = vmov 1983009808   ;;  %vm7996_vm0 = vmmov 0  }
  0x25   :  { %6828 = vmatprep.subr.mxu1 %v7994_v1  ;;  %v103_v3 = vunpack.c.l.s4 %v7995_v2  ;;  %6836 = vmatprep.mubr.msk.f32.mxu1 %vm7996_vm0, %v7994_v1  ;;  %vm139_vm1 = vcmask 1043456   ;;  %v8067_v6 = vld [vmem:[#allocation2 + $0x18] sm:$0xff]  ;;  %v8069_v7 = vld [vmem:[#allocation2 + $0x10] sm:$0xff]  ;;  %v84_v8 = vld [vmem:[%s9337_s1] sm:$0xf]  ;;  %vm134_vm2 = vcmask 31744  }
  0x26   :  { %v106_v5 = vshrl.u32 %v105_v0, 7  ;;  %6829 = vmatpush3.msra.mxu1 %v8067_v6  ;;  %6823 = vmatprep.subr.msk.mxu0 %vm139_vm1, %v84_v8  ;;  %v76_v10 = vld [vmem:[%s9336_s0] sm:$0x3]  ;;  %v77_v11 = vld [vmem:[%s9336_s0 + $0x2] sm:$0x3]  ;;  %v8082_v12 = vld [vmem:[#allocation2 + $0x8] sm:$0xff] }
  0x27   :  { %v104_v4 = vunpack.c.0.s8 %v103_v3  ;;  %6830 = vmatprep.subr.mxu1 %v7994_v1  ;;  %6824 = vmatpush3.msk.msra.mxu0 %vm139_vm1, %v84_v8  ;;  %v78_v13 = vld [vmem:[%s9336_s0 + $0x4] sm:$0x3]  ;;  %v79_v14 = vld [vmem:[%s9336_s0 + $0x6] sm:$0x3]  ;;  %v100_v15 = vcombine.low %v76_v10, %v77_v11  ;;  %v80_v17 = vld [vmem:[%s9336_s0 + $0x8] sm:$0x3] }
  0x28   :  { %6831 = vmatpush3.msra.mxu1 %v8069_v7  ;;  %v101_v16 = vcombine.low %v78_v13, %v79_v14  ;;  %6839 = vmatprep.subr.mxu0 %v7994_v1  ;;  %v81_v18 = vld [vmem:[%s9336_s0 + $0xa] sm:$0x3]  ;;  %v82_v19 = vld [vmem:[%s9336_s0 + $0xc] sm:$0x3]  ;;  %v8102_v21 = vld [vmem:[#allocation2] sm:$0xff]  ;;  %s7997_s25 = smov 64  }
  0x29   :  { %v107_v9 = vsub.s32 %v104_v4, %v106_v5  ;;  %6832 = vmatprep.subr.mxu1 %v7994_v1  ;;  %v83_v22 = vld [vmem:[%s9336_s0 + $0xe] sm:$0x3]  ;;  %v117_v23 = vcombine.low %v80_v17, %v81_v18  ;;  %v8109_v27 = vld [vmem:[#allocation2 + $0x58] sm:$0xff]  ;;  %v8114_v30 = vld [vmem:[#allocation2 + $0x50] sm:$0xff]  ;;  %s7998_s26 = smov 32   ;;  %vm300_vm3 = vcmask 261120  }
  0x2a   :  { %6833 = vmatpush3.msra.mxu1 %v8082_v12  ;;  %v118_v25 = vcombine.low %v82_v19, %v83_v22  ;;  %v8117_v32 = vld [vmem:[#allocation2 + $0x38] sm:$0xff]  ;;  %v8121_v33 = vld [vmem:[#allocation2 + $0x48] sm:$0xff]  ;;  %v8126_v34 = vld [vmem:[#allocation2 + $0x30] sm:$0xff]  ;;  %vm6322_vm4 = vcmask 25600  }
  0x2b   :  { %v108_v20 = vrot.slane %v100_v15, %v107_v9  ;;  %v115_v24 = vrot.slane %v101_v16, %v107_v9  ;;  %6834 = vmatprep.subr.mxu1 %v7994_v1  ;;  %v125_v26 = vrot.slane %v117_v23, %v107_v9  ;;  %v8132_v35 = vld [vmem:[#allocation2 + $0x28] sm:$0xff]  ;;  %v8135_v36 = vld [vmem:[#allocation2 + $0x40] sm:$0xff]  ;;  %v8148_v38 = vld [vmem:[#allocation2 + $0x78] sm:$0xff] }
  0x2c   :  { %6835 = vmatpush3.msra.mxu1 %v8102_v21  ;;  %v132_v29 = vrot.slane %v118_v25, %v107_v9  ;;  %v8141_v37 = vld [vmem:[#allocation2 + $0x20] sm:$0xff]  ;;  %v8154_v39 = vld [vmem:[#allocation2 + $0x70] sm:$0xff]  ;;  %v8160_v40 = vld [vmem:[#allocation2 + $0x68] sm:$0xff] }
  0x2d   :  { %v116_v28 = vcombine.low %v108_v20, %v115_v24  ;;  %6837 = vmatmul.mubr.f32.vlgmr.msra.gmra.mxu1 %v7994_v1  ;;  %6850 = vmatprep.subr.mxu1 %v7994_v1  ;;  %v8166_v41 = vld [vmem:[#allocation2 + $0x60] sm:$0xff] }
  0x2e   :  { %v133_v31 = vcombine.low %v125_v26, %v132_v29  ;;  %6851 = vmatpush3.msra.mxu1 %v8109_v27  ;;  %6858 = vmatprep.mubr.msk.f32.mxu1 %vm7996_vm0, %v7994_v1  ;;  %v6337_v45 = vld [vmem:[%s9338_s2] ss:$0 sm:$0xff]  ;;  %s7999_s2 = smov 96  }
  0x2f   :  { %6825 = vmatprep.mubr.msk.f32.mxu0 %vm134_vm2, %v116_v28  ;;  %6852 = vmatprep.subr.mxu1 %v7994_v1 }
  0x30   :  { %6826 = vmatmul.mubr.msk.f32.vlgmr.msra.gmra.mxu0 %vm134_vm2, %v133_v31  ;;  %6853 = vmatpush3.msra.mxu1 %v8114_v30 }
  0x31   :  { %6840 = vmatpush3.msra.mxu0 %v8117_v32  ;;  %6854 = vmatprep.subr.mxu1 %v7994_v1 }
  0x32   :  { %6841 = vmatprep.subr.mxu0 %v7994_v1  ;;  %6855 = vmatpush3.msra.mxu1 %v8121_v33 }
  0x33   :  { %6842 = vmatpush3.msra.mxu0 %v8126_v34  ;;  %6847 = vmatprep.mubr.msk.f32.mxu0 %vm7996_vm0, %v7994_v1 }
  0x34   :  { %6843 = vmatprep.subr.mxu0 %v7994_v1  ;;  %6856 = vmatprep.subr.mxu1 %v7994_v1 }
  0x35   :  { %6844 = vmatpush3.msra.mxu0 %v8132_v35  ;;  %6857 = vmatpush3.msra.mxu1 %v8135_v36 }
  0x36   :  { %6845 = vmatprep.subr.mxu0 %v7994_v1  ;;  %6859 = vmatmul.mubr.f32.vlgmr.msra.gmra.mxu1 %v7994_v1 }
  0x37   :  { %6846 = vmatpush3.msra.mxu0 %v8141_v37  ;;  %6872 = vmatprep.subr.mxu1 %v7994_v1 }
  0x38   :  { %6848 = vmatmul.mubr.f32.vlgmr.msra.gmra.mxu0 %v7994_v1  ;;  %6861 = vmatprep.subr.mxu0 %v7994_v1 }
  0x39   :  { %6862 = vmatpush3.msra.mxu0 %v8148_v38  ;;  %6869 = vmatprep.mubr.msk.f32.mxu0 %vm7996_vm0, %v7994_v1 }
  0x3a   :  { %6863 = vmatprep.subr.mxu0 %v7994_v1  ;;  %6873 = vmatpush3.msra.mxu1 %v8067_v6 }
  0x3b   :  { %6864 = vmatpush3.msra.mxu0 %v8154_v39  ;;  %6874 = vmatprep.subr.mxu1 %v7994_v1 }
  0x3c   :  { %6865 = vmatprep.subr.mxu0 %v7994_v1  ;;  %6875 = vmatpush3.msra.mxu1 %v8069_v7 }
  0x3d   :  { %6866 = vmatpush3.msra.mxu0 %v8160_v40  ;;  %6876 = vmatprep.subr.mxu1 %v7994_v1 }
  0x3e   :  { %6867 = vmatprep.subr.mxu0 %v7994_v1  ;;  %6877 = vmatpush3.msra.mxu1 %v8082_v12 }
  0x3f   :  { %6868 = vmatpush3.msra.mxu0 %v8166_v41  ;;  %6878 = vmatprep.subr.mxu1 %v7994_v1 }
  0x40   :  { %6870 = vmatmul.mubr.f32.vlgmr.msra.gmra.mxu0 %v7994_v1  ;;  %6883 = vmatprep.subr.mxu0 %v7994_v1 }
  0x41   :  { %6884 = vmatpush3.msra.mxu0 %v8117_v32  ;;  %6879 = vmatpush3.msra.mxu1 %v8102_v21 }
  0x42   :  { %6885 = vmatprep.subr.mxu0 %v7994_v1  ;;  %6880 = vmatprep.mubr.msk.f32.mxu1 %vm7996_vm0, %v7994_v1 }
  0x43   :  { %6886 = vmatpush3.msra.mxu0 %v8126_v34  ;;  %6891 = vmatprep.mubr.msk.f32.mxu0 %vm7996_vm0, %v7994_v1 }
  0x44   :  { %6887 = vmatprep.subr.mxu0 %v7994_v1  ;;  %6894 = vmatprep.subr.mxu1 %v7994_v1 }
  0x45   :  { %6888 = vmatpush3.msra.mxu0 %v8132_v35 }
  0x46   :  { %6889 = vmatprep.subr.mxu0 %v7994_v1 }
  0x47   :  { %6890 = vmatpush3.msra.mxu0 %v8141_v37 }
  0x48   :  { %6905 = vmatprep.subr.mxu0 %v7994_v1 }
  0xed   :  { %v370_v42 = vpop.f32.mrf.mxu1 }
  0xef   :  { %v6838_v43 = vpop.f32.mrf.mxu1 }
  0xf0   :  { %v6827_v44 = vpop.f32.mrf.mxu0 }
  0xf1   :  { %v8194_v46 = vadd.f32 %v6827_v44, %v6337_v45 }
  0xf2   :  { %v209_v47 = vpop.f32.mrf.mxu0 }
  0xf3   :  { %v8198_v54 = vadd.f32 %v6337_v45, %v209_v47 }
  0xf5   :  { %v374_v58 = vadd.f32 %v370_v42, %v8198_v54 }
  0xf6   :  { %v516_v48 = vpop.f32.mrf.mxu1 }
  0xf7   :  { %521 = vrot.lane.b32.xlu0 %v516_v48, %s7997_s25  ;;  %v6345_v59 = vmul.f32 -1.442695, %v374_v58 }
  0xf8   :  { %v441_v49 = vpop.f32.mrf.mxu0  ;;  %v6860_v50 = vpop.f32.mrf.mxu1 }
  0xf9   :  { %446 = vrot.lane.b32.xlu1 %v441_v49, %s7998_s26 }
  0xfa   :  { %v6849_v51 = vpop.f32.mrf.mxu0 }
 0x100   :  { %v591_v52 = vpop.f32.mrf.mxu0 }
 0x102   :  { %v6871_v53 = vpop.f32.mrf.mxu0 }
 0x169   :  { %v522_v55 = vpop.permute.xlu0 %521 }
 0x16a   :  { %v524_v56 = vadd.f32 %v522_v55, %v8198_v54 }
 0x16b   :  { %v447_v2 = vpop.permute.xlu1 %446 }
 0x16c   :  { %7631 = vtanh.f32 %v524_v56  ;;  %v449_v3 = vadd.f32 %v447_v2, %v8198_v54 }
 0x16d   :  { %7633 = vpow2.f32 %v6345_v59 }
 0x16e   :  { %v6344_v4 = vmul.f32 -1.442695, %v449_v3 }
 0x179   :  { %v7632_v57 = vpop.eup %7631 }
 0x17a   :  { %615 = vrot.lane.b32.xlu0 %v7632_v57, %s7997_s25  ;;  %v7634_v60 = vpop.eup %7633 }
 0x17b   :  { %v610_v61 = vadd.f32 1.0, %v7634_v60 }
 0x17d   :  { %7635 = vrcp.f32 %v610_v61 }
 0x17e   :  { %596 = vrot.lane.b32.xlu0 %v591_v52, %s7999_s2  ;;  %7637 = vpow2.f32 %v6344_v4 }
 0x18a   :  { %v7636_v62 = vpop.eup %7635 }
 0x18b   :  { %v7638_v5 = vpop.eup %7637 }
 0x18c   :  { %v603_v8 = vadd.f32 1.0, %v7638_v5 }
 0x18e   :  { %7639 = vrcp.f32 %v603_v8 }
 0x19b   :  { %v7640_v9 = vpop.eup %7639 }
 0x19c   :  { %v606_v10 = vmul.f32 0.0, %v7640_v9 }
 0x1ec   :  { %v616_v63 = vpop.permute.xlu0 %615 }
 0x1ed   :  { %v618_v0 = vmul.f32 %v7636_v62, %v616_v63 }
 0x1ef   :  { %620 = vrot.lane.b32.xlu1 %v618_v0, %s7998_s26 }
 0x1f0   :  { %v597_v15 = vpop.permute.xlu0 %596 }
 0x1f1   :  { %v599_v16 = vadd.f32 %v597_v15, %v8198_v54 }
 0x1f3   :  { %v6346_v17 = vmul.f32 -1.442695, %v599_v16 }
 0x261   :  { %v621_v11 = vpop.permute.xlu1 %620 }
 0x262   :  { %v8206_v13 = vadd.f32 %v621_v11, %v606_v10 }
 0x264   :  { %7641 = vtanh.f32 %v8206_v13  ;;  %v950_v4 = vrot.slane %v8206_v13, 6 }
 0x265   :  { %7643 = vpow2.f32 %v6346_v17 }
 0x271   :  { %v7642_v14 = vpop.eup %7641 }
 0x272   :  { %632 = vrot.lane.b32.xlu1 %v7642_v14, %s7997_s25  ;;  %v7644_v18 = vpop.eup %7643 }
 0x273   :  { %v627_v19 = vadd.f32 1.0, %v7644_v18 }
 0x275   :  { %7645 = vrcp.f32 %v627_v19 }
 0x282   :  { %v7646_v20 = vpop.eup %7645 }
 0x2e4   :  { %v633_v22 = vpop.permute.xlu1 %632 }
 0x2e5   :  { %v635_v23 = vmul.f32 %v7646_v20, %v633_v22 }
 0x2e7   :  { %637 = vrot.lane.b32.xlu0 %v635_v23, %s7998_s26 }
 0x359   :  { %v638_v24 = vpop.permute.xlu0 %637 }
 0x35a   :  { %6881 = vmatmul.mubr.msk.f32.vlgmr.msra.gmra.mxu1 %vm300_vm3, %v638_v24  ;;  %6892 = vmatmul.mubr.msk.f32.vlgmr.msra.gmra.mxu0 %vm300_vm3, %v638_v24 }
 0x35b   :  { %6895 = vmatpush3.msra.mxu1 %v8109_v27  ;;  %6906 = vmatpush3.msra.mxu0 %v8148_v38 }
 0x35c   :  { %6896 = vmatprep.subr.mxu1 %v7994_v1  ;;  %6907 = vmatprep.subr.mxu0 %v7994_v1 }
 0x35d   :  { %6897 = vmatpush3.msra.mxu1 %v8114_v30  ;;  %6908 = vmatpush3.msra.mxu0 %v8154_v39 }
 0x35e   :  { %6898 = vmatprep.subr.mxu1 %v7994_v1  ;;  %6909 = vmatprep.subr.mxu0 %v7994_v1 }
 0x35f   :  { %6899 = vmatpush3.msra.mxu1 %v8121_v33  ;;  %6910 = vmatpush3.msra.mxu0 %v8160_v40 }
 0x360   :  { %6900 = vmatprep.subr.mxu1 %v7994_v1  ;;  %6911 = vmatprep.subr.mxu0 %v7994_v1 }
 0x361   :  { %6901 = vmatpush3.msra.mxu1 %v8135_v36  ;;  %6902 = vmatprep.mubr.msk.f32.mxu1 %vm7996_vm0, %v7994_v1 }
 0x362   :  { %6912 = vmatpush3.msra.mxu0 %v8166_v41  ;;  %6913 = vmatprep.mubr.msk.f32.mxu0 %vm7996_vm0, %v7994_v1 }
 0x363   :  { %6903 = vmatmul.mubr.msk.f32.vlgmr.msra.gmra.mxu1 %vm300_vm3, %v638_v24  ;;  %6914 = vmatmul.mubr.msk.f32.vlgmr.msra.gmra.mxu0 %vm300_vm3, %v638_v24 }
 0x364   :  { %6916 = vmatprep.subr.mxu1 %v7994_v1  ;;  %6927 = vmatprep.subr.mxu0 %v7994_v1 }
 0x365   :  { %6917 = vmatpush3.msra.mxu1 %v8067_v6  ;;  %6928 = vmatpush3.msra.mxu0 %v8117_v32 }
 0x366   :  { %6918 = vmatprep.subr.mxu1 %v7994_v1  ;;  %6929 = vmatprep.subr.mxu0 %v7994_v1 }
 0x367   :  { %6919 = vmatpush3.msra.mxu1 %v8069_v7  ;;  %6930 = vmatpush3.msra.mxu0 %v8126_v34 }
 0x368   :  { %6920 = vmatprep.subr.mxu1 %v7994_v1  ;;  %6931 = vmatprep.subr.mxu0 %v7994_v1 }
 0x369   :  { %6921 = vmatpush3.msra.mxu1 %v8082_v12  ;;  %6932 = vmatpush3.msra.mxu0 %v8132_v35 }
 0x36a   :  { %6922 = vmatprep.subr.mxu1 %v7994_v1  ;;  %6933 = vmatprep.subr.mxu0 %v7994_v1 }
 0x36b   :  { %6923 = vmatpush3.msra.mxu1 %v8102_v21  ;;  %6934 = vmatpush3.msra.mxu0 %v8141_v37 }
 0x36c   :  { %6924 = vmatprep.mubr.msk.f32.mxu1 %vm7996_vm0, %v7994_v1  ;;  %6935 = vmatprep.mubr.msk.f32.mxu0 %vm7996_vm0, %v7994_v1 }
 0x36d   :  { %6938 = vmatprep.subr.mxu1 %v7994_v1  ;;  %6949 = vmatprep.subr.mxu0 %v7994_v1 }
 0x41a   :  { %v707_v25 = vpop.f32.mrf.mxu1  ;;  %v781_v26 = vpop.f32.mrf.mxu0 }
 0x41b   :  { %v786_v47 = vrot.slane %v781_v26, 6  ;;  %v712_v52 = vrot.slane %v707_v25, 6 }
 0x41c   :  { %v6882_v28 = vpop.f32.mrf.mxu1  ;;  %v6893_v29 = vpop.f32.mrf.mxu0 }
 0x41d   :  { %v714_v53 = vadd.f32 %v712_v52, %v8198_v54 }
 0x41f   :  { %v6352_v55 = vmul.f32 -1.442695, %v714_v53 }
 0x423   :  { %v857_v31 = vpop.f32.mrf.mxu1  ;;  %v933_v42 = vpop.f32.mrf.mxu0 }
 0x424   :  { %v862_v43 = vrot.slane %v857_v31, 6  ;;  %v938_v48 = vrot.slane %v933_v42, 6 }
 0x425   :  { %v6904_v44 = vpop.f32.mrf.mxu1  ;;  %v6915_v45 = vpop.f32.mrf.mxu0 }
 0x426   :  { %863 = vrot.lane.b32.xlu1 %v862_v43, %s7997_s25 }
 0x42a   :  { %787 = vrot.lane.b32.xlu1 %v786_v47, %s7998_s26 }
 0x42e   :  { %939 = vrot.lane.b32.xlu1 %v938_v48, %s7999_s2 }
 0x498   :  { %v864_v49 = vpop.permute.xlu1 %863 }
 0x499   :  { %v866_v50 = vadd.f32 %v864_v49, %v8198_v54 }
 0x49b   :  { %7647 = vtanh.f32 %v866_v50 }
 0x49c   :  { %7649 = vpow2.f32 %v6352_v55  ;;  %v788_v61 = vpop.permute.xlu1 %787 }
 0x49d   :  { %v790_v62 = vadd.f32 %v788_v61, %v8198_v54 }
 0x49f   :  { %v6351_v63 = vmul.f32 -1.442695, %v790_v62 }
 0x4a0   :  { %v940_v11 = vpop.permute.xlu1 %939 }
 0x4a1   :  { %v942_v14 = vadd.f32 %v940_v11, %v8198_v54 }
 0x4a3   :  { %v6353_v15 = vmul.f32 -1.442695, %v942_v14 }
 0x4a8   :  { %v7648_v51 = vpop.eup %7647 }
 0x4a9   :  { %961 = vrot.lane.b32.xlu0 %v7648_v51, %s7997_s25  ;;  %v7650_v56 = vpop.eup %7649 }
 0x4aa   :  { %v956_v57 = vadd.f32 1.0, %v7650_v56 }
 0x4ac   :  { %7651 = vrcp.f32 %v956_v57 }
 0x4ad   :  { %7653 = vpow2.f32 %v6351_v63 }
 0x4b9   :  { %v7652_v58 = vpop.eup %7651 }
 0x4ba   :  { %v7654_v0 = vpop.eup %7653 }
 0x4bb   :  { %v946_v2 = vadd.f32 1.0, %v7654_v0 }
 0x4bd   :  { %7655 = vrcp.f32 %v946_v2 }
 0x4ca   :  { %v7656_v3 = vpop.eup %7655 }
 0x4cb   :  { %v952_v5 = vmul.f32 %v7656_v3, %v950_v4 }
 0x51b   :  { %v962_v59 = vpop.permute.xlu0 %961 }
 0x51c   :  { %v964_v60 = vmul.f32 %v7652_v58, %v962_v59 }
 0x51e   :  { %966 = vrot.lane.b32.xlu0 %v964_v60, %s7998_s26 }
 0x590   :  { %v967_v8 = vpop.permute.xlu0 %966 }
 0x591   :  { %v8265_v9 = vadd.f32 %v967_v8, %v952_v5 }
 0x593   :  { %7657 = vtanh.f32 %v8265_v9  ;;  %v1297_v2 = vrot.slane %v8265_v9, 6 }
 0x594   :  { %7659 = vpow2.f32 %v6353_v15 }
 0x5a0   :  { %v7658_v10 = vpop.eup %7657 }
 0x5a1   :  { %978 = vrot.lane.b32.xlu0 %v7658_v10, %s7997_s25  ;;  %v7660_v16 = vpop.eup %7659 }
 0x5a2   :  { %v973_v17 = vadd.f32 1.0, %v7660_v16 }
 0x5a4   :  { %7661 = vrcp.f32 %v973_v17 }
 0x5b1   :  { %v7662_v18 = vpop.eup %7661 }
 0x613   :  { %v979_v19 = vpop.permute.xlu0 %978 }
 0x614   :  { %v981_v13 = vmul.f32 %v7662_v18, %v979_v19 }
 0x616   :  { %v983_v20 = vrot.slane %v981_v13, 2 }
 0x618   :  { %984 = vrot.lane.b32.xlu1 %v983_v20, %s7998_s26 }
 0x68a   :  { %v985_v22 = vpop.permute.xlu1 %984 }
 0x68b   :  { %6925 = vmatmul.mubr.msk.f32.vlgmr.msra.gmra.mxu1 %vm300_vm3, %v985_v22  ;;  %6936 = vmatmul.mubr.msk.f32.vlgmr.msra.gmra.mxu0 %vm300_vm3, %v985_v22 }
 0x68c   :  { %6939 = vmatpush3.msra.mxu1 %v8109_v27  ;;  %6950 = vmatpush3.msra.mxu0 %v8148_v38 }
 0x68d   :  { %6940 = vmatprep.subr.mxu1 %v7994_v1  ;;  %6951 = vmatprep.subr.mxu0 %v7994_v1 }
 0x68e   :  { %6941 = vmatpush3.msra.mxu1 %v8114_v30  ;;  %6952 = vmatpush3.msra.mxu0 %v8154_v39 }
 0x68f   :  { %6942 = vmatprep.subr.mxu1 %v7994_v1  ;;  %6953 = vmatprep.subr.mxu0 %v7994_v1 }
 0x690   :  { %6943 = vmatpush3.msra.mxu1 %v8121_v33  ;;  %6954 = vmatpush3.msra.mxu0 %v8160_v40 }
 0x691   :  { %6944 = vmatprep.subr.mxu1 %v7994_v1  ;;  %6955 = vmatprep.subr.mxu0 %v7994_v1 }
 0x692   :  { %6945 = vmatpush3.msra.mxu1 %v8135_v36  ;;  %6946 = vmatprep.mubr.msk.f32.mxu1 %vm7996_vm0, %v7994_v1 }
 0x693   :  { %6956 = vmatpush3.msra.mxu0 %v8166_v41  ;;  %6957 = vmatprep.mubr.msk.f32.mxu0 %vm7996_vm0, %v7994_v1 }
 0x694   :  { %6947 = vmatmul.mubr.msk.f32.vlgmr.msra.gmra.mxu1 %vm300_vm3, %v985_v22  ;;  %6958 = vmatmul.mubr.msk.f32.vlgmr.msra.gmra.mxu0 %vm300_vm3, %v985_v22 }
 0x695   :  { %6960 = vmatprep.subr.mxu1 %v7994_v1  ;;  %6971 = vmatprep.subr.mxu0 %v7994_v1 }
 0x696   :  { %6961 = vmatpush3.msra.mxu1 %v8067_v6  ;;  %6972 = vmatpush3.msra.mxu0 %v8117_v32 }
 0x697   :  { %6962 = vmatprep.subr.mxu1 %v7994_v1  ;;  %6973 = vmatprep.subr.mxu0 %v7994_v1 }
 0x698   :  { %6963 = vmatpush3.msra.mxu1 %v8069_v7  ;;  %6974 = vmatpush3.msra.mxu0 %v8126_v34 }
 0x699   :  { %6964 = vmatprep.subr.mxu1 %v7994_v1  ;;  %6975 = vmatprep.subr.mxu0 %v7994_v1 }
 0x69a   :  { %6965 = vmatpush3.msra.mxu1 %v8082_v12  ;;  %6976 = vmatpush3.msra.mxu0 %v8132_v35 }
 0x69b   :  { %6966 = vmatprep.subr.mxu1 %v7994_v1  ;;  %6977 = vmatprep.subr.mxu0 %v7994_v1 }
 0x69c   :  { %6967 = vmatpush3.msra.mxu1 %v8102_v21  ;;  %6978 = vmatpush3.msra.mxu0 %v8141_v37 }
 0x69d   :  { %6968 = vmatprep.mubr.msk.f32.mxu1 %vm7996_vm0, %v7994_v1  ;;  %6979 = vmatprep.mubr.msk.f32.mxu0 %vm7996_vm0, %v7994_v1 }
 0x69e   :  { %6982 = vmatprep.subr.mxu1 %v7994_v1  ;;  %6993 = vmatprep.subr.mxu0 %v7994_v1 }
 0x74b   :  { %v1054_v23 = vpop.f32.mrf.mxu1  ;;  %v1128_v24 = vpop.f32.mrf.mxu0 }
 0x74c   :  { %v1133_v44 = vrot.slane %v1128_v24, 4  ;;  %v1059_v50 = vrot.slane %v1054_v23, 4 }
 0x74d   :  { %v6926_v25 = vpop.f32.mrf.mxu1  ;;  %v6937_v26 = vpop.f32.mrf.mxu0 }
 0x74e   :  { %v1061_v51 = vadd.f32 %v1059_v50, %v8198_v54 }
 0x750   :  { %v6359_v52 = vmul.f32 -1.442695, %v1061_v51 }
 0x754   :  { %v1204_v28 = vpop.f32.mrf.mxu1  ;;  %v1280_v29 = vpop.f32.mrf.mxu0 }
 0x755   :  { %v1209_v31 = vrot.slane %v1204_v28, 4  ;;  %v1285_v45 = vrot.slane %v1280_v29, 4 }
 0x756   :  { %v6948_v42 = vpop.f32.mrf.mxu1  ;;  %v6959_v43 = vpop.f32.mrf.mxu0 }
 0x757   :  { %1210 = vrot.lane.b32.xlu0 %v1209_v31, %s7997_s25 }
 0x75b   :  { %1134 = vrot.lane.b32.xlu0 %v1133_v44, %s7998_s26 }
 0x75f   :  { %1286 = vrot.lane.b32.xlu0 %v1285_v45, %s7999_s2 }
 0x7c9   :  { %v1211_v47 = vpop.permute.xlu0 %1210 }
 0x7ca   :  { %v1213_v48 = vadd.f32 %v1211_v47, %v8198_v54 }
 0x7cc   :  { %7663 = vtanh.f32 %v1213_v48 }
 0x7cd   :  { %7665 = vpow2.f32 %v6359_v52  ;;  %v1135_v59 = vpop.permute.xlu0 %1134 }
 0x7ce   :  { %v1137_v60 = vadd.f32 %v1135_v59, %v8198_v54 }
 0x7d0   :  { %v6358_v61 = vmul.f32 -1.442695, %v1137_v60 }
 0x7d1   :  { %v1287_v10 = vpop.permute.xlu0 %1286 }
 0x7d2   :  { %v1289_v11 = vadd.f32 %v1287_v10, %v8198_v54 }
 0x7d4   :  { %v6360_v14 = vmul.f32 -1.442695, %v1289_v11 }
 0x7d9   :  { %v7664_v49 = vpop.eup %7663 }
 0x7da   :  { %1308 = vrot.lane.b32.xlu1 %v7664_v49, %s7997_s25  ;;  %v7666_v53 = vpop.eup %7665 }
 0x7db   :  { %v1303_v55 = vadd.f32 1.0, %v7666_v53 }
 0x7dd   :  { %7667 = vrcp.f32 %v1303_v55 }
 0x7de   :  { %7669 = vpow2.f32 %v6358_v61 }
 0x7ea   :  { %v7668_v56 = vpop.eup %7667 }
 0x7eb   :  { %v7670_v62 = vpop.eup %7669 }
 0x7ec   :  { %v1293_v63 = vadd.f32 1.0, %v7670_v62 }
 0x7ee   :  { %7671 = vrcp.f32 %v1293_v63 }
 0x7fb   :  { %v7672_v0 = vpop.eup %7671 }
 0x7fc   :  { %v1299_v3 = vmul.f32 %v7672_v0, %v1297_v2 }
 0x84c   :  { %v1309_v57 = vpop.permute.xlu1 %1308 }
 0x84d   :  { %v1311_v58 = vmul.f32 %v7668_v56, %v1309_v57 }
 0x84f   :  { %1313 = vrot.lane.b32.xlu1 %v1311_v58, %s7998_s26 }
 0x8c1   :  { %v1314_v4 = vpop.permute.xlu1 %1313 }
 0x8c2   :  { %v8324_v5 = vadd.f32 %v1314_v4, %v1299_v3 }
 0x8c4   :  { %7673 = vtanh.f32 %v8324_v5  ;;  %v1644_v63 = vrot.slane %v8324_v5, 6 }
 0x8c5   :  { %7675 = vpow2.f32 %v6360_v14 }
 0x8d1   :  { %v7674_v8 = vpop.eup %7673 }
 0x8d2   :  { %1325 = vrot.lane.b32.xlu1 %v7674_v8, %s7997_s25  ;;  %v7676_v15 = vpop.eup %7675 }
 0x8d3   :  { %v1320_v16 = vadd.f32 1.0, %v7676_v15 }
 0x8d5   :  { %7677 = vrcp.f32 %v1320_v16 }
 0x8e2   :  { %v7678_v17 = vpop.eup %7677 }
 0x944   :  { %v1326_v18 = vpop.permute.xlu1 %1325 }
 0x945   :  { %v1328_v9 = vmul.f32 %v7678_v17, %v1326_v18 }
 0x947   :  { %v1330_v19 = vrot.slane %v1328_v9, 4 }
 0x949   :  { %1331 = vrot.lane.b32.xlu0 %v1330_v19, %s7998_s26 }
 0x9bb   :  { %v1332_v13 = vpop.permute.xlu0 %1331 }
 0x9bc   :  { %6969 = vmatmul.mubr.msk.f32.vlgmr.msra.gmra.mxu1 %vm300_vm3, %v1332_v13  ;;  %6980 = vmatmul.mubr.msk.f32.vlgmr.msra.gmra.mxu0 %vm300_vm3, %v1332_v13 }
 0x9bd   :  { %6983 = vmatpush3.msra.mxu1 %v8109_v27  ;;  %6994 = vmatpush3.msra.mxu0 %v8148_v38 }
 0x9be   :  { %6984 = vmatprep.subr.mxu1 %v7994_v1  ;;  %6995 = vmatprep.subr.mxu0 %v7994_v1 }
 0x9bf   :  { %6985 = vmatpush3.msra.mxu1 %v8114_v30  ;;  %6996 = vmatpush3.msra.mxu0 %v8154_v39 }
 0x9c0   :  { %6986 = vmatprep.subr.mxu1 %v7994_v1  ;;  %6997 = vmatprep.subr.mxu0 %v7994_v1 }
 0x9c1   :  { %6987 = vmatpush3.msra.mxu1 %v8121_v33  ;;  %6998 = vmatpush3.msra.mxu0 %v8160_v40 }
 0x9c2   :  { %6988 = vmatprep.subr.mxu1 %v7994_v1  ;;  %6999 = vmatprep.subr.mxu0 %v7994_v1 }
 0x9c3   :  { %6989 = vmatpush3.msra.mxu1 %v8135_v36  ;;  %6990 = vmatprep.mubr.msk.f32.mxu1 %vm7996_vm0, %v7994_v1 }
 0x9c4   :  { %7000 = vmatpush3.msra.mxu0 %v8166_v41  ;;  %7001 = vmatprep.mubr.msk.f32.mxu0 %vm7996_vm0, %v7994_v1 }
 0x9c5   :  { %6991 = vmatmul.mubr.msk.f32.vlgmr.msra.gmra.mxu1 %vm300_vm3, %v1332_v13  ;;  %7002 = vmatmul.mubr.msk.f32.vlgmr.msra.gmra.mxu0 %vm300_vm3, %v1332_v13 }
 0x9c6   :  { %7004 = vmatprep.subr.mxu1 %v7994_v1  ;;  %7015 = vmatprep.subr.mxu0 %v7994_v1 }
 0x9c7   :  { %7005 = vmatpush3.msra.mxu1 %v8067_v6  ;;  %7016 = vmatpush3.msra.mxu0 %v8117_v32 }
 0x9c8   :  { %7006 = vmatprep.subr.mxu1 %v7994_v1  ;;  %7017 = vmatprep.subr.mxu0 %v7994_v1 }
 0x9c9   :  { %7007 = vmatpush3.msra.mxu1 %v8069_v7  ;;  %7018 = vmatpush3.msra.mxu0 %v8126_v34 }
 0x9ca   :  { %7008 = vmatprep.subr.mxu1 %v7994_v1  ;;  %7019 = vmatprep.subr.mxu0 %v7994_v1 }
 0x9cb   :  { %7009 = vmatpush3.msra.mxu1 %v8082_v12  ;;  %7020 = vmatpush3.msra.mxu0 %v8132_v35 }
 0x9cc   :  { %7010 = vmatprep.subr.mxu1 %v7994_v1  ;;  %7021 = vmatprep.subr.mxu0 %v7994_v1 }
 0x9cd   :  { %7011 = vmatpush3.msra.mxu1 %v8102_v21  ;;  %7022 = vmatpush3.msra.mxu0 %v8141_v37 }
 0x9ce   :  { %7012 = vmatprep.mubr.msk.f32.mxu1 %vm7996_vm0, %v7994_v1  ;;  %7023 = vmatprep.mubr.msk.f32.mxu0 %vm7996_vm0, %v7994_v1 }
 0x9cf   :  { %7026 = vmatprep.subr.mxu1 %v7994_v1  ;;  %7037 = vmatprep.subr.mxu0 %v7994_v1 }
 0xa7c   :  { %v1401_v20 = vpop.f32.mrf.mxu1  ;;  %v1475_v22 = vpop.f32.mrf.mxu0 }
 0xa7d   :  { %v1480_v42 = vrot.slane %v1475_v22, 2  ;;  %v1406_v48 = vrot.slane %v1401_v20, 2 }
 0xa7e   :  { %v6970_v23 = vpop.f32.mrf.mxu1  ;;  %v6981_v24 = vpop.f32.mrf.mxu0 }
 0xa7f   :  { %v1408_v49 = vadd.f32 %v1406_v48, %v8198_v54 }
 0xa81   :  { %v6366_v50 = vmul.f32 -1.442695, %v1408_v49 }
 0xa85   :  { %v1551_v25 = vpop.f32.mrf.mxu1  ;;  %v1627_v26 = vpop.f32.mrf.mxu0 }
 0xa86   :  { %v1556_v28 = vrot.slane %v1551_v25, 2  ;;  %v1632_v43 = vrot.slane %v1627_v26, 2 }
 0xa87   :  { %v6992_v29 = vpop.f32.mrf.mxu1  ;;  %v7003_v31 = vpop.f32.mrf.mxu0 }
 0xa88   :  { %1557 = vrot.lane.b32.xlu1 %v1556_v28, %s7997_s25 }
 0xa8c   :  { %1481 = vrot.lane.b32.xlu1 %v1480_v42, %s7998_s26 }
 0xa90   :  { %1633 = vrot.lane.b32.xlu1 %v1632_v43, %s7999_s2 }
 0xafa   :  { %v1558_v44 = vpop.permute.xlu1 %1557 }
 0xafb   :  { %v1560_v45 = vadd.f32 %v1558_v44, %v8198_v54 }
 0xafd   :  { %7679 = vtanh.f32 %v1560_v45 }
 0xafe   :  { %7681 = vpow2.f32 %v6366_v50  ;;  %v1482_v57 = vpop.permute.xlu1 %1481 }
 0xaff   :  { %v1484_v58 = vadd.f32 %v1482_v57, %v8198_v54 }
 0xb01   :  { %v6365_v59 = vmul.f32 -1.442695, %v1484_v58 }
 0xb02   :  { %v1634_v8 = vpop.permute.xlu1 %1633 }
 0xb03   :  { %v1636_v10 = vadd.f32 %v1634_v8, %v8198_v54 }
 0xb05   :  { %v6367_v11 = vmul.f32 -1.442695, %v1636_v10 }
 0xb0a   :  { %v7680_v47 = vpop.eup %7679 }
 0xb0b   :  { %1655 = vrot.lane.b32.xlu0 %v7680_v47, %s7997_s25  ;;  %v7682_v51 = vpop.eup %7681 }
 0xb0c   :  { %v1650_v52 = vadd.f32 1.0, %v7682_v51 }
 0xb0e   :  { %7683 = vrcp.f32 %v1650_v52 }
 0xb0f   :  { %7685 = vpow2.f32 %v6365_v59  ;;  %v8450_v59 = vld [vmem:[#allocation2 + $0x58] sm:$0xff] }
 0xb1b   :  { %v7684_v53 = vpop.eup %7683 }
 0xb1c   :  { %v7686_v60 = vpop.eup %7685 }
 0xb1d   :  { %v1640_v61 = vadd.f32 1.0, %v7686_v60  ;;  %v8456_v60 = vld [vmem:[#allocation2 + $0x50] sm:$0xff] }
 0xb1f   :  { %7687 = vrcp.f32 %v1640_v61  ;;  %v8462_v61 = vld [vmem:[#allocation2 + $0x48] sm:$0xff] }
 0xb2c   :  { %v7688_v62 = vpop.eup %7687 }
 0xb2d   :  { %v1646_v0 = vmul.f32 %v7688_v62, %v1644_v63  ;;  %v8497_v62 = vld [vmem:[#allocation2 + $0x28] sm:$0xff]  ;;  %v8502_v63 = vld [vmem:[#allocation2] sm:$0xff] }
 0xb7d   :  { %v1656_v55 = vpop.permute.xlu0 %1655 }
 0xb7e   :  { %v1658_v56 = vmul.f32 %v7684_v53, %v1656_v55 }
 0xb80   :  { %1660 = vrot.lane.b32.xlu0 %v1658_v56, %s7998_s26 }
 0xbf2   :  { %v1661_v2 = vpop.permute.xlu0 %1660 }
 0xbf3   :  { %v8383_v3 = vadd.f32 %v1661_v2, %v1646_v0  ;;  %v8505_v0 = vld [vmem:[#allocation2 + $0x20] sm:$0xff] }
 0xbf5   :  { %7689 = vtanh.f32 %v8383_v3  ;;  %v1985_v43 = vrot.slane %v8383_v3, 6 }
 0xbf6   :  { %7691 = vpow2.f32 %v6367_v11 }
 0xc02   :  { %v7690_v4 = vpop.eup %7689 }
 0xc03   :  { %1672 = vrot.lane.b32.xlu0 %v7690_v4, %s7997_s25  ;;  %v7692_v14 = vpop.eup %7691 }
 0xc04   :  { %v1667_v15 = vadd.f32 1.0, %v7692_v14 }
 0xc06   :  { %7693 = vrcp.f32 %v1667_v15 }
 0xc13   :  { %v7694_v16 = vpop.eup %7693 }
 0xc75   :  { %v1673_v17 = vpop.permute.xlu0 %1672 }
 0xc76   :  { %v1675_v5 = vmul.f32 %v7694_v16, %v1673_v17 }
 0xc78   :  { %v1677_v18 = vrot.slane %v1675_v5, 6 }
 0xc7a   :  { %1678 = vrot.lane.b32.xlu1 %v1677_v18, %s7998_s26 }
 0xcec   :  { %v1679_v9 = vpop.permute.xlu1 %1678 }
 0xced   :  { %7013 = vmatmul.mubr.msk.f32.vlgmr.msra.gmra.mxu1 %vm300_vm3, %v1679_v9  ;;  %7024 = vmatmul.mubr.msk.f32.vlgmr.msra.gmra.mxu0 %vm300_vm3, %v1679_v9 }
 0xcee   :  { %7027 = vmatpush3.msra.mxu1 %v8109_v27  ;;  %7038 = vmatpush3.msra.mxu0 %v8148_v38 }
 0xcef   :  { %7028 = vmatprep.subr.mxu1 %v7994_v1  ;;  %7039 = vmatprep.subr.mxu0 %v7994_v1 }
 0xcf0   :  { %7029 = vmatpush3.msra.mxu1 %v8114_v30  ;;  %7040 = vmatpush3.msra.mxu0 %v8154_v39 }
 0xcf1   :  { %7030 = vmatprep.subr.mxu1 %v7994_v1  ;;  %7041 = vmatprep.subr.mxu0 %v7994_v1 }
 0xcf2   :  { %7031 = vmatpush3.msra.mxu1 %v8121_v33  ;;  %7042 = vmatpush3.msra.mxu0 %v8160_v40 }
 0xcf3   :  { %7032 = vmatprep.subr.mxu1 %v7994_v1  ;;  %7043 = vmatprep.subr.mxu0 %v7994_v1 }
 0xcf4   :  { %7033 = vmatpush3.msra.mxu1 %v8135_v36  ;;  %7034 = vmatprep.mubr.msk.f32.mxu1 %vm7996_vm0, %v7994_v1 }
 0xcf5   :  { %7044 = vmatpush3.msra.mxu0 %v8166_v41  ;;  %7045 = vmatprep.mubr.msk.f32.mxu0 %vm7996_vm0, %v7994_v1 }
 0xcf6   :  { %7035 = vmatmul.mubr.msk.f32.vlgmr.msra.gmra.mxu1 %vm300_vm3, %v1679_v9  ;;  %7046 = vmatmul.mubr.msk.f32.vlgmr.msra.gmra.mxu0 %vm300_vm3, %v1679_v9 }
 0xcf7   :  { %7048 = vmatprep.subr.mxu1 %v7994_v1  ;;  %7059 = vmatprep.subr.mxu0 %v7994_v1 }
 0xcf8   :  { %7049 = vmatpush3.msra.mxu1 %v8067_v6  ;;  %7060 = vmatpush3.msra.mxu0 %v8117_v32 }
 0xcf9   :  { %7050 = vmatprep.subr.mxu1 %v7994_v1  ;;  %7061 = vmatprep.subr.mxu0 %v7994_v1 }
 0xcfa   :  { %7051 = vmatpush3.msra.mxu1 %v8069_v7  ;;  %7062 = vmatpush3.msra.mxu0 %v8126_v34 }
 0xcfb   :  { %7052 = vmatprep.subr.mxu1 %v7994_v1  ;;  %7063 = vmatprep.subr.mxu0 %v7994_v1 }
 0xcfc   :  { %7053 = vmatpush3.msra.mxu1 %v8082_v12  ;;  %7064 = vmatpush3.msra.mxu0 %v8132_v35 }
 0xcfd   :  { %7054 = vmatprep.subr.mxu1 %v7994_v1  ;;  %7065 = vmatprep.subr.mxu0 %v7994_v1 }
 0xcfe   :  { %7055 = vmatpush3.msra.mxu1 %v8102_v21  ;;  %7066 = vmatpush3.msra.mxu0 %v8141_v37 }
 0xcff   :  { %7056 = vmatprep.mubr.msk.f32.mxu1 %vm7996_vm0, %v7994_v1  ;;  %7067 = vmatprep.mubr.msk.f32.mxu0 %vm7996_vm0, %v7994_v1 }
 0xd00   :  { %7070 = vmatprep.subr.mxu1 %v7994_v1  ;;  %7081 = vmatprep.subr.mxu0 %v7994_v1 }
 0xdad   :  { %v1748_v6 = vpop.f32.mrf.mxu1  ;;  %v1819_v7 = vpop.f32.mrf.mxu0 }
 0xdae   :  { %v1752_v54 = vadd.f32 %v1748_v6, %v8194_v46 }
 0xdaf   :  { %v7014_v12 = vpop.f32.mrf.mxu1  ;;  %v7025_v27 = vpop.f32.mrf.mxu0 }
 0xdb0   :  { %v6373_v19 = vmul.f32 -1.442695, %v1752_v54 }
 0xdb6   :  { %v1894_v30 = vpop.f32.mrf.mxu1  ;;  %v1969_v32 = vpop.f32.mrf.mxu0 }
 0xdb7   :  { %1899 = vrot.lane.b32.xlu0 %v1894_v30, %s7997_s25 }
 0xdb8   :  { %v7036_v21 = vpop.f32.mrf.mxu1  ;;  %v7047_v33 = vpop.f32.mrf.mxu0 }
 0xdbb   :  { %1824 = vrot.lane.b32.xlu0 %v1819_v7, %s7998_s26 }
 0xdbf   :  { %1974 = vrot.lane.b32.xlu0 %v1969_v32, %s7999_s2 }
 0xe29   :  { %v1900_v34 = vpop.permute.xlu0 %1899 }
 0xe2a   :  { %v1902_v35 = vadd.f32 %v1900_v34, %v8194_v46 }
 0xe2c   :  { %7695 = vtanh.f32 %v1902_v35 }
 0xe2d   :  { %7697 = vpow2.f32 %v6373_v19  ;;  %v1825_v25 = vpop.permute.xlu0 %1824 }
 0xe2e   :  { %v1827_v26 = vadd.f32 %v1825_v25, %v8194_v46 }
 0xe30   :  { %v6372_v28 = vmul.f32 -1.442695, %v1827_v26 }
 0xe31   :  { %v1975_v49 = vpop.permute.xlu0 %1974 }
 0xe32   :  { %v1977_v50 = vadd.f32 %v1975_v49, %v8194_v46 }
 0xe34   :  { %v6374_v51 = vmul.f32 -1.442695, %v1977_v50  ;;  %v8532_v50 = vld [vmem:[#allocation2 + $0x78] sm:$0xff] }
 0xe39   :  { %v7696_v37 = vpop.eup %7695 }
 0xe3a   :  { %1996 = vrot.lane.b32.xlu1 %v7696_v37, %s7997_s25  ;;  %v7698_v13 = vpop.eup %7697 }
 0xe3b   :  { %v1991_v20 = vadd.f32 1.0, %v7698_v13 }
 0xe3d   :  { %7699 = vrcp.f32 %v1991_v20 }
 0xe3e   :  { %7701 = vpow2.f32 %v6372_v28 }
 0xe4a   :  { %v7700_v22 = vpop.eup %7699 }
 0xe4b   :  { %v7702_v29 = vpop.eup %7701 }
 0xe4c   :  { %v1981_v31 = vadd.f32 1.0, %v7702_v29 }
 0xe4e   :  { %7703 = vrcp.f32 %v1981_v31 }
 0xe5b   :  { %v7704_v42 = vpop.eup %7703 }
 0xe5c   :  { %v1987_v44 = vmul.f32 %v7704_v42, %v1985_v43 }
 0xeac   :  { %v1997_v23 = vpop.permute.xlu1 %1996 }
 0xead   :  { %v1999_v24 = vmul.f32 %v7700_v22, %v1997_v23 }
 0xeaf   :  { %2001 = vrot.lane.b32.xlu1 %v1999_v24, %s7998_s26 }
 0xf21   :  { %v2002_v45 = vpop.permute.xlu1 %2001 }
 0xf22   :  { %v8442_v47 = vadd.f32 %v2002_v45, %v1987_v44 }
 0xf24   :  { %7705 = vtanh.f32 %v8442_v47  ;;  %v2331_v22 = vrot.slane %v8442_v47, 6 }
 0xf25   :  { %7707 = vpow2.f32 %v6374_v51  ;;  %v8538_v51 = vld [vmem:[#allocation2 + $0x70] sm:$0xff] }
 0xf31   :  { %v7706_v48 = vpop.eup %7705 }
 0xf32   :  { %2013 = vrot.lane.b32.xlu1 %v7706_v48, %s7997_s25  ;;  %v7708_v52 = vpop.eup %7707 }
 0xf33   :  { %v2008_v53 = vadd.f32 1.0, %v7708_v52  ;;  %v8544_v52 = vld [vmem:[#allocation2 + $0x68] sm:$0xff] }
 0xf35   :  { %7709 = vrcp.f32 %v2008_v53  ;;  %v8549_v53 = vld [vmem:[#allocation2 + $0x40] sm:$0xff] }
 0xf42   :  { %v7710_v55 = vpop.eup %7709 }
 0xfa4   :  { %v2014_v56 = vpop.permute.xlu1 %2013 }
 0xfa5   :  { %v2016_v57 = vmul.f32 %v7710_v55, %v2014_v56  ;;  %v8554_v55 = vld [vmem:[#allocation2 + $0x60] sm:$0xff] }
 0xfa7   :  { %2018 = vrot.lane.b32.xlu0 %v2016_v57, %s7998_s26 }
0x1019   :  { %v2019_v58 = vpop.permute.xlu0 %2018 }
0x101a   :  { %7057 = vmatmul.mubr.msk.f32.vlgmr.msra.gmra.mxu1 %vm300_vm3, %v2019_v58  ;;  %7068 = vmatmul.mubr.msk.f32.vlgmr.msra.gmra.mxu0 %vm300_vm3, %v2019_v58 }
0x101b   :  { %7071 = vmatpush3.msra.mxu1 %v8450_v59  ;;  %7082 = vmatpush3.msra.mxu0 %v8148_v38  ;;  %v8478_v38 = vld [vmem:[#allocation2 + $0x18] sm:$0xff] }
0x101c   :  { %7072 = vmatprep.subr.mxu1 %v7994_v1  ;;  %7083 = vmatprep.subr.mxu0 %v7994_v1 }
0x101d   :  { %7073 = vmatpush3.msra.mxu1 %v8456_v60  ;;  %7084 = vmatpush3.msra.mxu0 %v8154_v39  ;;  %v8486_v39 = vld [vmem:[#allocation2 + $0x10] sm:$0xff] }
0x101e   :  { %7074 = vmatprep.subr.mxu1 %v7994_v1  ;;  %7085 = vmatprep.subr.mxu0 %v7994_v1 }
0x101f   :  { %7075 = vmatpush3.msra.mxu1 %v8462_v61  ;;  %7086 = vmatpush3.msra.mxu0 %v8160_v40  ;;  %v8489_v40 = vld [vmem:[#allocation2 + $0x30] sm:$0xff] }
0x1020   :  { %7076 = vmatprep.subr.mxu1 %v7994_v1  ;;  %7087 = vmatprep.subr.mxu0 %v7994_v1 }
0x1021   :  { %7077 = vmatpush3.msra.mxu1 %v8135_v36  ;;  %7078 = vmatprep.mubr.msk.f32.mxu1 %vm7996_vm0, %v7994_v1  ;;  %v8481_v36 = vld [vmem:[#allocation2 + $0x38] sm:$0xff] }
0x1022   :  { %7088 = vmatpush3.msra.mxu0 %v8166_v41  ;;  %7089 = vmatprep.mubr.msk.f32.mxu0 %vm7996_vm0, %v7994_v1  ;;  %v8494_v41 = vld [vmem:[#allocation2 + $0x8] sm:$0xff] }
0x1023   :  { %7079 = vmatmul.mubr.msk.f32.vlgmr.msra.gmra.mxu1 %vm300_vm3, %v2019_v58  ;;  %7090 = vmatmul.mubr.msk.f32.vlgmr.msra.gmra.mxu0 %vm300_vm3, %v2019_v58 }
0x1024   :  { %7092 = vmatprep.subr.mxu1 %v7994_v1  ;;  %7103 = vmatprep.subr.mxu0 %v7994_v1 }
0x1025   :  { %7093 = vmatpush3.msra.mxu1 %v8478_v38  ;;  %7104 = vmatpush3.msra.mxu0 %v8481_v36 }
0x1026   :  { %7094 = vmatprep.subr.mxu1 %v7994_v1  ;;  %7105 = vmatprep.subr.mxu0 %v7994_v1 }
0x1027   :  { %7095 = vmatpush3.msra.mxu1 %v8486_v39  ;;  %7106 = vmatpush3.msra.mxu0 %v8489_v40 }
0x1028   :  { %7096 = vmatprep.subr.mxu1 %v7994_v1  ;;  %7107 = vmatprep.subr.mxu0 %v7994_v1 }
0x1029   :  { %7097 = vmatpush3.msra.mxu1 %v8494_v41  ;;  %7108 = vmatpush3.msra.mxu0 %v8497_v62 }
0x102a   :  { %7098 = vmatprep.subr.mxu1 %v7994_v1  ;;  %7109 = vmatprep.subr.mxu0 %v7994_v1 }
0x102b   :  { %7099 = vmatpush3.msra.mxu1 %v8502_v63  ;;  %7110 = vmatpush3.msra.mxu0 %v8505_v0 }
0x102c   :  { %7100 = vmatprep.mubr.msk.f32.mxu1 %vm7996_vm0, %v7994_v1  ;;  %7111 = vmatprep.mubr.msk.f32.mxu0 %vm7996_vm0, %v7994_v1 }
0x102d   :  { %7114 = vmatprep.subr.mxu1 %v7994_v1  ;;  %7125 = vmatprep.subr.mxu0 %v7994_v1 }
0x10da   :  { %v2088_v2 = vpop.f32.mrf.mxu1  ;;  %v2162_v3 = vpop.f32.mrf.mxu0 }
0x10db   :  { %v2167_v17 = vrot.slane %v2162_v3, 6  ;;  %v2093_v7 = vrot.slane %v2088_v2, 6 }
0x10dc   :  { %v7058_v4 = vpop.f32.mrf.mxu1  ;;  %v7069_v8 = vpop.f32.mrf.mxu0 }
0x10dd   :  { %v2095_v12 = vadd.f32 %v2093_v7, %v8194_v46 }
0x10df   :  { %v6380_v27 = vmul.f32 -1.442695, %v2095_v12 }
0x10e3   :  { %v2238_v10 = vpop.f32.mrf.mxu1  ;;  %v2314_v11 = vpop.f32.mrf.mxu0 }
0x10e4   :  { %v2243_v14 = vrot.slane %v2238_v10, 6  ;;  %v2319_v5 = vrot.slane %v2314_v11, 6 }
0x10e5   :  { %v7080_v15 = vpop.f32.mrf.mxu1  ;;  %v7091_v16 = vpop.f32.mrf.mxu0 }
0x10e6   :  { %2244 = vrot.lane.b32.xlu1 %v2243_v14, %s7997_s25 }
0x10ea   :  { %2168 = vrot.lane.b32.xlu1 %v2167_v17, %s7998_s26 }
0x10ee   :  { %2320 = vrot.lane.b32.xlu1 %v2319_v5, %s7999_s2 }
0x1158   :  { %v2245_v18 = vpop.permute.xlu1 %2244 }
0x1159   :  { %v2247_v9 = vadd.f32 %v2245_v18, %v8194_v46 }
0x115b   :  { %7711 = vtanh.f32 %v2247_v9 }
0x115c   :  { %7713 = vpow2.f32 %v6380_v27  ;;  %v2169_v35 = vpop.permute.xlu1 %2168 }
0x115d   :  { %v2171_v37 = vadd.f32 %v2169_v35, %v8194_v46 }
0x115f   :  { %v6379_v54 = vmul.f32 -1.442695, %v2171_v37 }
0x1160   :  { %v2321_v28 = vpop.permute.xlu1 %2320 }
0x1161   :  { %v2323_v29 = vadd.f32 %v2321_v28, %v8194_v46 }
0x1163   :  { %v6381_v31 = vmul.f32 -1.442695, %v2323_v29 }
0x1168   :  { %v7712_v6 = vpop.eup %7711 }
0x1169   :  { %2342 = vrot.lane.b32.xlu0 %v7712_v6, %s7997_s25  ;;  %v7714_v30 = vpop.eup %7713 }
0x116a   :  { %v2337_v32 = vadd.f32 1.0, %v7714_v30 }
0x116c   :  { %7715 = vrcp.f32 %v2337_v32 }
0x116d   :  { %7717 = vpow2.f32 %v6379_v54 }
0x1179   :  { %v7716_v21 = vpop.eup %7715 }
0x117a   :  { %v7718_v19 = vpop.eup %7717 }
0x117b   :  { %v2327_v13 = vadd.f32 1.0, %v7718_v19 }
0x117d   :  { %7719 = vrcp.f32 %v2327_v13 }
0x118a   :  { %v7720_v20 = vpop.eup %7719 }
0x118b   :  { %v2333_v23 = vmul.f32 %v7720_v20, %v2331_v22 }
0x11db   :  { %v2343_v33 = vpop.permute.xlu0 %2342 }
0x11dc   :  { %v2345_v34 = vmul.f32 %v7716_v21, %v2343_v33 }
0x11de   :  { %2347 = vrot.lane.b32.xlu0 %v2345_v34, %s7998_s26 }
0x1250   :  { %v2348_v24 = vpop.permute.xlu0 %2347 }
0x1251   :  { %v8523_v25 = vadd.f32 %v2348_v24, %v2333_v23 }
0x1253   :  { %7721 = vtanh.f32 %v8523_v25  ;;  %v2678_v30 = vrot.slane %v8523_v25, 6 }
0x1254   :  { %7723 = vpow2.f32 %v6381_v31 }
0x1260   :  { %v7722_v26 = vpop.eup %7721 }
0x1261   :  { %2359 = vrot.lane.b32.xlu0 %v7722_v26, %s7997_s25  ;;  %v7724_v42 = vpop.eup %7723 }
0x1262   :  { %v2354_v43 = vadd.f32 1.0, %v7724_v42 }
0x1264   :  { %7725 = vrcp.f32 %v2354_v43 }
0x1271   :  { %v7726_v44 = vpop.eup %7725 }
0x12d3   :  { %v2360_v45 = vpop.permute.xlu0 %2359 }
0x12d4   :  { %v2362_v47 = vmul.f32 %v7726_v44, %v2360_v45 }
0x12d6   :  { %v2364_v48 = vrot.slane %v2362_v47, 2 }
0x12d8   :  { %2365 = vrot.lane.b32.xlu1 %v2364_v48, %s7998_s26 }
0x134a   :  { %v2366_v49 = vpop.permute.xlu1 %2365 }
0x134b   :  { %7101 = vmatmul.mubr.msk.f32.vlgmr.msra.gmra.mxu1 %vm300_vm3, %v2366_v49  ;;  %7112 = vmatmul.mubr.msk.f32.vlgmr.msra.gmra.mxu0 %vm300_vm3, %v2366_v49 }
0x134c   :  { %7115 = vmatpush3.msra.mxu1 %v8450_v59  ;;  %7126 = vmatpush3.msra.mxu0 %v8532_v50 }
0x134d   :  { %7116 = vmatprep.subr.mxu1 %v7994_v1  ;;  %7127 = vmatprep.subr.mxu0 %v7994_v1 }
0x134e   :  { %7117 = vmatpush3.msra.mxu1 %v8456_v60  ;;  %7128 = vmatpush3.msra.mxu0 %v8538_v51 }
0x134f   :  { %7118 = vmatprep.subr.mxu1 %v7994_v1  ;;  %7129 = vmatprep.subr.mxu0 %v7994_v1 }
0x1350   :  { %7119 = vmatpush3.msra.mxu1 %v8462_v61  ;;  %7130 = vmatpush3.msra.mxu0 %v8544_v52 }
0x1351   :  { %7120 = vmatprep.subr.mxu1 %v7994_v1  ;;  %7131 = vmatprep.subr.mxu0 %v7994_v1 }
0x1352   :  { %7121 = vmatpush3.msra.mxu1 %v8549_v53  ;;  %7122 = vmatprep.mubr.msk.f32.mxu1 %vm7996_vm0, %v7994_v1 }
0x1353   :  { %7132 = vmatpush3.msra.mxu0 %v8554_v55  ;;  %7133 = vmatprep.mubr.msk.f32.mxu0 %vm7996_vm0, %v7994_v1 }
0x1354   :  { %7123 = vmatmul.mubr.msk.f32.vlgmr.msra.gmra.mxu1 %vm300_vm3, %v2366_v49  ;;  %7134 = vmatmul.mubr.msk.f32.vlgmr.msra.gmra.mxu0 %vm300_vm3, %v2366_v49 }
0x1355   :  { %7136 = vmatprep.subr.mxu1 %v7994_v1  ;;  %7147 = vmatprep.subr.mxu0 %v7994_v1 }
0x1356   :  { %7137 = vmatpush3.msra.mxu1 %v8478_v38  ;;  %7148 = vmatpush3.msra.mxu0 %v8481_v36 }
0x1357   :  { %7138 = vmatprep.subr.mxu1 %v7994_v1  ;;  %7149 = vmatprep.subr.mxu0 %v7994_v1 }
0x1358   :  { %7139 = vmatpush3.msra.mxu1 %v8486_v39  ;;  %7150 = vmatpush3.msra.mxu0 %v8489_v40 }
0x1359   :  { %7140 = vmatprep.subr.mxu1 %v7994_v1  ;;  %7151 = vmatprep.subr.mxu0 %v7994_v1 }
0x135a   :  { %7141 = vmatpush3.msra.mxu1 %v8494_v41  ;;  %7152 = vmatpush3.msra.mxu0 %v8497_v62 }
0x135b   :  { %7142 = vmatprep.subr.mxu1 %v7994_v1  ;;  %7153 = vmatprep.subr.mxu0 %v7994_v1 }
0x135c   :  { %7143 = vmatpush3.msra.mxu1 %v8502_v63  ;;  %7154 = vmatpush3.msra.mxu0 %v8505_v0 }
0x135d   :  { %7144 = vmatprep.mubr.msk.f32.mxu1 %vm7996_vm0, %v7994_v1  ;;  %7155 = vmatprep.mubr.msk.f32.mxu0 %vm7996_vm0, %v7994_v1 }
0x135e   :  { %7158 = vmatprep.subr.mxu1 %v7994_v1  ;;  %7169 = vmatprep.subr.mxu0 %v7994_v1 }
0x140b   :  { %v2435_v56 = vpop.f32.mrf.mxu1  ;;  %v2509_v57 = vpop.f32.mrf.mxu0 }
0x140c   :  { %v2514_v63 = vrot.slane %v2509_v57, 4  ;;  %v2440_v8 = vrot.slane %v2435_v56, 4 }
0x140d   :  { %v7102_v58 = vpop.f32.mrf.mxu1  ;;  %v7113_v38 = vpop.f32.mrf.mxu0 }
0x140e   :  { %v2442_v10 = vadd.f32 %v2440_v8, %v8194_v46  ;;  %v245_v8 = vld [vmem:[#allocation4 + $0x38] sm:$0xff] }
0x1410   :  { %v6387_v11 = vmul.f32 -1.442695, %v2442_v10  ;;  %v239_v10 = vld [vmem:[#allocation4 + $0x10] sm:$0xff] }
0x1414   :  { %v2585_v36 = vpop.f32.mrf.mxu1  ;;  %v2661_v39 = vpop.f32.mrf.mxu0 }
0x1415   :  { %v2590_v40 = vrot.slane %v2585_v36, 4  ;;  %v2666_v0 = vrot.slane %v2661_v39, 4 }
0x1416   :  { %v7124_v41 = vpop.f32.mrf.mxu1  ;;  %v7135_v62 = vpop.f32.mrf.mxu0 }
0x1417   :  { %2591 = vrot.lane.b32.xlu0 %v2590_v40, %s7997_s25 }
0x141b   :  { %2515 = vrot.lane.b32.xlu0 %v2514_v63, %s7998_s26 }
0x141f   :  { %2667 = vrot.lane.b32.xlu0 %v2666_v0, %s7999_s2 }
0x1489   :  { %v2592_v2 = vpop.permute.xlu0 %2591 }
0x148a   :  { %v2594_v3 = vadd.f32 %v2592_v2, %v8194_v46 }
0x148c   :  { %7727 = vtanh.f32 %v2594_v3 }
0x148d   :  { %7729 = vpow2.f32 %v6387_v11  ;;  %v2516_v18 = vpop.permute.xlu0 %2515  ;;  %v244_v11 = vld [vmem:[#allocation4 + $0x30] sm:$0xff] }
0x148e   :  { %v2518_v9 = vadd.f32 %v2516_v18, %v8194_v46 }
0x1490   :  { %v6386_v6 = vmul.f32 -1.442695, %v2518_v9 }
0x1491   :  { %v2668_v35 = vpop.permute.xlu0 %2667 }
0x1492   :  { %v2670_v37 = vadd.f32 %v2668_v35, %v8194_v46 }
0x1494   :  { %v6388_v54 = vmul.f32 -1.442695, %v2670_v37  ;;  %v249_v37 = vld [vmem:[#allocation4 + $0x50] sm:$0xff] }
0x1499   :  { %v7728_v4 = vpop.eup %7727 }
0x149a   :  { %2689 = vrot.lane.b32.xlu1 %v7728_v4, %s7997_s25  ;;  %v7730_v14 = vpop.eup %7729  ;;  %v240_v4 = vld [vmem:[#allocation4 + $0x18] sm:$0xff] }
0x149b   :  { %v2684_v15 = vadd.f32 1.0, %v7730_v14  ;;  %v238_v14 = vld [vmem:[#allocation4 + $0x8] sm:$0xff] }
0x149d   :  { %7731 = vrcp.f32 %v2684_v15  ;;  %v243_v15 = vld [vmem:[#allocation4 + $0x28] sm:$0xff] }
0x149e   :  { %7733 = vpow2.f32 %v6386_v6 }
0x14aa   :  { %v7732_v16 = vpop.eup %7731 }
0x14ab   :  { %v7734_v7 = vpop.eup %7733 }
0x14ac   :  { %v2674_v12 = vadd.f32 1.0, %v7734_v7 }
0x14ae   :  { %7735 = vrcp.f32 %v2674_v12 }
0x14bb   :  { %v7736_v27 = vpop.eup %7735 }
0x14bc   :  { %v2680_v32 = vmul.f32 %v7736_v27, %v2678_v30 }
0x150c   :  { %v2690_v17 = vpop.permute.xlu1 %2689 }
0x150d   :  { %v2692_v5 = vmul.f32 %v7732_v16, %v2690_v17  ;;  %v237_v16 = vld [vmem:[#allocation4] sm:$0xff] }
0x150e   :  { %v242_v17 = vld [vmem:[#allocation4 + $0x20] sm:$0xff] }
0x150f   :  { %2694 = vrot.lane.b32.xlu1 %v2692_v5, %s7998_s26 }
0x1581   :  { %v2695_v21 = vpop.permute.xlu1 %2694 }
0x1582   :  { %v8592_v33 = vadd.f32 %v2695_v21, %v2680_v32 }
0x1584   :  { %7737 = vtanh.f32 %v8592_v33  ;;  %v3025_v63 = vrot.slane %v8592_v33, 6  ;;  %v250_v33 = vld [vmem:[#allocation4 + $0x58] sm:$0xff] }
0x1585   :  { %7739 = vpow2.f32 %v6388_v54  ;;  %v248_v54 = vld [vmem:[#allocation4 + $0x48] sm:$0xff] }
0x1591   :  { %v7738_v34 = vpop.eup %7737 }
0x1592   :  { %2706 = vrot.lane.b32.xlu1 %v7738_v34, %s7997_s25  ;;  %v7740_v19 = vpop.eup %7739  ;;  %v255_v34 = vld [vmem:[#allocation4 + $0x78] sm:$0xff] }
0x1593   :  { %v2701_v13 = vadd.f32 1.0, %v7740_v19  ;;  %v253_v19 = vld [vmem:[#allocation4 + $0x68] sm:$0xff] }
0x1595   :  { %7741 = vrcp.f32 %v2701_v13  ;;  %v247_v13 = vld [vmem:[#allocation4 + $0x40] sm:$0xff] }
0x15a2   :  { %v7742_v20 = vpop.eup %7741 }
0x1604   :  { %v2707_v22 = vpop.permute.xlu1 %2706 }
0x1605   :  { %v2709_v23 = vmul.f32 %v7742_v20, %v2707_v22  ;;  %v252_v20 = vld [vmem:[#allocation4 + $0x60] sm:$0xff] }
0x1607   :  { %v2711_v24 = vrot.slane %v2709_v23, 4 }
0x1609   :  { %2712 = vrot.lane.b32.xlu0 %v2711_v24, %s7998_s26 }
0x167b   :  { %v2713_v25 = vpop.permute.xlu0 %2712 }
0x167c   :  { %7145 = vmatmul.mubr.msk.f32.vlgmr.msra.gmra.mxu1 %vm300_vm3, %v2713_v25  ;;  %7156 = vmatmul.mubr.msk.f32.vlgmr.msra.gmra.mxu0 %vm300_vm3, %v2713_v25 }
0x167d   :  { %7159 = vmatpush3.msra.mxu1 %v8450_v59  ;;  %7170 = vmatpush3.msra.mxu0 %v8532_v50 }
0x167e   :  { %7160 = vmatprep.subr.mxu1 %v7994_v1  ;;  %7171 = vmatprep.subr.mxu0 %v7994_v1 }
0x167f   :  { %7161 = vmatpush3.msra.mxu1 %v8456_v60  ;;  %7172 = vmatpush3.msra.mxu0 %v8538_v51 }
0x1680   :  { %7162 = vmatprep.subr.mxu1 %v7994_v1  ;;  %7173 = vmatprep.subr.mxu0 %v7994_v1 }
0x1681   :  { %7163 = vmatpush3.msra.mxu1 %v8462_v61  ;;  %7174 = vmatpush3.msra.mxu0 %v8544_v52 }
0x1682   :  { %7164 = vmatprep.subr.mxu1 %v7994_v1  ;;  %7175 = vmatprep.subr.mxu0 %v7994_v1 }
0x1683   :  { %7165 = vmatpush3.msra.mxu1 %v8549_v53  ;;  %7166 = vmatprep.mubr.msk.f32.mxu1 %vm7996_vm0, %v7994_v1 }
0x1684   :  { %7176 = vmatpush3.msra.mxu0 %v8554_v55  ;;  %7177 = vmatprep.mubr.msk.f32.mxu0 %vm7996_vm0, %v7994_v1 }
0x1685   :  { %7167 = vmatmul.mubr.msk.f32.vlgmr.msra.gmra.mxu1 %vm300_vm3, %v2713_v25  ;;  %7178 = vmatmul.mubr.msk.f32.vlgmr.msra.gmra.mxu0 %vm300_vm3, %v2713_v25 }
0x1686   :  { %7180 = vmatprep.subr.mxu1 %v7994_v1  ;;  %7191 = vmatprep.subr.mxu0 %v7994_v1 }
0x1687   :  { %7188 = vmatprep.mubr.msk.f32.mxu1 %vm7996_vm0, %v7994_v1  ;;  %7199 = vmatprep.mubr.msk.f32.mxu0 %vm7996_vm0, %v7994_v1 }
0x1688   :  { %7181 = vmatpush3.msra.mxu1 %v240_v4  ;;  %7192 = vmatpush3.msra.mxu0 %v245_v8  ;;  %v8715_v4 = vld [vmem:[#allocation6] sm:$0xff] }
0x1689   :  { %7182 = vmatprep.subr.mxu1 %v7994_v1  ;;  %7193 = vmatprep.subr.mxu0 %v7994_v1 }
0x168a   :  { %7183 = vmatpush3.msra.mxu1 %v239_v10  ;;  %7194 = vmatpush3.msra.mxu0 %v244_v11 }
0x168b   :  { %7184 = vmatprep.subr.mxu1 %v7994_v1  ;;  %7195 = vmatprep.subr.mxu0 %v7994_v1 }
0x168c   :  { %7185 = vmatpush3.msra.mxu1 %v238_v14  ;;  %7196 = vmatpush3.msra.mxu0 %v243_v15 }
0x168d   :  { %7186 = vmatprep.subr.mxu1 %v7994_v1  ;;  %7197 = vmatprep.subr.mxu0 %v7994_v1 }
0x168e   :  { %7187 = vmatpush3.msra.mxu1 %v237_v16  ;;  %7198 = vmatpush3.msra.mxu0 %v242_v17 }
0x168f   :  { %7202 = vmatprep.subr.mxu1 %v7994_v1  ;;  %7213 = vmatprep.subr.mxu0 %v7994_v1 }
0x173c   :  { %v2782_v59 = vpop.f32.mrf.mxu1  ;;  %v2856_v60 = vpop.f32.mrf.mxu0 }
0x173d   :  { %v2861_v44 = vrot.slane %v2856_v60, 2  ;;  %v2787_v50 = vrot.slane %v2782_v59, 2 }
0x173e   :  { %v7146_v61 = vpop.f32.mrf.mxu1  ;;  %v7157_v26 = vpop.f32.mrf.mxu0 }
0x173f   :  { %v2789_v51 = vadd.f32 %v2787_v50, %v8194_v46 }
0x1741   :  { %v6394_v52 = vmul.f32 -1.442695, %v2789_v51 }
0x1745   :  { %v2932_v28 = vpop.f32.mrf.mxu1  ;;  %v3008_v29 = vpop.f32.mrf.mxu0 }
0x1746   :  { %v2937_v31 = vrot.slane %v2932_v28, 2  ;;  %v3013_v45 = vrot.slane %v3008_v29, 2  ;;  %v6341_v28 = vld [vmem:[%s9341_s5] ss:$0 sm:$0xff] }
0x1747   :  { %v7168_v42 = vpop.f32.mrf.mxu1  ;;  %v7179_v43 = vpop.f32.mrf.mxu0 }
0x1748   :  { %2938 = vrot.lane.b32.xlu1 %v2937_v31, %s7997_s25 }
0x174c   :  { %2862 = vrot.lane.b32.xlu1 %v2861_v44, %s7998_s26 }
0x1750   :  { %3014 = vrot.lane.b32.xlu1 %v3013_v45, %s7999_s2 }
0x17ba   :  { %v2939_v47 = vpop.permute.xlu1 %2938 }
0x17bb   :  { %v2941_v48 = vadd.f32 %v2939_v47, %v8194_v46 }
0x17bd   :  { %7743 = vtanh.f32 %v2941_v48 }
0x17be   :  { %7745 = vpow2.f32 %v6394_v52  ;;  %v2863_v38 = vpop.permute.xlu1 %2862 }
0x17bf   :  { %v2865_v36 = vadd.f32 %v2863_v38, %v8194_v46 }
0x17c1   :  { %v6393_v39 = vmul.f32 -1.442695, %v2865_v36 }
0x17c2   :  { %v3015_v18 = vpop.permute.xlu1 %3014 }
0x17c3   :  { %v3017_v9 = vadd.f32 %v3015_v18, %v8194_v46  ;;  %v254_v46 = vld [vmem:[#allocation4 + $0x70] sm:$0xff] }
0x17c5   :  { %v6395_v6 = vmul.f32 -1.442695, %v3017_v9  ;;  %v8727_v9 = vld [vmem:[#allocation6 + $0x38] sm:$0xff] }
0x17ca   :  { %v7744_v49 = vpop.eup %7743 }
0x17cb   :  { %3036 = vrot.lane.b32.xlu0 %v7744_v49, %s7997_s25  ;;  %v7746_v53 = vpop.eup %7745 }
0x17cc   :  { %v3031_v55 = vadd.f32 1.0, %v7746_v53 }
0x17ce   :  { %7747 = vrcp.f32 %v3031_v55 }
0x17cf   :  { %7749 = vpow2.f32 %v6393_v39 }
0x17db   :  { %v7748_v56 = vpop.eup %7747 }
0x17dc   :  { %v7750_v40 = vpop.eup %7749 }
0x17dd   :  { %v3021_v41 = vadd.f32 1.0, %v7750_v40  ;;  %v8684_v40 = vld [vmem:[%s9344_s8 + $0x18] sm:$0xff] }
0x17df   :  { %7751 = vrcp.f32 %v3021_v41  ;;  %v8686_v41 = vld [vmem:[#allocation6 + $0x18] sm:$0xff] }
0x17ec   :  { %v7752_v62 = vpop.eup %7751 }
0x17ed   :  { %v3027_v0 = vmul.f32 %v7752_v62, %v3025_v63  ;;  %v8691_v62 = vld [vmem:[%s9344_s8 + $0x10] sm:$0xff] }
0x17ee   :  { %v8695_v63 = vld [vmem:[#allocation6 + $0x10] sm:$0xff] }
0x183d   :  { %v3037_v57 = vpop.permute.xlu0 %3036 }
0x183e   :  { %v3039_v58 = vmul.f32 %v7748_v56, %v3037_v57 }
0x1840   :  { %3041 = vrot.lane.b32.xlu0 %v3039_v58, %s7998_s26 }
0x18b2   :  { %v3042_v2 = vpop.permute.xlu0 %3041 }
0x18b3   :  { %v8635_v3 = vadd.f32 %v3042_v2, %v3027_v0  ;;  %v8702_v0 = vld [vmem:[%s9344_s8 + $0x8] sm:$0xff] }
0x18b4   :  { %v8704_v2 = vld [vmem:[#allocation6 + $0x8] sm:$0xff] }
0x18b5   :  { %7753 = vtanh.f32 %v8635_v3  ;;  %v3366_v58 = vrot.slane %v8635_v3, 6  ;;  %v8713_v3 = vld [vmem:[%s9344_s8] sm:$0xff] }
0x18b6   :  { %7755 = vpow2.f32 %v6395_v6  ;;  %v8729_v6 = vld [vmem:[#allocation6 + $0x58] sm:$0xff] }
0x18c2   :  { %v7754_v5 = vpop.eup %7753 }
0x18c3   :  { %3053 = vrot.lane.b32.xlu0 %v7754_v5, %s7997_s25  ;;  %v7756_v7 = vpop.eup %7755 }
0x18c4   :  { %v3048_v12 = vadd.f32 1.0, %v7756_v7 }
0x18c6   :  { %7757 = vrcp.f32 %v3048_v12  ;;  %v8733_v12 = vld [vmem:[#allocation6 + $0x30] sm:$0xff] }
0x18d3   :  { %v7758_v27 = vpop.eup %7757 }
0x1935   :  { %v3054_v30 = vpop.permute.xlu0 %3053 }
0x1936   :  { %v3056_v32 = vmul.f32 %v7758_v27, %v3054_v30  ;;  %v8735_v27 = vld [vmem:[#allocation6 + $0x50] sm:$0xff]  ;;  %v8741_v30 = vld [vmem:[#allocation6 + $0x28] sm:$0xff] }
0x1938   :  { %v3058_v21 = vrot.slane %v3056_v32, 6  ;;  %v8743_v32 = vld [vmem:[#allocation6 + $0x48] sm:$0xff] }
0x193a   :  { %3059 = vrot.lane.b32.xlu1 %v3058_v21, %s7998_s26  ;;  %v8749_v21 = vld [vmem:[#allocation6 + $0x20] sm:$0xff] }
0x19ac   :  { %v3060_v35 = vpop.permute.xlu1 %3059 }
0x19ad   :  { %7189 = vmatmul.mubr.msk.f32.vlgmr.msra.gmra.mxu1 %vm300_vm3, %v3060_v35  ;;  %7200 = vmatmul.mubr.msk.f32.vlgmr.msra.gmra.mxu0 %vm300_vm3, %v3060_v35 }
0x19ae   :  { %7203 = vmatpush3.msra.mxu1 %v250_v33  ;;  %7214 = vmatpush3.msra.mxu0 %v255_v34  ;;  %v8753_v33 = vld [vmem:[#allocation6 + $0x40] sm:$0xff]  ;;  %v8763_v34 = vld [vmem:[#allocation6 + $0x78] sm:$0xff] }
0x19af   :  { %7204 = vmatprep.subr.mxu1 %v7994_v1  ;;  %7215 = vmatprep.subr.mxu0 %v7994_v1 }
0x19b0   :  { %7205 = vmatpush3.msra.mxu1 %v249_v37  ;;  %7216 = vmatpush3.msra.mxu0 %v254_v46  ;;  %v8775_v37 = vld [vmem:[#allocation6 + $0x68] sm:$0xff]  ;;  %v8781_v46 = vld [vmem:[#allocation6 + $0x60] sm:$0xff] }
0x19b1   :  { %7206 = vmatprep.subr.mxu1 %v7994_v1  ;;  %7217 = vmatprep.subr.mxu0 %v7994_v1 }
0x19b2   :  { %7207 = vmatpush3.msra.mxu1 %v248_v54  ;;  %7218 = vmatpush3.msra.mxu0 %v253_v19  ;;  %v8809_v54 = vld [vmem:[%s9345_s9] ss:$0 sm:$0xff] }
0x19b3   :  { %7208 = vmatprep.subr.mxu1 %v7994_v1  ;;  %7219 = vmatprep.subr.mxu0 %v7994_v1 }
0x19b4   :  { %7209 = vmatpush3.msra.mxu1 %v247_v13  ;;  %7210 = vmatprep.mubr.msk.f32.mxu1 %vm7996_vm0, %v7994_v1 }
0x19b5   :  { %7220 = vmatpush3.msra.mxu0 %v252_v20  ;;  %7221 = vmatprep.mubr.msk.f32.mxu0 %vm7996_vm0, %v7994_v1 }
0x19b6   :  { %7211 = vmatmul.mubr.msk.f32.vlgmr.msra.gmra.mxu1 %vm300_vm3, %v3060_v35  ;;  %7222 = vmatmul.mubr.msk.f32.vlgmr.msra.gmra.mxu0 %vm300_vm3, %v3060_v35  ;;  %v8768_v35 = vld [vmem:[#allocation6 + $0x70] sm:$0xff] }
0x19b7   :  { %7224 = vmatprep.subr.mxu1 %v7994_v1  ;;  %7235 = vmatprep.subr.mxu0 %v7994_v1 }
0x19b8   :  { %7232 = vmatprep.mubr.msk.f32.mxu1 %vm7996_vm0, %v7994_v1  ;;  %7243 = vmatprep.mubr.msk.f32.mxu0 %vm7996_vm0, %v7994_v1 }
0x19b9   :  { %7225 = vmatpush3.msra.mxu1 %v8684_v40  ;;  %7236 = vmatpush3.msra.mxu0 %v8686_v41 }
0x19ba   :  { %7226 = vmatprep.subr.mxu1 %v7994_v1  ;;  %7237 = vmatprep.subr.mxu0 %v7994_v1 }
0x19bb   :  { %7227 = vmatpush3.msra.mxu1 %v8691_v62  ;;  %7238 = vmatpush3.msra.mxu0 %v8695_v63 }
0x19bc   :  { %7228 = vmatprep.subr.mxu1 %v7994_v1  ;;  %7239 = vmatprep.subr.mxu0 %v7994_v1 }
0x19bd   :  { %7229 = vmatpush3.msra.mxu1 %v8702_v0  ;;  %7240 = vmatpush3.msra.mxu0 %v8704_v2 }
0x19be   :  { %7230 = vmatprep.subr.mxu1 %v7994_v1  ;;  %7241 = vmatprep.subr.mxu0 %v7994_v1 }
0x19bf   :  { %7231 = vmatpush3.msra.mxu1 %v8713_v3  ;;  %7242 = vmatpush3.msra.mxu0 %v8715_v4 }
0x19c0   :  { %7246 = vmatprep.subr.mxu1 %v7994_v1  ;;  %7257 = vmatprep.subr.mxu0 %v7994_v1 }
0x1a6d   :  { %v3129_v22 = vpop.f32.mrf.mxu1  ;;  %v3200_v23 = vpop.f32.mrf.mxu0 }
0x1a6e   :  { %v3133_v43 = vadd.f32 %v6341_v28, %v3129_v22 }
0x1a6f   :  { %v7190_v24 = vpop.f32.mrf.mxu1  ;;  %v7201_v25 = vpop.f32.mrf.mxu0 }
0x1a70   :  { %v6401_v44 = vmul.f32 -1.442695, %v3133_v43 }
0x1a76   :  { %v3275_v59 = vpop.f32.mrf.mxu1  ;;  %v3350_v60 = vpop.f32.mrf.mxu0 }
0x1a77   :  { %3280 = vrot.lane.b32.xlu0 %v3275_v59, %s7997_s25 }
0x1a78   :  { %v7212_v61 = vpop.f32.mrf.mxu1  ;;  %v7223_v26 = vpop.f32.mrf.mxu0 }
0x1a7b   :  { %3205 = vrot.lane.b32.xlu0 %v3200_v23, %s7998_s26 }
0x1a7f   :  { %3355 = vrot.lane.b32.xlu0 %v3350_v60, %s7999_s2 }
0x1ae9   :  { %v3281_v29 = vpop.permute.xlu0 %3280 }
0x1aea   :  { %v3283_v31 = vadd.f32 %v6341_v28, %v3281_v29 }
0x1aec   :  { %7759 = vtanh.f32 %v3283_v31 }
0x1aed   :  { %7761 = vpow2.f32 %v6401_v44  ;;  %v3206_v51 = vpop.permute.xlu0 %3205 }
0x1aee   :  { %v3208_v52 = vadd.f32 %v6341_v28, %v3206_v51 }
0x1af0   :  { %v6400_v53 = vmul.f32 -1.442695, %v3208_v52 }
0x1af1   :  { %v3356_v10 = vpop.permute.xlu0 %3355 }
0x1af2   :  { %v3358_v11 = vadd.f32 %v6341_v28, %v3356_v10  ;;  %v8822_v28 = vld [vmem:[%s9343_s7] ss:$0 sm:$0xff] }
0x1af4   :  { %v6402_v14 = vmul.f32 -1.442695, %v3358_v11 }
0x1af9   :  { %v7760_v42 = vpop.eup %7759 }
0x1afa   :  { %3377 = vrot.lane.b32.xlu1 %v7760_v42, %s7997_s25  ;;  %v7762_v45 = vpop.eup %7761 }
0x1afb   :  { %v3372_v47 = vadd.f32 1.0, %v7762_v45 }
0x1afd   :  { %7763 = vrcp.f32 %v3372_v47 }
0x1afe   :  { %7765 = vpow2.f32 %v6400_v53 }
0x1b0a   :  { %v7764_v48 = vpop.eup %7763 }
0x1b0b   :  { %v7766_v55 = vpop.eup %7765 }
0x1b0c   :  { %v3362_v56 = vadd.f32 1.0, %v7766_v55 }
0x1b0e   :  { %7767 = vrcp.f32 %v3362_v56 }
0x1b1b   :  { %v7768_v57 = vpop.eup %7767 }
0x1b1c   :  { %v3368_v38 = vmul.f32 %v7768_v57, %v3366_v58 }
0x1b6c   :  { %v3378_v49 = vpop.permute.xlu1 %3377 }
0x1b6d   :  { %v3380_v50 = vmul.f32 %v7764_v48, %v3378_v49 }
0x1b6f   :  { %3382 = vrot.lane.b32.xlu1 %v3380_v50, %s7998_s26 }
0x1be1   :  { %v3383_v36 = vpop.permute.xlu1 %3382 }
0x1be2   :  { %v8678_v39 = vadd.f32 %v3383_v36, %v3368_v38 }
0x1be4   :  { %7769 = vtanh.f32 %v8678_v39 }
0x1be5   :  { %7771 = vpow2.f32 %v6402_v14 }
0x1bf1   :  { %v7770_v8 = vpop.eup %7769 }
0x1bf2   :  { %3394 = vrot.lane.b32.xlu1 %v7770_v8, %s7997_s25  ;;  %v7772_v15 = vpop.eup %7771 }
0x1bf3   :  { %v3389_v16 = vadd.f32 1.0, %v7772_v15 }
0x1bf5   :  { %7773 = vrcp.f32 %v3389_v16 }
0x1c02   :  { %v7774_v17 = vpop.eup %7773 }
0x1c64   :  { %v3395_v5 = vpop.permute.xlu1 %3394 }
0x1c65   :  { %v3397_v18 = vmul.f32 %v7774_v17, %v3395_v5 }
0x1c67   :  { %3399 = vrot.lane.b32.xlu0 %v3397_v18, %s7998_s26 }
0x1cd9   :  { %v3400_v7 = vpop.permute.xlu0 %3399 }
0x1cda   :  { %7233 = vmatmul.mubr.msk.f32.vlgmr.msra.gmra.mxu1 %vm300_vm3, %v3400_v7  ;;  %7244 = vmatmul.mubr.msk.f32.vlgmr.msra.gmra.mxu0 %vm300_vm3, %v3400_v7 }
0x1cdb   :  { %7247 = vmatpush3.msra.mxu1 %v8727_v9  ;;  %7258 = vmatpush3.msra.mxu0 %v8729_v6 }
0x1cdc   :  { %7248 = vmatprep.subr.mxu1 %v7994_v1  ;;  %7259 = vmatprep.subr.mxu0 %v7994_v1 }
0x1cdd   :  { %7249 = vmatpush3.msra.mxu1 %v8733_v12  ;;  %7260 = vmatpush3.msra.mxu0 %v8735_v27 }
0x1cde   :  { %7250 = vmatprep.subr.mxu1 %v7994_v1  ;;  %7261 = vmatprep.subr.mxu0 %v7994_v1 }
0x1cdf   :  { %7251 = vmatpush3.msra.mxu1 %v8741_v30  ;;  %7262 = vmatpush3.msra.mxu0 %v8743_v32 }
0x1ce0   :  { %7252 = vmatprep.subr.mxu1 %v7994_v1  ;;  %7263 = vmatprep.subr.mxu0 %v7994_v1 }
0x1ce1   :  { %7253 = vmatpush3.msra.mxu1 %v8749_v21  ;;  %7254 = vmatprep.mubr.msk.f32.mxu1 %vm7996_vm0, %v7994_v1 }
0x1ce2   :  { %7264 = vmatpush3.msra.mxu0 %v8753_v33  ;;  %7265 = vmatprep.mubr.msk.f32.mxu0 %vm7996_vm0, %v7994_v1 }
0x1ce3   :  { %7255 = vmatmul.mubr.msk.f32.vlgmr.msra.gmra.mxu1 %vm300_vm3, %v3400_v7  ;;  %7266 = vmatmul.mubr.msk.f32.vlgmr.msra.gmra.mxu0 %vm300_vm3, %v3400_v7 }
0x1ce4   :  { %7268 = vmatprep.subr.mxu1 %v7994_v1  ;;  %7276 = vmatprep.mubr.msk.f32.mxu1 %vm7996_vm0, %v7994_v1 }
0x1ce5   :  { %7269 = vmatpush3.msra.mxu1 %v8763_v34  ;;  %7279 = vmatprep.subr.mxu0 %v7994_v1 }
0x1ce6   :  { %7270 = vmatprep.subr.mxu1 %v7994_v1  ;;  %7280 = vmatpush3.msra.mxu0 %v8684_v40 }
0x1ce7   :  { %7271 = vmatpush3.msra.mxu1 %v8768_v35  ;;  %7281 = vmatprep.subr.mxu0 %v7994_v1 }
0x1ce8   :  { %7272 = vmatprep.subr.mxu1 %v7994_v1  ;;  %7282 = vmatpush3.msra.mxu0 %v8691_v62 }
0x1ce9   :  { %7273 = vmatpush3.msra.mxu1 %v8775_v37  ;;  %7283 = vmatprep.subr.mxu0 %v7994_v1 }
0x1cea   :  { %7274 = vmatprep.subr.mxu1 %v7994_v1  ;;  %7284 = vmatpush3.msra.mxu0 %v8702_v0 }
0x1ceb   :  { %7275 = vmatpush3.msra.mxu1 %v8781_v46  ;;  %7285 = vmatprep.subr.mxu0 %v7994_v1 }
0x1cec   :  { %7277 = vmatmul.mubr.msk.f32.vlgmr.msra.gmra.mxu1 %vm300_vm3, %v3400_v7  ;;  %7290 = vmatprep.subr.mxu1 %v7994_v1 }
0x1ced   :  { %7291 = vmatpush3.msra.mxu1 %v8686_v41  ;;  %7286 = vmatpush3.msra.mxu0 %v8713_v3 }
0x1cee   :  { %7292 = vmatprep.subr.mxu1 %v7994_v1  ;;  %7287 = vmatprep.mubr.msk.f32.mxu0 %vm7996_vm0, %v7994_v1 }
0x1cef   :  { %7293 = vmatpush3.msra.mxu1 %v8695_v63  ;;  %7298 = vmatprep.mubr.msk.f32.mxu1 %vm7996_vm0, %v7994_v1 }
0x1cf0   :  { %7294 = vmatprep.subr.mxu1 %v7994_v1  ;;  %7301 = vmatprep.subr.mxu0 %v7994_v1 }
0x1cf1   :  { %7295 = vmatpush3.msra.mxu1 %v8704_v2 }
0x1cf2   :  { %7296 = vmatprep.subr.mxu1 %v7994_v1 }
0x1cf3   :  { %7297 = vmatpush3.msra.mxu1 %v8715_v4 }
0x1cf4   :  { %7312 = vmatprep.subr.mxu1 %v7994_v1 }
0x1d9a   :  { %v3469_v19 = vpop.f32.mrf.mxu1  ;;  %v3539_v13 = vpop.f32.mrf.mxu0 }
0x1d9b   :  { %v3470_v20 = vadd.f32 %v8809_v54, %v3469_v19  ;;  %v3543_v43 = vadd.f32 %v8822_v28, %v3539_v13 }
0x1d9c   :  { %v7234_v22 = vpop.f32.mrf.mxu1  ;;  %v7245_v23 = vpop.f32.mrf.mxu0 }
0x1d9d   :  { %6323 = vst.msk [vmem:[%s9346_s10] sm:$0x3] %vm6322_vm4, %v3470_v20  ;;  %v6409_v44 = vmul.f32 -1.442695, %v3543_v43 }
0x1da3   :  { %v3610_v24 = vpop.f32.mrf.mxu1  ;;  %v3685_v25 = vpop.f32.mrf.mxu0 }
0x1da4   :  { %3690 = vrot.lane.b32.xlu1 %v3685_v25, %s7997_s25 }
0x1da5   :  { %v7256_v59 = vpop.f32.mrf.mxu1  ;;  %v7267_v60 = vpop.f32.mrf.mxu0 }
0x1da8   :  { %3615 = vrot.lane.b32.xlu1 %v3610_v24, %s7998_s26 }
0x1dac   :  { %v3760_v61 = vpop.f32.mrf.mxu1 }
0x1dad   :  { %3765 = vrot.lane.b32.xlu1 %v3760_v61, %s7999_s2 }
0x1dae   :  { %v7278_v26 = vpop.f32.mrf.mxu1 }
0x1e16   :  { %v3691_v29 = vpop.permute.xlu1 %3690 }
0x1e17   :  { %v3693_v31 = vadd.f32 %v8822_v28, %v3691_v29 }
0x1e19   :  { %7775 = vtanh.f32 %v3693_v31 }
0x1e1a   :  { %7777 = vpow2.f32 %v6409_v44  ;;  %v3616_v51 = vpop.permute.xlu1 %3615 }
0x1e1b   :  { %v3618_v52 = vadd.f32 %v8822_v28, %v3616_v51 }
0x1e1d   :  { %v6408_v53 = vmul.f32 -1.442695, %v3618_v52 }
0x1e1f   :  { %v3766_v10 = vpop.permute.xlu1 %3765 }
0x1e20   :  { %v3768_v11 = vadd.f32 %v8822_v28, %v3766_v10 }
0x1e22   :  { %v6410_v14 = vmul.f32 -1.442695, %v3768_v11 }
0x1e26   :  { %v7776_v42 = vpop.eup %7775 }
0x1e27   :  { %3784 = vrot.lane.b32.xlu0 %v7776_v42, %s7997_s25  ;;  %v7778_v45 = vpop.eup %7777 }
0x1e28   :  { %v3779_v47 = vadd.f32 1.0, %v7778_v45 }
0x1e2a   :  { %7779 = vrcp.f32 %v3779_v47 }
0x1e2b   :  { %7781 = vpow2.f32 %v6408_v53 }
0x1e37   :  { %v7780_v48 = vpop.eup %7779 }
0x1e38   :  { %v7782_v55 = vpop.eup %7781 }
0x1e39   :  { %v3772_v56 = vadd.f32 1.0, %v7782_v55 }
0x1e3b   :  { %7783 = vrcp.f32 %v3772_v56 }
0x1e48   :  { %v7784_v57 = vpop.eup %7783 }
0x1e49   :  { %v3775_v58 = vmul.f32 %v7784_v57, %v8678_v39 }
0x1e99   :  { %v3785_v49 = vpop.permute.xlu0 %3784 }
0x1e9a   :  { %v3787_v50 = vmul.f32 %v7780_v48, %v3785_v49 }
0x1e9c   :  { %3789 = vrot.lane.b32.xlu0 %v3787_v50, %s7998_s26 }
0x1f0e   :  { %v3790_v38 = vpop.permute.xlu0 %3789 }
0x1f0f   :  { %v8830_v36 = vadd.f32 %v3790_v38, %v3775_v58 }
0x1f11   :  { %7785 = vtanh.f32 %v8830_v36 }
0x1f12   :  { %7787 = vpow2.f32 %v6410_v14 }
0x1f1e   :  { %v7786_v8 = vpop.eup %7785 }
0x1f1f   :  { %3801 = vrot.lane.b32.xlu0 %v7786_v8, %s7997_s25  ;;  %v7788_v15 = vpop.eup %7787 }
0x1f20   :  { %v3796_v16 = vadd.f32 1.0, %v7788_v15 }
0x1f22   :  { %7789 = vrcp.f32 %v3796_v16 }
0x1f2f   :  { %v7790_v17 = vpop.eup %7789 }
0x1f91   :  { %v3802_v5 = vpop.permute.xlu0 %3801 }
0x1f92   :  { %v3804_v18 = vmul.f32 %v7790_v17, %v3802_v5 }
0x1f94   :  { %3806 = vrot.lane.b32.xlu1 %v3804_v18, %s7998_s26 }
0x2006   :  { %v3807_v39 = vpop.permute.xlu1 %3806 }
0x2007   :  { %7288 = vmatmul.mubr.msk.f32.vlgmr.msra.gmra.mxu0 %vm300_vm3, %v3807_v39  ;;  %7299 = vmatmul.mubr.msk.f32.vlgmr.msra.gmra.mxu1 %vm300_vm3, %v3807_v39 }
0x2008   :  { %7302 = vmatpush3.msra.mxu0 %v8727_v9  ;;  %7313 = vmatpush3.msra.mxu1 %v8729_v6 }
0x2009   :  { %7303 = vmatprep.subr.mxu0 %v7994_v1  ;;  %7314 = vmatprep.subr.mxu1 %v7994_v1 }
0x200a   :  { %7304 = vmatpush3.msra.mxu0 %v8733_v12  ;;  %7315 = vmatpush3.msra.mxu1 %v8735_v27 }
0x200b   :  { %7305 = vmatprep.subr.mxu0 %v7994_v1  ;;  %7316 = vmatprep.subr.mxu1 %v7994_v1 }
0x200c   :  { %7306 = vmatpush3.msra.mxu0 %v8741_v30  ;;  %7317 = vmatpush3.msra.mxu1 %v8743_v32 }
0x200d   :  { %7307 = vmatprep.subr.mxu0 %v7994_v1  ;;  %7318 = vmatprep.subr.mxu1 %v7994_v1 }
0x200e   :  { %7308 = vmatpush3.msra.mxu0 %v8749_v21  ;;  %7309 = vmatprep.mubr.msk.f32.mxu0 %vm7996_vm0, %v7994_v1 }
0x200f   :  { %7319 = vmatpush3.msra.mxu1 %v8753_v33  ;;  %7320 = vmatprep.mubr.msk.f32.mxu1 %vm7996_vm0, %v7994_v1 }
0x2010   :  { %7310 = vmatmul.mubr.msk.f32.vlgmr.msra.gmra.mxu0 %vm300_vm3, %v3807_v39  ;;  %7321 = vmatmul.mubr.msk.f32.vlgmr.msra.gmra.mxu1 %vm300_vm3, %v3807_v39 }
0x2011   :  { %7323 = vmatprep.subr.mxu0 %v7994_v1  ;;  %7331 = vmatprep.mubr.msk.f32.mxu0 %vm7996_vm0, %v7994_v1 }
0x2012   :  { %7324 = vmatpush3.msra.mxu0 %v8763_v34  ;;  %7334 = vmatprep.subr.mxu1 %v7994_v1 }
0x2013   :  { %7325 = vmatprep.subr.mxu0 %v7994_v1  ;;  %7335 = vmatpush3.msra.mxu1 %v8684_v40 }
0x2014   :  { %7326 = vmatpush3.msra.mxu0 %v8768_v35  ;;  %7336 = vmatprep.subr.mxu1 %v7994_v1 }
0x2015   :  { %7327 = vmatprep.subr.mxu0 %v7994_v1  ;;  %7337 = vmatpush3.msra.mxu1 %v8691_v62 }
0x2016   :  { %7328 = vmatpush3.msra.mxu0 %v8775_v37  ;;  %7338 = vmatprep.subr.mxu1 %v7994_v1 }
0x2017   :  { %7329 = vmatprep.subr.mxu0 %v7994_v1  ;;  %7339 = vmatpush3.msra.mxu1 %v8702_v0 }
0x2018   :  { %7330 = vmatpush3.msra.mxu0 %v8781_v46  ;;  %7340 = vmatprep.subr.mxu1 %v7994_v1 }
0x2019   :  { %7332 = vmatmul.mubr.msk.f32.vlgmr.msra.gmra.mxu0 %vm300_vm3, %v3807_v39  ;;  %7345 = vmatprep.subr.mxu0 %v7994_v1 }
0x201a   :  { %7346 = vmatpush3.msra.mxu0 %v8686_v41  ;;  %7341 = vmatpush3.msra.mxu1 %v8713_v3 }
0x201b   :  { %7347 = vmatprep.subr.mxu0 %v7994_v1  ;;  %7342 = vmatprep.mubr.msk.f32.mxu1 %vm7996_vm0, %v7994_v1 }
0x201c   :  { %7348 = vmatpush3.msra.mxu0 %v8695_v63  ;;  %7353 = vmatprep.mubr.msk.f32.mxu0 %vm7996_vm0, %v7994_v1 }
0x201d   :  { %7349 = vmatprep.subr.mxu0 %v7994_v1  ;;  %7356 = vmatprep.subr.mxu1 %v7994_v1 }
0x201e   :  { %7350 = vmatpush3.msra.mxu0 %v8704_v2 }
0x201f   :  { %7351 = vmatprep.subr.mxu0 %v7994_v1 }
0x2020   :  { %7352 = vmatpush3.msra.mxu0 %v8715_v4 }
0x2021   :  { %7367 = vmatprep.subr.mxu0 %v7994_v1 }
0x20c7   :  { %v3876_v7 = vpop.f32.mrf.mxu0  ;;  %v3946_v19 = vpop.f32.mrf.mxu1 }
0x20c8   :  { %v3877_v13 = vadd.f32 %v8809_v54, %v3876_v7  ;;  %v3950_v42 = vadd.f32 %v8822_v28, %v3946_v19 }
0x20c9   :  { %v7289_v20 = vpop.f32.mrf.mxu0  ;;  %v7300_v22 = vpop.f32.mrf.mxu1 }
0x20ca   :  { %6324 = vst.msk [vmem:[%s9346_s10 + $0x2] sm:$0x3] %vm6322_vm4, %v3877_v13  ;;  %v6417_v43 = vmul.f32 -1.442695, %v3950_v42 }
0x20d0   :  { %v4017_v23 = vpop.f32.mrf.mxu0  ;;  %v4092_v24 = vpop.f32.mrf.mxu1 }
0x20d1   :  { %4097 = vrot.lane.b32.xlu0 %v4092_v24, %s7997_s25 }
0x20d2   :  { %v7311_v25 = vpop.f32.mrf.mxu0  ;;  %v7322_v59 = vpop.f32.mrf.mxu1 }
0x20d5   :  { %4022 = vrot.lane.b32.xlu0 %v4017_v23, %s7998_s26 }
0x20d9   :  { %v4167_v60 = vpop.f32.mrf.mxu0 }
0x20da   :  { %4172 = vrot.lane.b32.xlu0 %v4167_v60, %s7999_s2 }
0x20db   :  { %v7333_v61 = vpop.f32.mrf.mxu0 }
0x2143   :  { %v4098_v26 = vpop.permute.xlu0 %4097 }
0x2144   :  { %v4100_v29 = vadd.f32 %v8822_v28, %v4098_v26 }
0x2146   :  { %7791 = vtanh.f32 %v4100_v29 }
0x2147   :  { %7793 = vpow2.f32 %v6417_v43  ;;  %v4023_v50 = vpop.permute.xlu0 %4022 }
0x2148   :  { %v4025_v51 = vadd.f32 %v8822_v28, %v4023_v50 }
0x214a   :  { %v6416_v52 = vmul.f32 -1.442695, %v4025_v51 }
0x214c   :  { %v4173_v10 = vpop.permute.xlu0 %4172 }
0x214d   :  { %v4175_v11 = vadd.f32 %v8822_v28, %v4173_v10 }
0x214f   :  { %v6418_v14 = vmul.f32 -1.442695, %v4175_v11 }
0x2153   :  { %v7792_v31 = vpop.eup %7791 }
0x2154   :  { %4191 = vrot.lane.b32.xlu1 %v7792_v31, %s7997_s25  ;;  %v7794_v44 = vpop.eup %7793 }
0x2155   :  { %v4186_v45 = vadd.f32 1.0, %v7794_v44 }
0x2157   :  { %7795 = vrcp.f32 %v4186_v45 }
0x2158   :  { %7797 = vpow2.f32 %v6416_v52 }
0x2164   :  { %v7796_v47 = vpop.eup %7795 }
0x2165   :  { %v7798_v53 = vpop.eup %7797 }
0x2166   :  { %v4179_v55 = vadd.f32 1.0, %v7798_v53 }
0x2168   :  { %7799 = vrcp.f32 %v4179_v55 }
0x2175   :  { %v7800_v56 = vpop.eup %7799 }
0x2176   :  { %v4182_v57 = vmul.f32 %v7800_v56, %v8830_v36 }
0x21c6   :  { %v4192_v48 = vpop.permute.xlu1 %4191 }
0x21c7   :  { %v4194_v49 = vmul.f32 %v7796_v47, %v4192_v48 }
0x21c9   :  { %4196 = vrot.lane.b32.xlu1 %v4194_v49, %s7998_s26 }
0x223b   :  { %v4197_v58 = vpop.permute.xlu1 %4196 }
0x223c   :  { %v8905_v38 = vadd.f32 %v4197_v58, %v4182_v57 }
0x223e   :  { %7801 = vtanh.f32 %v8905_v38 }
0x223f   :  { %7803 = vpow2.f32 %v6418_v14 }
0x224b   :  { %v7802_v8 = vpop.eup %7801 }
0x224c   :  { %4208 = vrot.lane.b32.xlu1 %v7802_v8, %s7997_s25  ;;  %v7804_v15 = vpop.eup %7803 }
0x224d   :  { %v4203_v16 = vadd.f32 1.0, %v7804_v15 }
0x224f   :  { %7805 = vrcp.f32 %v4203_v16 }
0x225c   :  { %v7806_v17 = vpop.eup %7805 }
0x22be   :  { %v4209_v5 = vpop.permute.xlu1 %4208 }
0x22bf   :  { %v4211_v18 = vmul.f32 %v7806_v17, %v4209_v5 }
0x22c1   :  { %4213 = vrot.lane.b32.xlu0 %v4211_v18, %s7998_s26 }
0x2333   :  { %v4214_v36 = vpop.permute.xlu0 %4213 }
0x2334   :  { %7343 = vmatmul.mubr.msk.f32.vlgmr.msra.gmra.mxu1 %vm300_vm3, %v4214_v36  ;;  %7354 = vmatmul.mubr.msk.f32.vlgmr.msra.gmra.mxu0 %vm300_vm3, %v4214_v36 }
0x2335   :  { %7357 = vmatpush3.msra.mxu1 %v8727_v9  ;;  %7368 = vmatpush3.msra.mxu0 %v8729_v6 }
0x2336   :  { %7358 = vmatprep.subr.mxu1 %v7994_v1  ;;  %7369 = vmatprep.subr.mxu0 %v7994_v1 }
0x2337   :  { %7359 = vmatpush3.msra.mxu1 %v8733_v12  ;;  %7370 = vmatpush3.msra.mxu0 %v8735_v27 }
0x2338   :  { %7360 = vmatprep.subr.mxu1 %v7994_v1  ;;  %7371 = vmatprep.subr.mxu0 %v7994_v1 }
0x2339   :  { %7361 = vmatpush3.msra.mxu1 %v8741_v30  ;;  %7372 = vmatpush3.msra.mxu0 %v8743_v32 }
0x233a   :  { %7362 = vmatprep.subr.mxu1 %v7994_v1  ;;  %7373 = vmatprep.subr.mxu0 %v7994_v1 }
0x233b   :  { %7363 = vmatpush3.msra.mxu1 %v8749_v21  ;;  %7364 = vmatprep.mubr.msk.f32.mxu1 %vm7996_vm0, %v7994_v1 }
0x233c   :  { %7374 = vmatpush3.msra.mxu0 %v8753_v33  ;;  %7375 = vmatprep.mubr.msk.f32.mxu0 %vm7996_vm0, %v7994_v1 }
0x233d   :  { %7365 = vmatmul.mubr.msk.f32.vlgmr.msra.gmra.mxu1 %vm300_vm3, %v4214_v36  ;;  %7376 = vmatmul.mubr.msk.f32.vlgmr.msra.gmra.mxu0 %vm300_vm3, %v4214_v36 }
0x233e   :  { %7378 = vmatprep.subr.mxu1 %v7994_v1  ;;  %7386 = vmatprep.mubr.msk.f32.mxu1 %vm7996_vm0, %v7994_v1 }
0x233f   :  { %7379 = vmatpush3.msra.mxu1 %v8763_v34  ;;  %7389 = vmatprep.subr.mxu0 %v7994_v1 }
0x2340   :  { %7380 = vmatprep.subr.mxu1 %v7994_v1  ;;  %7390 = vmatpush3.msra.mxu0 %v8684_v40 }
0x2341   :  { %7381 = vmatpush3.msra.mxu1 %v8768_v35  ;;  %7391 = vmatprep.subr.mxu0 %v7994_v1 }
0x2342   :  { %7382 = vmatprep.subr.mxu1 %v7994_v1  ;;  %7392 = vmatpush3.msra.mxu0 %v8691_v62 }
0x2343   :  { %7383 = vmatpush3.msra.mxu1 %v8775_v37  ;;  %7393 = vmatprep.subr.mxu0 %v7994_v1 }
0x2344   :  { %7384 = vmatprep.subr.mxu1 %v7994_v1  ;;  %7394 = vmatpush3.msra.mxu0 %v8702_v0 }
0x2345   :  { %7385 = vmatpush3.msra.mxu1 %v8781_v46  ;;  %7395 = vmatprep.subr.mxu0 %v7994_v1 }
0x2346   :  { %7387 = vmatmul.mubr.msk.f32.vlgmr.msra.gmra.mxu1 %vm300_vm3, %v4214_v36  ;;  %7400 = vmatprep.subr.mxu1 %v7994_v1 }
0x2347   :  { %7401 = vmatpush3.msra.mxu1 %v8686_v41  ;;  %7396 = vmatpush3.msra.mxu0 %v8713_v3 }
0x2348   :  { %7402 = vmatprep.subr.mxu1 %v7994_v1  ;;  %7397 = vmatprep.mubr.msk.f32.mxu0 %vm7996_vm0, %v7994_v1 }
0x2349   :  { %7403 = vmatpush3.msra.mxu1 %v8695_v63  ;;  %7408 = vmatprep.mubr.msk.f32.mxu1 %vm7996_vm0, %v7994_v1 }
0x234a   :  { %7404 = vmatprep.subr.mxu1 %v7994_v1  ;;  %7411 = vmatprep.subr.mxu0 %v7994_v1 }
0x234b   :  { %7405 = vmatpush3.msra.mxu1 %v8704_v2 }
0x234c   :  { %7406 = vmatprep.subr.mxu1 %v7994_v1 }
0x234d   :  { %7407 = vmatpush3.msra.mxu1 %v8715_v4 }
0x234e   :  { %7422 = vmatprep.subr.mxu1 %v7994_v1 }
0x23f4   :  { %v4283_v39 = vpop.f32.mrf.mxu1  ;;  %v4353_v7 = vpop.f32.mrf.mxu0 }
0x23f5   :  { %v4284_v19 = vadd.f32 %v8809_v54, %v4283_v39  ;;  %v4357_v31 = vadd.f32 %v8822_v28, %v4353_v7 }
0x23f6   :  { %v7344_v13 = vpop.f32.mrf.mxu1  ;;  %v7355_v20 = vpop.f32.mrf.mxu0 }
0x23f7   :  { %6325 = vst.msk [vmem:[%s9346_s10 + $0x4] sm:$0x3] %vm6322_vm4, %v4284_v19  ;;  %v6425_v42 = vmul.f32 -1.442695, %v4357_v31 }
0x23fd   :  { %v4424_v22 = vpop.f32.mrf.mxu1  ;;  %v4499_v23 = vpop.f32.mrf.mxu0 }
0x23fe   :  { %4504 = vrot.lane.b32.xlu1 %v4499_v23, %s7997_s25 }
0x23ff   :  { %v7366_v24 = vpop.f32.mrf.mxu1  ;;  %v7377_v25 = vpop.f32.mrf.mxu0 }
0x2402   :  { %4429 = vrot.lane.b32.xlu1 %v4424_v22, %s7998_s26 }
0x2406   :  { %v4574_v59 = vpop.f32.mrf.mxu1 }
0x2407   :  { %4579 = vrot.lane.b32.xlu1 %v4574_v59, %s7999_s2 }
0x2408   :  { %v7388_v60 = vpop.f32.mrf.mxu1 }
0x2470   :  { %v4505_v61 = vpop.permute.xlu1 %4504 }
0x2471   :  { %v4507_v26 = vadd.f32 %v8822_v28, %v4505_v61 }
0x2473   :  { %7807 = vtanh.f32 %v4507_v26 }
0x2474   :  { %7809 = vpow2.f32 %v6425_v42  ;;  %v4430_v49 = vpop.permute.xlu1 %4429 }
0x2475   :  { %v4432_v50 = vadd.f32 %v8822_v28, %v4430_v49 }
0x2477   :  { %v6424_v51 = vmul.f32 -1.442695, %v4432_v50 }
0x2479   :  { %v4580_v10 = vpop.permute.xlu1 %4579 }
0x247a   :  { %v4582_v11 = vadd.f32 %v8822_v28, %v4580_v10 }
0x247c   :  { %v6426_v14 = vmul.f32 -1.442695, %v4582_v11 }
0x2480   :  { %v7808_v29 = vpop.eup %7807 }
0x2481   :  { %4598 = vrot.lane.b32.xlu0 %v7808_v29, %s7997_s25  ;;  %v7810_v43 = vpop.eup %7809 }
0x2482   :  { %v4593_v44 = vadd.f32 1.0, %v7810_v43 }
0x2484   :  { %7811 = vrcp.f32 %v4593_v44 }
0x2485   :  { %7813 = vpow2.f32 %v6424_v51 }
0x2491   :  { %v7812_v45 = vpop.eup %7811 }
0x2492   :  { %v7814_v52 = vpop.eup %7813 }
0x2493   :  { %v4586_v53 = vadd.f32 1.0, %v7814_v52 }
0x2495   :  { %7815 = vrcp.f32 %v4586_v53 }
0x24a2   :  { %v7816_v55 = vpop.eup %7815 }
0x24a3   :  { %v4589_v56 = vmul.f32 %v7816_v55, %v8905_v38 }
0x24f3   :  { %v4599_v47 = vpop.permute.xlu0 %4598 }
0x24f4   :  { %v4601_v48 = vmul.f32 %v7812_v45, %v4599_v47 }
0x24f6   :  { %4603 = vrot.lane.b32.xlu0 %v4601_v48, %s7998_s26 }
0x2568   :  { %v4604_v57 = vpop.permute.xlu0 %4603 }
0x2569   :  { %v8980_v58 = vadd.f32 %v4604_v57, %v4589_v56 }
0x256b   :  { %7817 = vtanh.f32 %v8980_v58 }
0x256c   :  { %7819 = vpow2.f32 %v6426_v14 }
0x2578   :  { %v7818_v8 = vpop.eup %7817 }
0x2579   :  { %4615 = vrot.lane.b32.xlu0 %v7818_v8, %s7997_s25  ;;  %v7820_v15 = vpop.eup %7819 }
0x257a   :  { %v4610_v16 = vadd.f32 1.0, %v7820_v15 }
0x257c   :  { %7821 = vrcp.f32 %v4610_v16 }
0x2589   :  { %v7822_v17 = vpop.eup %7821 }
0x25eb   :  { %v4616_v5 = vpop.permute.xlu0 %4615 }
0x25ec   :  { %v4618_v18 = vmul.f32 %v7822_v17, %v4616_v5 }
0x25ee   :  { %4620 = vrot.lane.b32.xlu1 %v4618_v18, %s7998_s26 }
0x2660   :  { %v4621_v38 = vpop.permute.xlu1 %4620 }
0x2661   :  { %7398 = vmatmul.mubr.msk.f32.vlgmr.msra.gmra.mxu0 %vm300_vm3, %v4621_v38  ;;  %7409 = vmatmul.mubr.msk.f32.vlgmr.msra.gmra.mxu1 %vm300_vm3, %v4621_v38 }
0x2662   :  { %7412 = vmatpush3.msra.mxu0 %v8727_v9  ;;  %7423 = vmatpush3.msra.mxu1 %v8729_v6 }
0x2663   :  { %7413 = vmatprep.subr.mxu0 %v7994_v1  ;;  %7424 = vmatprep.subr.mxu1 %v7994_v1 }
0x2664   :  { %7414 = vmatpush3.msra.mxu0 %v8733_v12  ;;  %7425 = vmatpush3.msra.mxu1 %v8735_v27 }
0x2665   :  { %7415 = vmatprep.subr.mxu0 %v7994_v1  ;;  %7426 = vmatprep.subr.mxu1 %v7994_v1 }
0x2666   :  { %7416 = vmatpush3.msra.mxu0 %v8741_v30  ;;  %7427 = vmatpush3.msra.mxu1 %v8743_v32 }
0x2667   :  { %7417 = vmatprep.subr.mxu0 %v7994_v1  ;;  %7428 = vmatprep.subr.mxu1 %v7994_v1 }
0x2668   :  { %7418 = vmatpush3.msra.mxu0 %v8749_v21  ;;  %7419 = vmatprep.mubr.msk.f32.mxu0 %vm7996_vm0, %v7994_v1 }
0x2669   :  { %7429 = vmatpush3.msra.mxu1 %v8753_v33  ;;  %7430 = vmatprep.mubr.msk.f32.mxu1 %vm7996_vm0, %v7994_v1 }
0x266a   :  { %7420 = vmatmul.mubr.msk.f32.vlgmr.msra.gmra.mxu0 %vm300_vm3, %v4621_v38  ;;  %7431 = vmatmul.mubr.msk.f32.vlgmr.msra.gmra.mxu1 %vm300_vm3, %v4621_v38 }
0x266b   :  { %7433 = vmatprep.subr.mxu0 %v7994_v1  ;;  %7441 = vmatprep.mubr.msk.f32.mxu0 %vm7996_vm0, %v7994_v1 }
0x266c   :  { %7434 = vmatpush3.msra.mxu0 %v8763_v34  ;;  %7444 = vmatprep.subr.mxu1 %v7994_v1 }
0x266d   :  { %7435 = vmatprep.subr.mxu0 %v7994_v1  ;;  %7445 = vmatpush3.msra.mxu1 %v8684_v40 }
0x266e   :  { %7436 = vmatpush3.msra.mxu0 %v8768_v35  ;;  %7446 = vmatprep.subr.mxu1 %v7994_v1 }
0x266f   :  { %7437 = vmatprep.subr.mxu0 %v7994_v1  ;;  %7447 = vmatpush3.msra.mxu1 %v8691_v62 }
0x2670   :  { %7438 = vmatpush3.msra.mxu0 %v8775_v37  ;;  %7448 = vmatprep.subr.mxu1 %v7994_v1 }
0x2671   :  { %7439 = vmatprep.subr.mxu0 %v7994_v1  ;;  %7449 = vmatpush3.msra.mxu1 %v8702_v0 }
0x2672   :  { %7440 = vmatpush3.msra.mxu0 %v8781_v46  ;;  %7450 = vmatprep.subr.mxu1 %v7994_v1 }
0x2673   :  { %7442 = vmatmul.mubr.msk.f32.vlgmr.msra.gmra.mxu0 %vm300_vm3, %v4621_v38  ;;  %7455 = vmatprep.subr.mxu0 %v7994_v1 }
0x2674   :  { %7456 = vmatpush3.msra.mxu0 %v8686_v41  ;;  %7451 = vmatpush3.msra.mxu1 %v8713_v3 }
0x2675   :  { %7457 = vmatprep.subr.mxu0 %v7994_v1  ;;  %7452 = vmatprep.mubr.msk.f32.mxu1 %vm7996_vm0, %v7994_v1 }
0x2676   :  { %7458 = vmatpush3.msra.mxu0 %v8695_v63  ;;  %7463 = vmatprep.mubr.msk.f32.mxu0 %vm7996_vm0, %v7994_v1 }
0x2677   :  { %7459 = vmatprep.subr.mxu0 %v7994_v1  ;;  %7466 = vmatprep.subr.mxu1 %v7994_v1 }
0x2678   :  { %7460 = vmatpush3.msra.mxu0 %v8704_v2 }
0x2679   :  { %7461 = vmatprep.subr.mxu0 %v7994_v1 }
0x267a   :  { %7462 = vmatpush3.msra.mxu0 %v8715_v4 }
0x267b   :  { %7477 = vmatprep.subr.mxu0 %v7994_v1 }
0x2721   :  { %v4690_v41 = vpop.f32.mrf.mxu0  ;;  %v4760_v36 = vpop.f32.mrf.mxu1 }
0x2722   :  { %v4691_v39 = vadd.f32 %v8809_v54, %v4690_v41  ;;  %v4764_v60 = vadd.f32 %v8822_v28, %v4760_v36 }
0x2723   :  { %v7399_v63 = vpop.f32.mrf.mxu0  ;;  %v7410_v7 = vpop.f32.mrf.mxu1 }
0x2724   :  { %6326 = vst.msk [vmem:[%s9346_s10 + $0x6] sm:$0x3] %vm6322_vm4, %v4691_v39  ;;  %v6433_v61 = vmul.f32 -1.442695, %v4764_v60 }
0x272a   :  { %v4831_v19 = vpop.f32.mrf.mxu0  ;;  %v4906_v13 = vpop.f32.mrf.mxu1 }
0x272b   :  { %4911 = vrot.lane.b32.xlu0 %v4906_v13, %s7997_s25 }
0x272c   :  { %v7421_v2 = vpop.f32.mrf.mxu0  ;;  %v7432_v20 = vpop.f32.mrf.mxu1 }
0x272f   :  { %4836 = vrot.lane.b32.xlu0 %v4831_v19, %s7998_s26 }
0x2733   :  { %v4981_v22 = vpop.f32.mrf.mxu0 }
0x2734   :  { %4986 = vrot.lane.b32.xlu0 %v4981_v22, %s7999_s2 }
0x2735   :  { %v7443_v23 = vpop.f32.mrf.mxu0 }
0x279d   :  { %v4912_v24 = vpop.permute.xlu0 %4911 }
0x279e   :  { %v4914_v25 = vadd.f32 %v8822_v28, %v4912_v24 }
0x27a0   :  { %7823 = vtanh.f32 %v4914_v25 }
0x27a1   :  { %7825 = vpow2.f32 %v6433_v61  ;;  %v4837_v44 = vpop.permute.xlu0 %4836 }
0x27a2   :  { %v4839_v45 = vadd.f32 %v8822_v28, %v4837_v44  ;;  %v9144_v44 = vld [vmem:[#allocation6 + $0x38] sm:$0xff] }
0x27a4   :  { %v6432_v47 = vmul.f32 -1.442695, %v4839_v45  ;;  %v9152_v45 = vld [vmem:[#allocation6 + $0x30] sm:$0xff] }
0x27a6   :  { %v4987_v56 = vpop.permute.xlu0 %4986 }
0x27a7   :  { %v4989_v57 = vadd.f32 %v8822_v28, %v4987_v56  ;;  %v9202_v56 = vld [vmem:[%s9344_s8 + $0x10] sm:$0xff] }
0x27a9   :  { %v6434_v8 = vmul.f32 -1.442695, %v4989_v57  ;;  %v9205_v57 = vld [vmem:[#allocation6 + $0x68] sm:$0xff] }
0x27ad   :  { %v7824_v59 = vpop.eup %7823 }
0x27ae   :  { %5005 = vrot.lane.b32.xlu1 %v7824_v59, %s7997_s25  ;;  %v7826_v26 = vpop.eup %7825 }
0x27af   :  { %v5000_v29 = vadd.f32 1.0, %v7826_v26 }
0x27b1   :  { %7827 = vrcp.f32 %v5000_v29 }
0x27b2   :  { %7829 = vpow2.f32 %v6432_v47  ;;  %v9155_v47 = vld [vmem:[#allocation6 + $0x50] sm:$0xff] }
0x27be   :  { %v7828_v31 = vpop.eup %7827 }
0x27bf   :  { %v7830_v48 = vpop.eup %7829 }
0x27c0   :  { %v4993_v49 = vadd.f32 1.0, %v7830_v48  ;;  %v9160_v48 = vld [vmem:[#allocation6 + $0x28] sm:$0xff] }
0x27c2   :  { %7831 = vrcp.f32 %v4993_v49  ;;  %v9163_v49 = vld [vmem:[#allocation6 + $0x48] sm:$0xff] }
0x27cf   :  { %v7832_v50 = vpop.eup %7831 }
0x27d0   :  { %v4996_v51 = vmul.f32 %v7832_v50, %v8980_v58  ;;  %v9168_v50 = vld [vmem:[#allocation6 + $0x20] sm:$0xff] }
0x2820   :  { %v5006_v42 = vpop.permute.xlu1 %5005 }
0x2821   :  { %v5008_v43 = vmul.f32 %v7828_v31, %v5006_v42 }
0x2823   :  { %5010 = vrot.lane.b32.xlu1 %v5008_v43, %s7998_s26 }
0x2895   :  { %v5011_v52 = vpop.permute.xlu1 %5010 }
0x2896   :  { %v9055_v53 = vadd.f32 %v5011_v52, %v4996_v51  ;;  %v9173_v51 = vld [vmem:[#allocation6 + $0x40] sm:$0xff]  ;;  %v9183_v52 = vld [vmem:[#allocation6 + $0x78] sm:$0xff] }
0x2898   :  { %7833 = vtanh.f32 %v9055_v53 }
0x2899   :  { %7835 = vpow2.f32 %v6434_v8  ;;  %v9213_v8 = vld [vmem:[%s9344_s8 + $0x8] sm:$0xff] }
0x28a5   :  { %v7834_v55 = vpop.eup %7833 }
0x28a6   :  { %5022 = vrot.lane.b32.xlu1 %v7834_v55, %s7997_s25  ;;  %v7836_v10 = vpop.eup %7835  ;;  %v9194_v55 = vld [vmem:[#allocation6 + $0x70] sm:$0xff] }
0x28a7   :  { %v5017_v11 = vadd.f32 1.0, %v7836_v10  ;;  %v9216_v10 = vld [vmem:[#allocation6 + $0x60] sm:$0xff] }
0x28a9   :  { %7837 = vrcp.f32 %v5017_v11  ;;  %v9226_v11 = vld [vmem:[%s9344_s8] sm:$0xff] }
0x28b6   :  { %v7838_v14 = vpop.eup %7837 }
0x2918   :  { %v5023_v15 = vpop.permute.xlu1 %5022 }
0x2919   :  { %v5025_v16 = vmul.f32 %v7838_v14, %v5023_v15  ;;  %v7922_v14 = vld [vmem:[#allocation6] sm:$0xff] }
0x291b   :  { %5027 = vrot.lane.b32.xlu0 %v5025_v16, %s7998_s26 }
0x298d   :  { %v5028_v58 = vpop.permute.xlu0 %5027 }
0x298e   :  { %7453 = vmatmul.mubr.msk.f32.vlgmr.msra.gmra.mxu1 %vm300_vm3, %v5028_v58  ;;  %7464 = vmatmul.mubr.msk.f32.vlgmr.msra.gmra.mxu0 %vm300_vm3, %v5028_v58 }
0x298f   :  { %7467 = vmatpush3.msra.mxu1 %v8727_v9  ;;  %7478 = vmatpush3.msra.mxu0 %v8729_v6 }
0x2990   :  { %7468 = vmatprep.subr.mxu1 %v7994_v1  ;;  %7479 = vmatprep.subr.mxu0 %v7994_v1 }
0x2991   :  { %7469 = vmatpush3.msra.mxu1 %v8733_v12  ;;  %7480 = vmatpush3.msra.mxu0 %v8735_v27 }
0x2992   :  { %7470 = vmatprep.subr.mxu1 %v7994_v1  ;;  %7481 = vmatprep.subr.mxu0 %v7994_v1 }
0x2993   :  { %7471 = vmatpush3.msra.mxu1 %v8741_v30  ;;  %7482 = vmatpush3.msra.mxu0 %v8743_v32 }
0x2994   :  { %7472 = vmatprep.subr.mxu1 %v7994_v1  ;;  %7483 = vmatprep.subr.mxu0 %v7994_v1 }
0x2995   :  { %7473 = vmatpush3.msra.mxu1 %v8749_v21  ;;  %7474 = vmatprep.mubr.msk.f32.mxu1 %vm7996_vm0, %v7994_v1 }
0x2996   :  { %7484 = vmatpush3.msra.mxu0 %v8753_v33  ;;  %7485 = vmatprep.mubr.msk.f32.mxu0 %vm7996_vm0, %v7994_v1 }
0x2997   :  { %7475 = vmatmul.mubr.msk.f32.vlgmr.msra.gmra.mxu1 %vm300_vm3, %v5028_v58  ;;  %7486 = vmatmul.mubr.msk.f32.vlgmr.msra.gmra.mxu0 %vm300_vm3, %v5028_v58 }
0x2998   :  { %7488 = vmatprep.subr.mxu1 %v7994_v1  ;;  %7496 = vmatprep.mubr.msk.f32.mxu1 %vm7996_vm0, %v7994_v1 }
0x2999   :  { %7489 = vmatpush3.msra.mxu1 %v8763_v34  ;;  %7499 = vmatprep.subr.mxu0 %v7994_v1 }
0x299a   :  { %7490 = vmatprep.subr.mxu1 %v7994_v1  ;;  %7500 = vmatpush3.msra.mxu0 %v8684_v40  ;;  %v9102_v40 = vld [vmem:[#allocation6 + $0x18] sm:$0xff] }
0x299b   :  { %7491 = vmatpush3.msra.mxu1 %v8768_v35  ;;  %7501 = vmatprep.subr.mxu0 %v7994_v1 }
0x299c   :  { %7492 = vmatprep.subr.mxu1 %v7994_v1  ;;  %7502 = vmatpush3.msra.mxu0 %v8691_v62  ;;  %v9109_v62 = vld [vmem:[#allocation6 + $0x10] sm:$0xff] }
0x299d   :  { %7493 = vmatpush3.msra.mxu1 %v8775_v37  ;;  %7503 = vmatprep.subr.mxu0 %v7994_v1 }
0x299e   :  { %7494 = vmatprep.subr.mxu1 %v7994_v1  ;;  %7504 = vmatpush3.msra.mxu0 %v8702_v0  ;;  %v9116_v0 = vld [vmem:[#allocation6 + $0x8] sm:$0xff] }
0x299f   :  { %7495 = vmatpush3.msra.mxu1 %v8781_v46  ;;  %7505 = vmatprep.subr.mxu0 %v7994_v1 }
0x29a0   :  { %7497 = vmatmul.mubr.msk.f32.vlgmr.msra.gmra.mxu1 %vm300_vm3, %v5028_v58  ;;  %7510 = vmatprep.subr.mxu1 %v7994_v1  ;;  %v9243_v58 = vld [vmem:[%s9345_s9] ss:$0 sm:$0xff] }
0x29a1   :  { %7511 = vmatpush3.msra.mxu1 %v9102_v40  ;;  %7506 = vmatpush3.msra.mxu0 %v8713_v3 }
0x29a2   :  { %7512 = vmatprep.subr.mxu1 %v7994_v1  ;;  %7507 = vmatprep.mubr.msk.f32.mxu0 %vm7996_vm0, %v7994_v1 }
0x29a3   :  { %7513 = vmatpush3.msra.mxu1 %v9109_v62  ;;  %7518 = vmatprep.mubr.msk.f32.mxu1 %vm7996_vm0, %v7994_v1 }
0x29a4   :  { %7514 = vmatprep.subr.mxu1 %v7994_v1  ;;  %7521 = vmatprep.subr.mxu0 %v7994_v1 }
0x29a5   :  { %7515 = vmatpush3.msra.mxu1 %v9116_v0 }
0x29a6   :  { %7516 = vmatprep.subr.mxu1 %v7994_v1 }
0x29a7   :  { %7517 = vmatpush3.msra.mxu1 %v8715_v4 }
0x29a8   :  { %7532 = vmatprep.subr.mxu1 %v7994_v1 }
0x2a4e   :  { %v5097_v3 = vpop.f32.mrf.mxu1  ;;  %v5167_v9 = vpop.f32.mrf.mxu0 }
0x2a4f   :  { %v5098_v6 = vadd.f32 %v8809_v54, %v5097_v3  ;;  %v5171_v54 = vadd.f32 %v8822_v28, %v5167_v9 }
0x2a50   :  { %v7454_v12 = vpop.f32.mrf.mxu1  ;;  %v7465_v27 = vpop.f32.mrf.mxu0 }
0x2a51   :  { %6327 = vst.msk [vmem:[%s9346_s10 + $0x8] sm:$0x3] %vm6322_vm4, %v5098_v6  ;;  %v6441_v17 = vmul.f32 -1.442695, %v5171_v54 }
0x2a57   :  { %v5238_v30 = vpop.f32.mrf.mxu1  ;;  %v5313_v32 = vpop.f32.mrf.mxu0 }
0x2a58   :  { %5318 = vrot.lane.b32.xlu1 %v5313_v32, %s7997_s25 }
0x2a59   :  { %v7476_v21 = vpop.f32.mrf.mxu1  ;;  %v7487_v33 = vpop.f32.mrf.mxu0 }
0x2a5a   :  { %v9256_v21 = vld [vmem:[%s9343_s7] ss:$0 sm:$0xff] }
0x2a5c   :  { %5243 = vrot.lane.b32.xlu1 %v5238_v30, %s7998_s26 }
0x2a60   :  { %v5388_v4 = vpop.f32.mrf.mxu1 }
0x2a61   :  { %5393 = vrot.lane.b32.xlu1 %v5388_v4, %s7999_s2 }
0x2a62   :  { %v7498_v34 = vpop.f32.mrf.mxu1 }
0x2aca   :  { %v5319_v35 = vpop.permute.xlu1 %5318 }
0x2acb   :  { %v5321_v37 = vadd.f32 %v8822_v28, %v5319_v35 }
0x2acd   :  { %7839 = vtanh.f32 %v5321_v37 }
0x2ace   :  { %7841 = vpow2.f32 %v6441_v17  ;;  %v5244_v39 = vpop.permute.xlu1 %5243 }
0x2acf   :  { %v5246_v63 = vadd.f32 %v8822_v28, %v5244_v39 }
0x2ad1   :  { %v6440_v7 = vmul.f32 -1.442695, %v5246_v63 }
0x2ad3   :  { %v5394_v25 = vpop.permute.xlu1 %5393 }
0x2ad4   :  { %v5396_v59 = vadd.f32 %v8822_v28, %v5394_v25  ;;  %v9147_v28 = vld [vmem:[#allocation6 + $0x58] sm:$0xff] }
0x2ad6   :  { %v6442_v60 = vmul.f32 -1.442695, %v5396_v59 }
0x2ada   :  { %v7840_v46 = vpop.eup %7839 }
0x2adb   :  { %5412 = vrot.lane.b32.xlu0 %v7840_v46, %s7997_s25  ;;  %v7842_v5 = vpop.eup %7841 }
0x2adc   :  { %v5407_v18 = vadd.f32 1.0, %v7842_v5 }
0x2ade   :  { %7843 = vrcp.f32 %v5407_v18 }
0x2adf   :  { %7845 = vpow2.f32 %v6440_v7 }
0x2aeb   :  { %v7844_v38 = vpop.eup %7843 }
0x2aec   :  { %v7846_v19 = vpop.eup %7845 }
0x2aed   :  { %v5400_v13 = vadd.f32 1.0, %v7846_v19 }
0x2aef   :  { %7847 = vrcp.f32 %v5400_v13 }
0x2afc   :  { %v7848_v2 = vpop.eup %7847 }
0x2afd   :  { %v5403_v20 = vmul.f32 %v7848_v2, %v9055_v53  ;;  %v9191_v53 = vld [vmem:[%s9344_s8 + $0x18] sm:$0xff] }
0x2b4d   :  { %v5413_v41 = vpop.permute.xlu0 %5412 }
0x2b4e   :  { %v5415_v36 = vmul.f32 %v7844_v38, %v5413_v41 }
0x2b50   :  { %5417 = vrot.lane.b32.xlu0 %v5415_v36, %s7998_s26 }
0x2bc2   :  { %v5418_v22 = vpop.permute.xlu0 %5417 }
0x2bc3   :  { %v9136_v23 = vadd.f32 %v5418_v22, %v5403_v20 }
0x2bc5   :  { %7849 = vtanh.f32 %v9136_v23 }
0x2bc6   :  { %7851 = vpow2.f32 %v6442_v60 }
0x2bd2   :  { %v7850_v24 = vpop.eup %7849 }
0x2bd3   :  { %5429 = vrot.lane.b32.xlu0 %v7850_v24, %s7997_s25  ;;  %v7852_v61 = vpop.eup %7851 }
0x2bd4   :  { %v5424_v26 = vadd.f32 1.0, %v7852_v61 }
0x2bd6   :  { %7853 = vrcp.f32 %v5424_v26 }
0x2be3   :  { %v7854_v29 = vpop.eup %7853 }
0x2c45   :  { %v5430_v31 = vpop.permute.xlu0 %5429 }
0x2c46   :  { %v5432_v42 = vmul.f32 %v7854_v29, %v5430_v31 }
0x2c48   :  { %5434 = vrot.lane.b32.xlu1 %v5432_v42, %s7998_s26 }
0x2cba   :  { %v5435_v43 = vpop.permute.xlu1 %5434 }
0x2cbb   :  { %7508 = vmatmul.mubr.msk.f32.vlgmr.msra.gmra.mxu0 %vm300_vm3, %v5435_v43  ;;  %7519 = vmatmul.mubr.msk.f32.vlgmr.msra.gmra.mxu1 %vm300_vm3, %v5435_v43 }
0x2cbc   :  { %7522 = vmatpush3.msra.mxu0 %v9144_v44  ;;  %7533 = vmatpush3.msra.mxu1 %v9147_v28 }
0x2cbd   :  { %7523 = vmatprep.subr.mxu0 %v7994_v1  ;;  %7534 = vmatprep.subr.mxu1 %v7994_v1 }
0x2cbe   :  { %7524 = vmatpush3.msra.mxu0 %v9152_v45  ;;  %7535 = vmatpush3.msra.mxu1 %v9155_v47 }
0x2cbf   :  { %7525 = vmatprep.subr.mxu0 %v7994_v1  ;;  %7536 = vmatprep.subr.mxu1 %v7994_v1 }
0x2cc0   :  { %7526 = vmatpush3.msra.mxu0 %v9160_v48  ;;  %7537 = vmatpush3.msra.mxu1 %v9163_v49 }
0x2cc1   :  { %7527 = vmatprep.subr.mxu0 %v7994_v1  ;;  %7538 = vmatprep.subr.mxu1 %v7994_v1 }
0x2cc2   :  { %7528 = vmatpush3.msra.mxu0 %v9168_v50  ;;  %7529 = vmatprep.mubr.msk.f32.mxu0 %vm7996_vm0, %v7994_v1 }
0x2cc3   :  { %7539 = vmatpush3.msra.mxu1 %v9173_v51  ;;  %7540 = vmatprep.mubr.msk.f32.mxu1 %vm7996_vm0, %v7994_v1 }
0x2cc4   :  { %7530 = vmatmul.mubr.msk.f32.vlgmr.msra.gmra.mxu0 %vm300_vm3, %v5435_v43  ;;  %7541 = vmatmul.mubr.msk.f32.vlgmr.msra.gmra.mxu1 %vm300_vm3, %v5435_v43 }
0x2cc5   :  { %7543 = vmatprep.subr.mxu0 %v7994_v1  ;;  %7551 = vmatprep.mubr.msk.f32.mxu0 %vm7996_vm0, %v7994_v1 }
0x2cc6   :  { %7544 = vmatpush3.msra.mxu0 %v9183_v52  ;;  %7554 = vmatprep.subr.mxu1 %v7994_v1 }
0x2cc7   :  { %7545 = vmatprep.subr.mxu0 %v7994_v1  ;;  %7555 = vmatpush3.msra.mxu1 %v9191_v53 }
0x2cc8   :  { %7546 = vmatpush3.msra.mxu0 %v9194_v55  ;;  %7556 = vmatprep.subr.mxu1 %v7994_v1 }
0x2cc9   :  { %7547 = vmatprep.subr.mxu0 %v7994_v1  ;;  %7557 = vmatpush3.msra.mxu1 %v9202_v56 }
0x2cca   :  { %7548 = vmatpush3.msra.mxu0 %v9205_v57  ;;  %7558 = vmatprep.subr.mxu1 %v7994_v1 }
0x2ccb   :  { %7549 = vmatprep.subr.mxu0 %v7994_v1  ;;  %7559 = vmatpush3.msra.mxu1 %v9213_v8 }
0x2ccc   :  { %7550 = vmatpush3.msra.mxu0 %v9216_v10  ;;  %7560 = vmatprep.subr.mxu1 %v7994_v1 }
0x2ccd   :  { %7552 = vmatmul.mubr.msk.f32.vlgmr.msra.gmra.mxu0 %vm300_vm3, %v5435_v43  ;;  %7565 = vmatprep.subr.mxu0 %v7994_v1 }
0x2cce   :  { %7566 = vmatpush3.msra.mxu0 %v9102_v40  ;;  %7561 = vmatpush3.msra.mxu1 %v9226_v11 }
0x2ccf   :  { %7567 = vmatprep.subr.mxu0 %v7994_v1  ;;  %7562 = vmatprep.mubr.msk.f32.mxu1 %vm7996_vm0, %v7994_v1 }
0x2cd0   :  { %7568 = vmatpush3.msra.mxu0 %v9109_v62  ;;  %7573 = vmatprep.mubr.msk.f32.mxu0 %vm7996_vm0, %v7994_v1 }
0x2cd1   :  { %7569 = vmatprep.subr.mxu0 %v7994_v1  ;;  %7576 = vmatprep.subr.mxu1 %v7994_v1 }
0x2cd2   :  { %7570 = vmatpush3.msra.mxu0 %v9116_v0 }
0x2cd3   :  { %7571 = vmatprep.subr.mxu0 %v7994_v1 }
0x2cd4   :  { %7572 = vmatpush3.msra.mxu0 %v7922_v14 }
0x2cd5   :  { %7587 = vmatprep.subr.mxu0 %v7994_v1 }
0x2d7b   :  { %v5504_v15 = vpop.f32.mrf.mxu0  ;;  %v5574_v16 = vpop.f32.mrf.mxu1 }
0x2d7c   :  { %v5505_v40 = vadd.f32 %v9243_v58, %v5504_v15  ;;  %v5578_v34 = vadd.f32 %v9256_v21, %v5574_v16 }
0x2d7d   :  { %v7509_v62 = vpop.f32.mrf.mxu0  ;;  %v7520_v3 = vpop.f32.mrf.mxu1 }
0x2d7e   :  { %6328 = vst.msk [vmem:[%s9346_s10 + $0xa] sm:$0x3] %vm6322_vm4, %v5505_v40  ;;  %v6449_v35 = vmul.f32 -1.442695, %v5578_v34 }
0x2d84   :  { %v5645_v0 = vpop.f32.mrf.mxu0  ;;  %v5720_v9 = vpop.f32.mrf.mxu1 }
0x2d85   :  { %5725 = vrot.lane.b32.xlu0 %v5720_v9, %s7997_s25 }
0x2d86   :  { %v7531_v6 = vpop.f32.mrf.mxu0  ;;  %v7542_v12 = vpop.f32.mrf.mxu1 }
0x2d89   :  { %5650 = vrot.lane.b32.xlu0 %v5645_v0, %s7998_s26 }
0x2d8d   :  { %v5795_v27 = vpop.f32.mrf.mxu0 }
0x2d8e   :  { %5800 = vrot.lane.b32.xlu0 %v5795_v27, %s7999_s2 }
0x2d8f   :  { %v7553_v30 = vpop.f32.mrf.mxu0 }
0x2df7   :  { %v5726_v32 = vpop.permute.xlu0 %5725 }
0x2df8   :  { %v5728_v33 = vadd.f32 %v9256_v21, %v5726_v32 }
0x2dfa   :  { %7855 = vtanh.f32 %v5728_v33 }
0x2dfb   :  { %7857 = vpow2.f32 %v6449_v35  ;;  %v5651_v18 = vpop.permute.xlu0 %5650 }
0x2dfc   :  { %v5653_v38 = vadd.f32 %v9256_v21, %v5651_v18 }
0x2dfe   :  { %v6448_v41 = vmul.f32 -1.442695, %v5653_v38 }
0x2e00   :  { %v5801_v20 = vpop.permute.xlu0 %5800 }
0x2e01   :  { %v5803_v22 = vadd.f32 %v9256_v21, %v5801_v20 }
0x2e03   :  { %v6450_v24 = vmul.f32 -1.442695, %v5803_v22 }
0x2e07   :  { %v7856_v4 = vpop.eup %7855 }
0x2e08   :  { %5819 = vrot.lane.b32.xlu1 %v7856_v4, %s7997_s25  ;;  %v7858_v37 = vpop.eup %7857 }
0x2e09   :  { %v5814_v46 = vadd.f32 1.0, %v7858_v37 }
0x2e0b   :  { %7859 = vrcp.f32 %v5814_v46 }
0x2e0c   :  { %7861 = vpow2.f32 %v6448_v41 }
0x2e18   :  { %v7860_v54 = vpop.eup %7859 }
0x2e19   :  { %v7862_v36 = vpop.eup %7861 }
0x2e1a   :  { %v5807_v39 = vadd.f32 1.0, %v7862_v36 }
0x2e1c   :  { %7863 = vrcp.f32 %v5807_v39 }
0x2e29   :  { %v7864_v63 = vpop.eup %7863 }
0x2e2a   :  { %v5810_v7 = vmul.f32 %v7864_v63, %v9136_v23 }
0x2e7a   :  { %v5820_v17 = vpop.permute.xlu1 %5819 }
0x2e7b   :  { %v5822_v5 = vmul.f32 %v7860_v54, %v5820_v17 }
0x2e7d   :  { %5824 = vrot.lane.b32.xlu1 %v5822_v5, %s7998_s26 }
0x2eef   :  { %v5825_v19 = vpop.permute.xlu1 %5824 }
0x2ef0   :  { %v9264_v13 = vadd.f32 %v5825_v19, %v5810_v7 }
0x2ef2   :  { %7865 = vtanh.f32 %v9264_v13 }
0x2ef3   :  { %7867 = vpow2.f32 %v6450_v24 }
0x2eff   :  { %v7866_v2 = vpop.eup %7865 }
0x2f00   :  { %5836 = vrot.lane.b32.xlu1 %v7866_v2, %s7997_s25  ;;  %v7868_v25 = vpop.eup %7867 }
0x2f01   :  { %v5831_v59 = vadd.f32 1.0, %v7868_v25 }
0x2f03   :  { %7869 = vrcp.f32 %v5831_v59 }
0x2f10   :  { %v7870_v60 = vpop.eup %7869 }
0x2f72   :  { %v5837_v61 = vpop.permute.xlu1 %5836 }
0x2f73   :  { %v5839_v26 = vmul.f32 %v7870_v60, %v5837_v61 }
0x2f75   :  { %5841 = vrot.lane.b32.xlu0 %v5839_v26, %s7998_s26 }
0x2fe7   :  { %v5842_v23 = vpop.permute.xlu0 %5841 }
0x2fe8   :  { %7563 = vmatmul.mubr.msk.f32.vlgmr.msra.gmra.mxu1 %vm300_vm3, %v5842_v23  ;;  %7574 = vmatmul.mubr.msk.f32.vlgmr.msra.gmra.mxu0 %vm300_vm3, %v5842_v23 }
0x2fe9   :  { %7577 = vmatpush3.msra.mxu1 %v9144_v44  ;;  %7588 = vmatpush3.msra.mxu0 %v9147_v28 }
0x2fea   :  { %7578 = vmatprep.subr.mxu1 %v7994_v1  ;;  %7589 = vmatprep.subr.mxu0 %v7994_v1 }
0x2feb   :  { %7579 = vmatpush3.msra.mxu1 %v9152_v45  ;;  %7590 = vmatpush3.msra.mxu0 %v9155_v47 }
0x2fec   :  { %7580 = vmatprep.subr.mxu1 %v7994_v1  ;;  %7591 = vmatprep.subr.mxu0 %v7994_v1 }
0x2fed   :  { %7581 = vmatpush3.msra.mxu1 %v9160_v48  ;;  %7592 = vmatpush3.msra.mxu0 %v9163_v49 }
0x2fee   :  { %7582 = vmatprep.subr.mxu1 %v7994_v1  ;;  %7593 = vmatprep.subr.mxu0 %v7994_v1 }
0x2fef   :  { %7583 = vmatpush3.msra.mxu1 %v9168_v50  ;;  %7584 = vmatprep.mubr.msk.f32.mxu1 %vm7996_vm0, %v7994_v1 }
0x2ff0   :  { %7594 = vmatpush3.msra.mxu0 %v9173_v51  ;;  %7595 = vmatprep.mubr.msk.f32.mxu0 %vm7996_vm0, %v7994_v1 }
0x2ff1   :  { %7585 = vmatmul.mubr.msk.f32.vlgmr.msra.gmra.mxu1 %vm300_vm3, %v5842_v23  ;;  %7596 = vmatmul.mubr.msk.f32.vlgmr.msra.gmra.mxu0 %vm300_vm3, %v5842_v23 }
0x2ff2   :  { %7598 = vmatprep.subr.mxu1 %v7994_v1  ;;  %7606 = vmatprep.mubr.msk.f32.mxu1 %vm7996_vm0, %v7994_v1 }
0x2ff3   :  { %7599 = vmatpush3.msra.mxu1 %v9183_v52  ;;  %7609 = vmatprep.subr.mxu0 %v7994_v1 }
0x2ff4   :  { %7600 = vmatprep.subr.mxu1 %v7994_v1  ;;  %7610 = vmatpush3.msra.mxu0 %v9191_v53 }
0x2ff5   :  { %7601 = vmatpush3.msra.mxu1 %v9194_v55  ;;  %7611 = vmatprep.subr.mxu0 %v7994_v1 }
0x2ff6   :  { %7602 = vmatprep.subr.mxu1 %v7994_v1  ;;  %7612 = vmatpush3.msra.mxu0 %v9202_v56 }
0x2ff7   :  { %7603 = vmatpush3.msra.mxu1 %v9205_v57  ;;  %7613 = vmatprep.subr.mxu0 %v7994_v1 }
0x2ff8   :  { %7604 = vmatprep.subr.mxu1 %v7994_v1  ;;  %7614 = vmatpush3.msra.mxu0 %v9213_v8 }
0x2ff9   :  { %7605 = vmatpush3.msra.mxu1 %v9216_v10  ;;  %7615 = vmatprep.subr.mxu0 %v7994_v1 }
0x2ffa   :  { %7607 = vmatmul.mubr.msk.f32.vlgmr.msra.gmra.mxu1 %vm300_vm3, %v5842_v23  ;;  %7616 = vmatpush3.msra.mxu0 %v9226_v11 }
0x2ffb   :  { %7617 = vmatprep.mubr.msk.f32.mxu0 %vm7996_vm0, %v7994_v1 }
0x30a8   :  { %v5911_v29 = vpop.f32.mrf.mxu1  ;;  %v5981_v31 = vpop.f32.mrf.mxu0 }
0x30a9   :  { %v5912_v42 = vadd.f32 %v9243_v58, %v5911_v29  ;;  %v5985_v53 = vadd.f32 %v9256_v21, %v5981_v31 }
0x30aa   :  { %v7564_v43 = vpop.f32.mrf.mxu1  ;;  %v7575_v44 = vpop.f32.mrf.mxu0 }
0x30ab   :  { %6329 = vst.msk [vmem:[%s9346_s10 + $0xc] sm:$0x3] %vm6322_vm4, %v5912_v42  ;;  %v6457_v55 = vmul.f32 -1.442695, %v5985_v53 }
0x30b1   :  { %v6052_v28 = vpop.f32.mrf.mxu1  ;;  %v6127_v45 = vpop.f32.mrf.mxu0 }
0x30b2   :  { %6132 = vrot.lane.b32.xlu1 %v6127_v45, %s7997_s25 }
0x30b3   :  { %v7586_v47 = vpop.f32.mrf.mxu1  ;;  %v7597_v48 = vpop.f32.mrf.mxu0 }
0x30b6   :  { %6057 = vrot.lane.b32.xlu1 %v6052_v28, %s7998_s26 }
0x30ba   :  { %v6202_v1 = vpop.f32.mrf.mxu1 }
0x30bb   :  { %6207 = vrot.lane.b32.xlu1 %v6202_v1, %s7999_s2 }
0x30bc   :  { %v7608_v49 = vpop.f32.mrf.mxu1 }
0x3124   :  { %v6133_v50 = vpop.permute.xlu1 %6132 }
0x3125   :  { %v6135_v51 = vadd.f32 %v9256_v21, %v6133_v50 }
0x3127   :  { %7871 = vtanh.f32 %v6135_v51 }
0x3128   :  { %7873 = vpow2.f32 %v6457_v55  ;;  %v6058_v14 = vpop.permute.xlu1 %6057 }
0x3129   :  { %v6060_v15 = vadd.f32 %v9256_v21, %v6058_v14 }
0x312b   :  { %v6456_v16 = vmul.f32 -1.442695, %v6060_v15 }
0x312d   :  { %v6208_v27 = vpop.permute.xlu1 %6207 }
0x312e   :  { %v6210_v30 = vadd.f32 %v9256_v21, %v6208_v27 }
0x3130   :  { %v6458_v32 = vmul.f32 -1.442695, %v6210_v30 }
0x3134   :  { %v7872_v52 = vpop.eup %7871 }
0x3135   :  { %6226 = vrot.lane.b32.xlu0 %v7872_v52, %s7997_s25  ;;  %v7874_v56 = vpop.eup %7873 }
0x3136   :  { %v6221_v57 = vadd.f32 1.0, %v7874_v56 }
0x3138   :  { %7875 = vrcp.f32 %v6221_v57 }
0x3139   :  { %7877 = vpow2.f32 %v6456_v16 }
0x3145   :  { %v7876_v8 = vpop.eup %7875 }
0x3146   :  { %v7878_v40 = vpop.eup %7877 }
0x3147   :  { %v6214_v62 = vadd.f32 1.0, %v7878_v40 }
0x3149   :  { %7879 = vrcp.f32 %v6214_v62 }
0x3156   :  { %v7880_v3 = vpop.eup %7879 }
0x3157   :  { %v6217_v0 = vmul.f32 %v7880_v3, %v9264_v13 }
0x31a7   :  { %v6227_v10 = vpop.permute.xlu0 %6226 }
0x31a8   :  { %v6229_v11 = vmul.f32 %v7876_v8, %v6227_v10 }
0x31aa   :  { %6231 = vrot.lane.b32.xlu0 %v6229_v11, %s7998_s26 }
0x321c   :  { %v6232_v9 = vpop.permute.xlu0 %6231 }
0x321d   :  { %v6234_v6 = vadd.f32 %v6232_v9, %v6217_v0 }
0x321f   :  { %7881 = vtanh.f32 %v6234_v6 }
0x3220   :  { %7883 = vpow2.f32 %v6458_v32 }
0x322c   :  { %v7882_v12 = vpop.eup %7881 }
0x322d   :  { %6243 = vrot.lane.b32.xlu0 %v7882_v12, %s7997_s25  ;;  %v7884_v33 = vpop.eup %7883 }
0x322e   :  { %v6238_v4 = vadd.f32 1.0, %v7884_v33 }
0x3230   :  { %7885 = vrcp.f32 %v6238_v4 }
0x323d   :  { %v7886_v34 = vpop.eup %7885 }
0x329f   :  { %v6244_v35 = vpop.permute.xlu0 %6243 }
0x32a0   :  { %v6246_v37 = vmul.f32 %v7886_v34, %v6244_v35 }
0x32a2   :  { %6248 = vrot.lane.b32.xlu1 %v6246_v37, %s7998_s26 }
0x3314   :  { %v6249_v46 = vpop.permute.xlu1 %6248 }
0x3315   :  { %7618 = vmatmul.mubr.msk.f32.vlgmr.msra.gmra.mxu0 %vm300_vm3, %v6249_v46 }
0x33d5   :  { %v6318_v54 = vpop.f32.mrf.mxu0 }
0x33d6   :  { %v6319_v17 = vadd.f32 %v9243_v58, %v6318_v54 }
0x33d7   :  { %v7619_v5 = vpop.f32.mrf.mxu0 }
0x33d8   :  { %6330 = vst.msk [vmem:[%s9346_s10 + $0xe] sm:$0x3] %vm6322_vm4, %v6319_v17 }
0x33d9   :  { %6335 = vsyncpa [#allocation3], 1 }
0x33da   :  { %6336 = vsyncpa [#allocation5], 1 }

</bundles_post_ra>
